<compile_context>
chip_gen: v5e
topology: v5e:2x2
jax: 0.10.0
libtpu: 0.0.40
codegen_flags: <defaults>
</compile_context>

<pallas_src>
import numpy as np
import jax
import jax.numpy as jnp
from jax import lax
from jax.experimental import pallas as pl
from jax.experimental.pallas import tpu as pltpu

_TILE_IMGS = 8                       # max images per conv grid step (12 unrolled dots/image)
COMPUTE_DTYPE = jnp.bfloat16         # HBM / MXU dtype; accumulation is always f32
_VMEM_LIMIT = 32 * 1024 * 1024


# ---------------------------------------------------------------- Pallas kernels

def _conv_pool_relu_kernel(z_ref, r0_ref, r1_ref, r2_ref, r3_ref, b_ref, o_ref):
    """Fused 5x5 conv + bias + 2x2 maxpool + relu on space-to-depth input.

    z_ref:  (ti, Hz, Wz*4C)     space-to-depth activation block
    r*_ref: (3, Wz*4C, Pw*Cout) band weight matrix, one per pooling offset (resident)
    b_ref:  (1, Pw*Cout)        bias tiled across pw (f32)
    o_ref:  (ti, Ph, Pw*Cout)   Ph = Hz - 2, lane order (pw, cout)
    """
    ti, ph, _ = o_ref.shape
    b = b_ref[...]
    r_refs = (r0_ref, r1_ref, r2_ref, r3_ref)
    for im in range(ti):                       # ti <= 8: small static unroll
        zi = z_ref[im]                         # (Hz, K)
        acc = [None] * 4
        for qh in range(3):                    # row shift of the 3-tall band conv
            lhs = zi[qh:qh + ph, :]            # (Ph, K) shifted row window (no copy to HBM)
            for g in range(4):                 # 4 pooling offsets
                d = jnp.dot(lhs, r_refs[g][qh], preferred_element_type=jnp.float32)
                acc[g] = d if acc[g] is None else acc[g] + d
        y = jnp.maximum(jnp.maximum(acc[0], acc[1]), jnp.maximum(acc[2], acc[3]))
        o_ref[im] = jnp.maximum(y + b, 0.0).astype(o_ref.dtype)


def _mlp_head_kernel(x_ref, w1_ref, b1_ref, w2_ref, b2_ref, o_ref):
    """fc1 + relu + fc2 + log_softmax(dim=1), fused."""
    h = jnp.dot(x_ref[...], w1_ref[...], preferred_element_type=jnp.float32) + b1_ref[...]
    h = jnp.maximum(h, 0.0)
    # TODO(synk): F.dropout between fc1/fc2 and Dropout2d after conv2 are identity
    #             (eval mode); training-mode stochastic masks are not replicated.
    logits = jnp.dot(h.astype(w2_ref.dtype), w2_ref[...],
                     preferred_element_type=jnp.float32) + b2_ref[...]
    m = jnp.max(logits, axis=-1, keepdims=True)
    s = logits - m
    lse = jnp.log(jnp.sum(jnp.exp(s), axis=-1, keepdims=True))
    o_ref[...] = (s - lse).astype(o_ref.dtype)


# ---------------------------------------------------------------- pallas_call wrappers

def conv_pool_relu(z, r4, b, *, ti, out_dtype):
    """z: (Np, Hz, Wz*4C); r4: 4 x (3, Wz*4C, Pw*Cout); b: (1, Pw*Cout).
    Returns (Np, Ph, Pw*Cout), Ph = Hz - 2."""
    Np, Hz, K = z.shape
    _, _, Nout = r4[0].shape
    Ph = Hz - 2
    isz = np.dtype(z.dtype).itemsize

    res = lambda shape: pl.BlockSpec(shape, lambda i, _s=shape: (0,) * len(_s))
    cost = pl.CostEstimate(
        flops=Np * 3 * 4 * 2 * Ph * K * Nout,
        transcendentals=0,
        bytes_accessed=(Np * Hz * K + 4 * 3 * K * Nout + Np * Ph * Nout) * isz + 4 * Nout)

    return pl.pallas_call(
        _conv_pool_relu_kernel,
        out_shape=jax.ShapeDtypeStruct((Np, Ph, Nout), out_dtype),
        grid_spec=pltpu.PrefetchScalarGridSpec(
            num_scalar_prefetch=0,
            grid=(Np // ti,),
            in_specs=[pl.BlockSpec((ti, Hz, K), lambda i: (i, 0, 0)),
                      res((3, K, Nout)), res((3, K, Nout)),
                      res((3, K, Nout)), res((3, K, Nout)),
                      res((1, Nout))],
            out_specs=pl.BlockSpec((ti, Ph, Nout), lambda i: (i, 0, 0)),
        ),
        compiler_params=pltpu.CompilerParams(
            dimension_semantics=("parallel",),
            vmem_limit_bytes=_VMEM_LIMIT),
        cost_estimate=cost,
    )(z, r4[0], r4[1], r4[2], r4[3], b)


def mlp_head(x, w1, b1, w2, b2, *, tile_rows):
    """Fused fc1 + relu + fc2 + log_softmax. x: (M, K) -> (M, C) f32 log-probs."""
    M, K = x.shape
    H = w1.shape[1]
    C = w2.shape[1]
    isz = np.dtype(x.dtype).itemsize

    res = lambda shape: pl.BlockSpec(shape, lambda i, _s=shape: (0,) * len(_s))
    cost = pl.CostEstimate(
        flops=2 * M * (K * H + H * C),
        transcendentals=M * C,
        bytes_accessed=(M * K + K * H + H * C) * isz + (M * C + H + C) * 4)

    return pl.pallas_call(
        _mlp_head_kernel,
        out_shape=jax.ShapeDtypeStruct((M, C), jnp.float32),
        grid_spec=pltpu.PrefetchScalarGridSpec(
            num_scalar_prefetch=0,
            grid=(M // tile_rows,),
            in_specs=[pl.BlockSpec((tile_rows, K), lambda i: (i, 0)),
                      res((K, H)), res((1, H)), res((H, C)), res((1, C))],
            out_specs=pl.BlockSpec((tile_rows, C), lambda i: (i, 0)),
        ),
        compiler_params=pltpu.CompilerParams(
            dimension_semantics=("parallel",),
            vmem_limit_bytes=_VMEM_LIMIT),
        cost_estimate=cost,
    )(x, w1, b1.reshape(1, H).astype(jnp.float32),
      w2, b2.reshape(1, C).astype(jnp.float32))


# ------------------------------------------------ trace-time band-weight construction

def _make_placement(Wz, Pw, dh, dw):
    """Constant 0/1 tensor A[qh, jz, rr, pw, kh, kw] mapping conv taps (kh, kw) onto the
    space-to-depth band matrix for pooling offset (dh, dw)."""
    A = np.zeros((3, Wz, 4, Pw, 5, 5), np.float32)
    for kh in range(5):
        qh, rh = divmod(dh + kh, 2)
        for kw in range(5):
            qw, rw = divmod(dw + kw, 2)
            rr = rh * 2 + rw
            for pw in range(Pw):
                A[qh, pw + qw, rr, pw, kh, kw] = 1.0
    return A


def _conv_band_rhs(conv_w, dh, dw, *, Wz, Pw, dtype):
    """Build the (3, Wz*4C, Pw*Cout) band matrix R for pooling offset (dh, dw) such that
    pooled-conv output row ph equals sum_qh z[ph+qh, :] @ R[qh] (z = space-to-depth input)."""
    Cout, C = conv_w.shape[0], conv_w.shape[1]
    A = jnp.asarray(_make_placement(Wz, Pw, dh, dw))
    R = jnp.einsum("qjrpxy,ocxy->qjrcpo", A, conv_w)      # (3, Wz, 4, C, Pw, Cout)
    return R.reshape(3, Wz * 4 * C, Pw * Cout).astype(dtype)


# ---------------------------------------------------------------- model

def init_params(key):
    ks = jax.random.split(key, 8)

    def w(k, shape, fan_in):
        return jax.random.normal(k, shape, jnp.float32) / np.sqrt(fan_in)

    return {
        "conv1_w": w(ks[0], (10, 3, 5, 5), 75),
        "conv1_b": w(ks[1], (10,), 75),
        "conv2_w": w(ks[2], (20, 10, 5, 5), 250),
        "conv2_b": w(ks[3], (20,), 250),
        "fc1_w":   w(ks[4], (50, 500), 500),
        "fc1_b":   w(ks[5], (50,), 500),
        "fc2_w":   w(ks[6], (10, 50), 50),
        "fc2_b":   w(ks[7], (10,), 50),
    }


def cifar_net_forward(params, x):
    """x: (N, 3, 32, 32) float32 NCHW (PyTorch layout). Returns (N, 10) f32 log-probs."""
    N = x.shape[0]
    assert x.shape[1:] == (3, 32, 32), "CIFAR_Net expects (N, 3, 32, 32) inputs"
    cd = COMPUTE_DTYPE

    # >=2 grid steps whenever N >= 2 so both v7x TensorCores get work; cap at _TILE_IMGS.
    ti = max(1, min(_TILE_IMGS, N // 2))
    Np = ((N + ti - 1) // ti) * ti

    xb = x.astype(cd)                  # cast BEFORE the materialized layout transform
    if Np != N:
        xb = jnp.pad(xb, ((0, Np - N), (0, 0), (0, 0), (0, 0)))

    # space-to-depth pack (replaces the NCHW->NHWC copy we needed anyway):
    #   z1[n, i, j*12 + (a*2+b)*3 + c] = x[n, c, 2i+a, 2j+b]
    z1 = (xb.reshape(Np, 3, 16, 2, 16, 2)
            .transpose(0, 2, 4, 3, 5, 1)
            .reshape(Np, 16, 16 * 12))

    r1 = [_conv_band_rhs(params["conv1_w"], dh, dw, Wz=16, Pw=14, dtype=cd)
          for dh in (0, 1) for dw in (0, 1)]
    b1 = jnp.tile(params["conv1_b"], 14).reshape(1, 14 * 10).astype(jnp.float32)
    a1 = conv_pool_relu(z1, r1, b1, ti=ti, out_dtype=cd)     # (Np, 14, 140), lanes (pw, c)

    # space-to-depth for conv2 (tiny bf16 copy): a1 rows are (h), lanes are (w, c)
    z2 = (a1.reshape(Np, 7, 2, 7, 2, 10)
            .transpose(0, 1, 3, 2, 4, 5)
            .reshape(Np, 7, 7 * 40))

    r2 = [_conv_band_rhs(params["conv2_w"], dh, dw, Wz=7, Pw=5, dtype=cd)
          for dh in (0, 1) for dw in (0, 1)]
    b2 = jnp.tile(params["conv2_b"], 5).reshape(1, 5 * 20).astype(jnp.float32)
    a2 = conv_pool_relu(z2, r2, b2, ti=ti, out_dtype=cd)     # (Np, 5, 100), lanes (pw, c)

    # x.view(-1, 500): our flatten order is (h, w, c); permute fc1's K axis once to match.
    flat = a2.reshape(Np, 500)
    w3 = (params["fc1_w"].reshape(50, 20, 5, 5)
          .transpose(0, 2, 3, 1).reshape(50, 500).T).astype(cd)
    w4 = params["fc2_w"].T.astype(cd)

    head_rows = Np if Np <= 512 else 512                     # whole head in one step if small
    Nh = ((Np + head_rows - 1) // head_rows) * head_rows
    if Nh != Np:
        flat = jnp.pad(flat, ((0, Nh - Np), (0, 0)))
    out = mlp_head(flat, w3, params["fc1_b"], w4, params["fc2_b"], tile_rows=head_rows)
    return out[:N]


def _reference_forward(params, x):
    """Pure-JAX f32 reference of the PyTorch forward (eval mode) for validation."""
    conv = lambda t, w, b: lax.conv_general_dilated(
        t, w, (1, 1), "VALID", dimension_numbers=("NCHW", "OIHW", "NCHW")
    ) + b[None, :, None, None]
    pool = lambda t: lax.reduce_window(t, -jnp.inf, lax.max,
                                       (1, 1, 2, 2), (1, 1, 2, 2), "VALID")
    y = jax.nn.relu(pool(conv(x, params["conv1_w"], params["conv1_b"])))
    y = jax.nn.relu(pool(conv(y, params["conv2_w"], params["conv2_b"])))
    y = y.reshape(y.shape[0], 500)
    y = jax.nn.relu(y @ params["fc1_w"].T + params["fc1_b"])
    y = y @ params["fc2_w"].T + params["fc2_b"]
    return jax.nn.log_softmax(y, axis=1)


if __name__ == "__main__":
    key = jax.random.PRNGKey(0)
    pkey, xkey = jax.random.split(key)
    params = init_params(pkey)
    x = jax.random.normal(xkey, (2, 3, 32, 32), jnp.float32)     # NCHW, CIFAR-sized

    fwd = jax.jit(cifar_net_forward)
    out = jax.block_until_ready(fwd(params, x))
    ref = jax.block_until_ready(_reference_forward(params, x))

    assert out.shape == (2, 10)
    # bf16 compute (f32 accumulation) vs f32 reference: loose but still bug-catching tolerance.
    np.testing.assert_allclose(np.asarray(out), np.asarray(ref), atol=5e-2, rtol=5e-2)
    print("KERNEL_OK")
</pallas_src>

<mosaic_0001>
module attributes {stable_mosaic.version = 11 : i64} {
  func.func @_conv_pool_relu_kernel(%arg0: i32, %arg1: memref<1x16x192xbf16, #tpu.memory_space<vmem>>, %arg2: memref<3x192x140xbf16, #tpu.memory_space<vmem>>, %arg3: memref<3x192x140xbf16, #tpu.memory_space<vmem>>, %arg4: memref<3x192x140xbf16, #tpu.memory_space<vmem>>, %arg5: memref<3x192x140xbf16, #tpu.memory_space<vmem>>, %arg6: memref<1x140xf32, #tpu.memory_space<vmem>>, %arg7: memref<1x14x140xbf16, #tpu.memory_space<vmem>>) attributes {dimension_semantics = [#tpu.dimension_semantics<parallel>], iteration_bounds = array<i64: 2>, scalar_prefetch = 0 : i64, scratch_operands = 0 : i64, tpu.core_type = #tpu.core_type<tc>, window_params = [{transform_indices = @transform_0, window_bounds = array<i64: 1, 16, 192>}, {pipeline_mode = #tpu.pipeline_mode<synchronous>, transform_indices = @transform_1, window_bounds = array<i64: 3, 192, 140>}, {pipeline_mode = #tpu.pipeline_mode<synchronous>, transform_indices = @transform_2, window_bounds = array<i64: 3, 192, 140>}, {pipeline_mode = #tpu.pipeline_mode<synchronous>, transform_indices = @transform_3, window_bounds = array<i64: 3, 192, 140>}, {pipeline_mode = #tpu.pipeline_mode<synchronous>, transform_indices = @transform_4, window_bounds = array<i64: 3, 192, 140>}, {pipeline_mode = #tpu.pipeline_mode<synchronous>, transform_indices = @transform_5, window_bounds = array<i64: 1, 140>}, {transform_indices = @transform_6, window_bounds = array<i64: 1, 14, 140>}]} {
    %c0 = arith.constant 0 : index
    %c0_0 = arith.constant 0 : index
    %0 = vector.load %arg6[%c0, %c0_0] : memref<1x140xf32, #tpu.memory_space<vmem>>, vector<1x140xf32>
    %c0_1 = arith.constant 0 : index
    %c0_2 = arith.constant 0 : index
    %c0_3 = arith.constant 0 : index
    %1 = vector.load %arg1[%c0_1, %c0_2, %c0_3] : memref<1x16x192xbf16, #tpu.memory_space<vmem>>, vector<1x16x192xbf16>
    %2 = vector.shape_cast %1 : vector<1x16x192xbf16> to vector<16x192xbf16>
    %3 = vector.extract_strided_slice %2 {offsets = [0, 0], sizes = [14, 192], strides = [1, 1]} : vector<16x192xbf16> to vector<14x192xbf16>
    %c0_4 = arith.constant 0 : index
    %c0_5 = arith.constant 0 : index
    %c0_6 = arith.constant 0 : index
    %4 = vector.load %arg2[%c0_4, %c0_5, %c0_6] : memref<3x192x140xbf16, #tpu.memory_space<vmem>>, vector<1x192x140xbf16>
    %5 = vector.shape_cast %4 : vector<1x192x140xbf16> to vector<192x140xbf16>
    %cst = arith.constant dense<0.000000e+00> : vector<14x140xf32>
    %6 = tpu.matmul %3, %5, %cst {dimension_numbers = #tpu.dot_dimension_numbers<[1], [0], [0], [1], [0, 0, 1, 1], [], []>} : vector<14x192xbf16>, vector<192x140xbf16>, vector<14x140xf32> -> vector<14x140xf32>
    %c0_7 = arith.constant 0 : index
    %c0_8 = arith.constant 0 : index
    %c0_9 = arith.constant 0 : index
    %7 = vector.load %arg3[%c0_7, %c0_8, %c0_9] : memref<3x192x140xbf16, #tpu.memory_space<vmem>>, vector<1x192x140xbf16>
    %8 = vector.shape_cast %7 : vector<1x192x140xbf16> to vector<192x140xbf16>
    %cst_10 = arith.constant dense<0.000000e+00> : vector<14x140xf32>
    %9 = tpu.matmul %3, %8, %cst_10 {dimension_numbers = #tpu.dot_dimension_numbers<[1], [0], [0], [1], [0, 0, 1, 1], [], []>} : vector<14x192xbf16>, vector<192x140xbf16>, vector<14x140xf32> -> vector<14x140xf32>
    %c0_11 = arith.constant 0 : index
    %c0_12 = arith.constant 0 : index
    %c0_13 = arith.constant 0 : index
    %10 = vector.load %arg4[%c0_11, %c0_12, %c0_13] : memref<3x192x140xbf16, #tpu.memory_space<vmem>>, vector<1x192x140xbf16>
    %11 = vector.shape_cast %10 : vector<1x192x140xbf16> to vector<192x140xbf16>
    %cst_14 = arith.constant dense<0.000000e+00> : vector<14x140xf32>
    %12 = tpu.matmul %3, %11, %cst_14 {dimension_numbers = #tpu.dot_dimension_numbers<[1], [0], [0], [1], [0, 0, 1, 1], [], []>} : vector<14x192xbf16>, vector<192x140xbf16>, vector<14x140xf32> -> vector<14x140xf32>
    %c0_15 = arith.constant 0 : index
    %c0_16 = arith.constant 0 : index
    %c0_17 = arith.constant 0 : index
    %13 = vector.load %arg5[%c0_15, %c0_16, %c0_17] : memref<3x192x140xbf16, #tpu.memory_space<vmem>>, vector<1x192x140xbf16>
    %14 = vector.shape_cast %13 : vector<1x192x140xbf16> to vector<192x140xbf16>
    %cst_18 = arith.constant dense<0.000000e+00> : vector<14x140xf32>
    %15 = tpu.matmul %3, %14, %cst_18 {dimension_numbers = #tpu.dot_dimension_numbers<[1], [0], [0], [1], [0, 0, 1, 1], [], []>} : vector<14x192xbf16>, vector<192x140xbf16>, vector<14x140xf32> -> vector<14x140xf32>
    %16 = vector.extract_strided_slice %2 {offsets = [1, 0], sizes = [14, 192], strides = [1, 1]} : vector<16x192xbf16> to vector<14x192xbf16>
    %c1 = arith.constant 1 : index
    %c0_19 = arith.constant 0 : index
    %c0_20 = arith.constant 0 : index
    %17 = vector.load %arg2[%c1, %c0_19, %c0_20] : memref<3x192x140xbf16, #tpu.memory_space<vmem>>, vector<1x192x140xbf16>
    %18 = vector.shape_cast %17 : vector<1x192x140xbf16> to vector<192x140xbf16>
    %cst_21 = arith.constant dense<0.000000e+00> : vector<14x140xf32>
    %19 = tpu.matmul %16, %18, %cst_21 {dimension_numbers = #tpu.dot_dimension_numbers<[1], [0], [0], [1], [0, 0, 1, 1], [], []>} : vector<14x192xbf16>, vector<192x140xbf16>, vector<14x140xf32> -> vector<14x140xf32>
    %20 = arith.addf %6, %19 : vector<14x140xf32>
    %c1_22 = arith.constant 1 : index
    %c0_23 = arith.constant 0 : index
    %c0_24 = arith.constant 0 : index
    %21 = vector.load %arg3[%c1_22, %c0_23, %c0_24] : memref<3x192x140xbf16, #tpu.memory_space<vmem>>, vector<1x192x140xbf16>
    %22 = vector.shape_cast %21 : vector<1x192x140xbf16> to vector<192x140xbf16>
    %cst_25 = arith.constant dense<0.000000e+00> : vector<14x140xf32>
    %23 = tpu.matmul %16, %22, %cst_25 {dimension_numbers = #tpu.dot_dimension_numbers<[1], [0], [0], [1], [0, 0, 1, 1], [], []>} : vector<14x192xbf16>, vector<192x140xbf16>, vector<14x140xf32> -> vector<14x140xf32>
    %24 = arith.addf %9, %23 : vector<14x140xf32>
    %c1_26 = arith.constant 1 : index
    %c0_27 = arith.constant 0 : index
    %c0_28 = arith.constant 0 : index
    %25 = vector.load %arg4[%c1_26, %c0_27, %c0_28] : memref<3x192x140xbf16, #tpu.memory_space<vmem>>, vector<1x192x140xbf16>
    %26 = vector.shape_cast %25 : vector<1x192x140xbf16> to vector<192x140xbf16>
    %cst_29 = arith.constant dense<0.000000e+00> : vector<14x140xf32>
    %27 = tpu.matmul %16, %26, %cst_29 {dimension_numbers = #tpu.dot_dimension_numbers<[1], [0], [0], [1], [0, 0, 1, 1], [], []>} : vector<14x192xbf16>, vector<192x140xbf16>, vector<14x140xf32> -> vector<14x140xf32>
    %28 = arith.addf %12, %27 : vector<14x140xf32>
    %c1_30 = arith.constant 1 : index
    %c0_31 = arith.constant 0 : index
    %c0_32 = arith.constant 0 : index
    %29 = vector.load %arg5[%c1_30, %c0_31, %c0_32] : memref<3x192x140xbf16, #tpu.memory_space<vmem>>, vector<1x192x140xbf16>
    %30 = vector.shape_cast %29 : vector<1x192x140xbf16> to vector<192x140xbf16>
    %cst_33 = arith.constant dense<0.000000e+00> : vector<14x140xf32>
    %31 = tpu.matmul %16, %30, %cst_33 {dimension_numbers = #tpu.dot_dimension_numbers<[1], [0], [0], [1], [0, 0, 1, 1], [], []>} : vector<14x192xbf16>, vector<192x140xbf16>, vector<14x140xf32> -> vector<14x140xf32>
    %32 = arith.addf %15, %31 : vector<14x140xf32>
    %33 = vector.extract_strided_slice %2 {offsets = [2, 0], sizes = [14, 192], strides = [1, 1]} : vector<16x192xbf16> to vector<14x192xbf16>
    %c2 = arith.constant 2 : index
    %c0_34 = arith.constant 0 : index
    %c0_35 = arith.constant 0 : index
    %34 = vector.load %arg2[%c2, %c0_34, %c0_35] : memref<3x192x140xbf16, #tpu.memory_space<vmem>>, vector<1x192x140xbf16>
    %35 = vector.shape_cast %34 : vector<1x192x140xbf16> to vector<192x140xbf16>
    %cst_36 = arith.constant dense<0.000000e+00> : vector<14x140xf32>
    %36 = tpu.matmul %33, %35, %cst_36 {dimension_numbers = #tpu.dot_dimension_numbers<[1], [0], [0], [1], [0, 0, 1, 1], [], []>} : vector<14x192xbf16>, vector<192x140xbf16>, vector<14x140xf32> -> vector<14x140xf32>
    %37 = arith.addf %20, %36 : vector<14x140xf32>
    %c2_37 = arith.constant 2 : index
    %c0_38 = arith.constant 0 : index
    %c0_39 = arith.constant 0 : index
    %38 = vector.load %arg3[%c2_37, %c0_38, %c0_39] : memref<3x192x140xbf16, #tpu.memory_space<vmem>>, vector<1x192x140xbf16>
    %39 = vector.shape_cast %38 : vector<1x192x140xbf16> to vector<192x140xbf16>
    %cst_40 = arith.constant dense<0.000000e+00> : vector<14x140xf32>
    %40 = tpu.matmul %33, %39, %cst_40 {dimension_numbers = #tpu.dot_dimension_numbers<[1], [0], [0], [1], [0, 0, 1, 1], [], []>} : vector<14x192xbf16>, vector<192x140xbf16>, vector<14x140xf32> -> vector<14x140xf32>
    %41 = arith.addf %24, %40 : vector<14x140xf32>
    %c2_41 = arith.constant 2 : index
    %c0_42 = arith.constant 0 : index
    %c0_43 = arith.constant 0 : index
    %42 = vector.load %arg4[%c2_41, %c0_42, %c0_43] : memref<3x192x140xbf16, #tpu.memory_space<vmem>>, vector<1x192x140xbf16>
    %43 = vector.shape_cast %42 : vector<1x192x140xbf16> to vector<192x140xbf16>
    %cst_44 = arith.constant dense<0.000000e+00> : vector<14x140xf32>
    %44 = tpu.matmul %33, %43, %cst_44 {dimension_numbers = #tpu.dot_dimension_numbers<[1], [0], [0], [1], [0, 0, 1, 1], [], []>} : vector<14x192xbf16>, vector<192x140xbf16>, vector<14x140xf32> -> vector<14x140xf32>
    %45 = arith.addf %28, %44 : vector<14x140xf32>
    %c2_45 = arith.constant 2 : index
    %c0_46 = arith.constant 0 : index
    %c0_47 = arith.constant 0 : index
    %46 = vector.load %arg5[%c2_45, %c0_46, %c0_47] : memref<3x192x140xbf16, #tpu.memory_space<vmem>>, vector<1x192x140xbf16>
    %47 = vector.shape_cast %46 : vector<1x192x140xbf16> to vector<192x140xbf16>
    %cst_48 = arith.constant dense<0.000000e+00> : vector<14x140xf32>
    %48 = tpu.matmul %33, %47, %cst_48 {dimension_numbers = #tpu.dot_dimension_numbers<[1], [0], [0], [1], [0, 0, 1, 1], [], []>} : vector<14x192xbf16>, vector<192x140xbf16>, vector<14x140xf32> -> vector<14x140xf32>
    %49 = arith.addf %32, %48 : vector<14x140xf32>
    %50 = arith.maximumf %37, %41 : vector<14x140xf32>
    %51 = arith.maximumf %45, %49 : vector<14x140xf32>
    %52 = arith.maximumf %50, %51 : vector<14x140xf32>
    %53 = vector.broadcast %0 : vector<1x140xf32> to vector<14x140xf32>
    %54 = arith.addf %52, %53 : vector<14x140xf32>
    %cst_49 = arith.constant 0.000000e+00 : f32
    %55 = vector.broadcast %cst_49 : f32 to vector<14x140xf32>
    %56 = arith.maximumf %54, %55 : vector<14x140xf32>
    %57 = arith.truncf %56 : vector<14x140xf32> to vector<14x140xbf16>
    %c0_50 = arith.constant 0 : index
    %c0_51 = arith.constant 0 : index
    %c0_52 = arith.constant 0 : index
    %58 = vector.load %arg7[%c0_50, %c0_51, %c0_52] : memref<1x14x140xbf16, #tpu.memory_space<vmem>>, vector<1x14x140xbf16>
    %59 = vector.shape_cast %58 : vector<1x14x140xbf16> to vector<14x140xbf16>
    %60 = vector.shape_cast %57 : vector<14x140xbf16> to vector<1x14x140xbf16>
    tpu.vector_store %arg7[%c0_50, %c0_51, %c0_52], %60 {strides = array<i32>} : memref<1x14x140xbf16, #tpu.memory_space<vmem>>, vector<1x14x140xbf16>,
    return
  }
  func.func @transform_0(%arg0: i32) -> (i32, i32, i32) {
    %c0_i32 = arith.constant 0 : i32
    %c0_i32_0 = arith.constant 0 : i32
    %c0_i32_1 = arith.constant 0 : i32
    return %arg0, %c0_i32, %c0_i32_0 : i32, i32, i32
  }
  func.func @transform_1(%arg0: i32) -> (i32, i32, i32) {
    %c0_i32 = arith.constant 0 : i32
    %c0_i32_0 = arith.constant 0 : i32
    %c0_i32_1 = arith.constant 0 : i32
    %c0_i32_2 = arith.constant 0 : i32
    return %c0_i32, %c0_i32_0, %c0_i32_1 : i32, i32, i32
  }
  func.func @transform_2(%arg0: i32) -> (i32, i32, i32) {
    %c0_i32 = arith.constant 0 : i32
    %c0_i32_0 = arith.constant 0 : i32
    %c0_i32_1 = arith.constant 0 : i32
    %c0_i32_2 = arith.constant 0 : i32
    return %c0_i32, %c0_i32_0, %c0_i32_1 : i32, i32, i32
  }
  func.func @transform_3(%arg0: i32) -> (i32, i32, i32) {
    %c0_i32 = arith.constant 0 : i32
    %c0_i32_0 = arith.constant 0 : i32
    %c0_i32_1 = arith.constant 0 : i32
    %c0_i32_2 = arith.constant 0 : i32
    return %c0_i32, %c0_i32_0, %c0_i32_1 : i32, i32, i32
  }
  func.func @transform_4(%arg0: i32) -> (i32, i32, i32) {
    %c0_i32 = arith.constant 0 : i32
    %c0_i32_0 = arith.constant 0 : i32
    %c0_i32_1 = arith.constant 0 : i32
    %c0_i32_2 = arith.constant 0 : i32
    return %c0_i32, %c0_i32_0, %c0_i32_1 : i32, i32, i32
  }
  func.func @transform_5(%arg0: i32) -> (i32, i32) {
    %c0_i32 = arith.constant 0 : i32
    %c0_i32_0 = arith.constant 0 : i32
    %c0_i32_1 = arith.constant 0 : i32
    return %c0_i32, %c0_i32_0 : i32, i32
  }
  func.func @transform_6(%arg0: i32) -> (i32, i32, i32) {
    %c0_i32 = arith.constant 0 : i32
    %c0_i32_0 = arith.constant 0 : i32
    %c0_i32_1 = arith.constant 0 : i32
    return %arg0, %c0_i32, %c0_i32_0 : i32, i32, i32
  }
}

module attributes {stable_mosaic.version = 11 : i64} {
  func.func @_conv_pool_relu_kernel(%arg0: i32, %arg1: memref<1x7x280xbf16, #tpu.memory_space<vmem>>, %arg2: memref<3x280x100xbf16, #tpu.memory_space<vmem>>, %arg3: memref<3x280x100xbf16, #tpu.memory_space<vmem>>, %arg4: memref<3x280x100xbf16, #tpu.memory_space<vmem>>, %arg5: memref<3x280x100xbf16, #tpu.memory_space<vmem>>, %arg6: memref<1x100xf32, #tpu.memory_space<vmem>>, %arg7: memref<1x5x100xbf16, #tpu.memory_space<vmem>>) attributes {dimension_semantics = [#tpu.dimension_semantics<parallel>], iteration_bounds = array<i64: 2>, scalar_prefetch = 0 : i64, scratch_operands = 0 : i64, tpu.core_type = #tpu.core_type<tc>, window_params = [{transform_indices = @transform_0, window_bounds = array<i64: 1, 7, 280>}, {pipeline_mode = #tpu.pipeline_mode<synchronous>, transform_indices = @transform_1, window_bounds = array<i64: 3, 280, 100>}, {pipeline_mode = #tpu.pipeline_mode<synchronous>, transform_indices = @transform_2, window_bounds = array<i64: 3, 280, 100>}, {pipeline_mode = #tpu.pipeline_mode<synchronous>, transform_indices = @transform_3, window_bounds = array<i64: 3, 280, 100>}, {pipeline_mode = #tpu.pipeline_mode<synchronous>, transform_indices = @transform_4, window_bounds = array<i64: 3, 280, 100>}, {pipeline_mode = #tpu.pipeline_mode<synchronous>, transform_indices = @transform_5, window_bounds = array<i64: 1, 100>}, {transform_indices = @transform_6, window_bounds = array<i64: 1, 5, 100>}]} {
    %c0 = arith.constant 0 : index
    %c0_0 = arith.constant 0 : index
    %0 = vector.load %arg6[%c0, %c0_0] : memref<1x100xf32, #tpu.memory_space<vmem>>, vector<1x100xf32>
    %c0_1 = arith.constant 0 : index
    %c0_2 = arith.constant 0 : index
    %c0_3 = arith.constant 0 : index
    %1 = vector.load %arg1[%c0_1, %c0_2, %c0_3] : memref<1x7x280xbf16, #tpu.memory_space<vmem>>, vector<1x7x280xbf16>
    %2 = vector.shape_cast %1 : vector<1x7x280xbf16> to vector<7x280xbf16>
    %3 = vector.extract_strided_slice %2 {offsets = [0, 0], sizes = [5, 280], strides = [1, 1]} : vector<7x280xbf16> to vector<5x280xbf16>
    %c0_4 = arith.constant 0 : index
    %c0_5 = arith.constant 0 : index
    %c0_6 = arith.constant 0 : index
    %4 = vector.load %arg2[%c0_4, %c0_5, %c0_6] : memref<3x280x100xbf16, #tpu.memory_space<vmem>>, vector<1x280x100xbf16>
    %5 = vector.shape_cast %4 : vector<1x280x100xbf16> to vector<280x100xbf16>
    %cst = arith.constant dense<0.000000e+00> : vector<5x100xf32>
    %6 = tpu.matmul %3, %5, %cst {dimension_numbers = #tpu.dot_dimension_numbers<[1], [0], [0], [1], [0, 0, 1, 1], [], []>} : vector<5x280xbf16>, vector<280x100xbf16>, vector<5x100xf32> -> vector<5x100xf32>
    %c0_7 = arith.constant 0 : index
    %c0_8 = arith.constant 0 : index
    %c0_9 = arith.constant 0 : index
    %7 = vector.load %arg3[%c0_7, %c0_8, %c0_9] : memref<3x280x100xbf16, #tpu.memory_space<vmem>>, vector<1x280x100xbf16>
    %8 = vector.shape_cast %7 : vector<1x280x100xbf16> to vector<280x100xbf16>
    %cst_10 = arith.constant dense<0.000000e+00> : vector<5x100xf32>
    %9 = tpu.matmul %3, %8, %cst_10 {dimension_numbers = #tpu.dot_dimension_numbers<[1], [0], [0], [1], [0, 0, 1, 1], [], []>} : vector<5x280xbf16>, vector<280x100xbf16>, vector<5x100xf32> -> vector<5x100xf32>
    %c0_11 = arith.constant 0 : index
    %c0_12 = arith.constant 0 : index
    %c0_13 = arith.constant 0 : index
    %10 = vector.load %arg4[%c0_11, %c0_12, %c0_13] : memref<3x280x100xbf16, #tpu.memory_space<vmem>>, vector<1x280x100xbf16>
    %11 = vector.shape_cast %10 : vector<1x280x100xbf16> to vector<280x100xbf16>
    %cst_14 = arith.constant dense<0.000000e+00> : vector<5x100xf32>
    %12 = tpu.matmul %3, %11, %cst_14 {dimension_numbers = #tpu.dot_dimension_numbers<[1], [0], [0], [1], [0, 0, 1, 1], [], []>} : vector<5x280xbf16>, vector<280x100xbf16>, vector<5x100xf32> -> vector<5x100xf32>
    %c0_15 = arith.constant 0 : index
    %c0_16 = arith.constant 0 : index
    %c0_17 = arith.constant 0 : index
    %13 = vector.load %arg5[%c0_15, %c0_16, %c0_17] : memref<3x280x100xbf16, #tpu.memory_space<vmem>>, vector<1x280x100xbf16>
    %14 = vector.shape_cast %13 : vector<1x280x100xbf16> to vector<280x100xbf16>
    %cst_18 = arith.constant dense<0.000000e+00> : vector<5x100xf32>
    %15 = tpu.matmul %3, %14, %cst_18 {dimension_numbers = #tpu.dot_dimension_numbers<[1], [0], [0], [1], [0, 0, 1, 1], [], []>} : vector<5x280xbf16>, vector<280x100xbf16>, vector<5x100xf32> -> vector<5x100xf32>
    %16 = vector.extract_strided_slice %2 {offsets = [1, 0], sizes = [5, 280], strides = [1, 1]} : vector<7x280xbf16> to vector<5x280xbf16>
    %c1 = arith.constant 1 : index
    %c0_19 = arith.constant 0 : index
    %c0_20 = arith.constant 0 : index
    %17 = vector.load %arg2[%c1, %c0_19, %c0_20] : memref<3x280x100xbf16, #tpu.memory_space<vmem>>, vector<1x280x100xbf16>
    %18 = vector.shape_cast %17 : vector<1x280x100xbf16> to vector<280x100xbf16>
    %cst_21 = arith.constant dense<0.000000e+00> : vector<5x100xf32>
    %19 = tpu.matmul %16, %18, %cst_21 {dimension_numbers = #tpu.dot_dimension_numbers<[1], [0], [0], [1], [0, 0, 1, 1], [], []>} : vector<5x280xbf16>, vector<280x100xbf16>, vector<5x100xf32> -> vector<5x100xf32>
    %20 = arith.addf %6, %19 : vector<5x100xf32>
    %c1_22 = arith.constant 1 : index
    %c0_23 = arith.constant 0 : index
    %c0_24 = arith.constant 0 : index
    %21 = vector.load %arg3[%c1_22, %c0_23, %c0_24] : memref<3x280x100xbf16, #tpu.memory_space<vmem>>, vector<1x280x100xbf16>
    %22 = vector.shape_cast %21 : vector<1x280x100xbf16> to vector<280x100xbf16>
    %cst_25 = arith.constant dense<0.000000e+00> : vector<5x100xf32>
    %23 = tpu.matmul %16, %22, %cst_25 {dimension_numbers = #tpu.dot_dimension_numbers<[1], [0], [0], [1], [0, 0, 1, 1], [], []>} : vector<5x280xbf16>, vector<280x100xbf16>, vector<5x100xf32> -> vector<5x100xf32>
    %24 = arith.addf %9, %23 : vector<5x100xf32>
    %c1_26 = arith.constant 1 : index
    %c0_27 = arith.constant 0 : index
    %c0_28 = arith.constant 0 : index
    %25 = vector.load %arg4[%c1_26, %c0_27, %c0_28] : memref<3x280x100xbf16, #tpu.memory_space<vmem>>, vector<1x280x100xbf16>
    %26 = vector.shape_cast %25 : vector<1x280x100xbf16> to vector<280x100xbf16>
    %cst_29 = arith.constant dense<0.000000e+00> : vector<5x100xf32>
    %27 = tpu.matmul %16, %26, %cst_29 {dimension_numbers = #tpu.dot_dimension_numbers<[1], [0], [0], [1], [0, 0, 1, 1], [], []>} : vector<5x280xbf16>, vector<280x100xbf16>, vector<5x100xf32> -> vector<5x100xf32>
    %28 = arith.addf %12, %27 : vector<5x100xf32>
    %c1_30 = arith.constant 1 : index
    %c0_31 = arith.constant 0 : index
    %c0_32 = arith.constant 0 : index
    %29 = vector.load %arg5[%c1_30, %c0_31, %c0_32] : memref<3x280x100xbf16, #tpu.memory_space<vmem>>, vector<1x280x100xbf16>
    %30 = vector.shape_cast %29 : vector<1x280x100xbf16> to vector<280x100xbf16>
    %cst_33 = arith.constant dense<0.000000e+00> : vector<5x100xf32>
    %31 = tpu.matmul %16, %30, %cst_33 {dimension_numbers = #tpu.dot_dimension_numbers<[1], [0], [0], [1], [0, 0, 1, 1], [], []>} : vector<5x280xbf16>, vector<280x100xbf16>, vector<5x100xf32> -> vector<5x100xf32>
    %32 = arith.addf %15, %31 : vector<5x100xf32>
    %33 = vector.extract_strided_slice %2 {offsets = [2, 0], sizes = [5, 280], strides = [1, 1]} : vector<7x280xbf16> to vector<5x280xbf16>
    %c2 = arith.constant 2 : index
    %c0_34 = arith.constant 0 : index
    %c0_35 = arith.constant 0 : index
    %34 = vector.load %arg2[%c2, %c0_34, %c0_35] : memref<3x280x100xbf16, #tpu.memory_space<vmem>>, vector<1x280x100xbf16>
    %35 = vector.shape_cast %34 : vector<1x280x100xbf16> to vector<280x100xbf16>
    %cst_36 = arith.constant dense<0.000000e+00> : vector<5x100xf32>
    %36 = tpu.matmul %33, %35, %cst_36 {dimension_numbers = #tpu.dot_dimension_numbers<[1], [0], [0], [1], [0, 0, 1, 1], [], []>} : vector<5x280xbf16>, vector<280x100xbf16>, vector<5x100xf32> -> vector<5x100xf32>
    %37 = arith.addf %20, %36 : vector<5x100xf32>
    %c2_37 = arith.constant 2 : index
    %c0_38 = arith.constant 0 : index
    %c0_39 = arith.constant 0 : index
    %38 = vector.load %arg3[%c2_37, %c0_38, %c0_39] : memref<3x280x100xbf16, #tpu.memory_space<vmem>>, vector<1x280x100xbf16>
    %39 = vector.shape_cast %38 : vector<1x280x100xbf16> to vector<280x100xbf16>
    %cst_40 = arith.constant dense<0.000000e+00> : vector<5x100xf32>
    %40 = tpu.matmul %33, %39, %cst_40 {dimension_numbers = #tpu.dot_dimension_numbers<[1], [0], [0], [1], [0, 0, 1, 1], [], []>} : vector<5x280xbf16>, vector<280x100xbf16>, vector<5x100xf32> -> vector<5x100xf32>
    %41 = arith.addf %24, %40 : vector<5x100xf32>
    %c2_41 = arith.constant 2 : index
    %c0_42 = arith.constant 0 : index
    %c0_43 = arith.constant 0 : index
    %42 = vector.load %arg4[%c2_41, %c0_42, %c0_43] : memref<3x280x100xbf16, #tpu.memory_space<vmem>>, vector<1x280x100xbf16>
    %43 = vector.shape_cast %42 : vector<1x280x100xbf16> to vector<280x100xbf16>
    %cst_44 = arith.constant dense<0.000000e+00> : vector<5x100xf32>
    %44 = tpu.matmul %33, %43, %cst_44 {dimension_numbers = #tpu.dot_dimension_numbers<[1], [0], [0], [1], [0, 0, 1, 1], [], []>} : vector<5x280xbf16>, vector<280x100xbf16>, vector<5x100xf32> -> vector<5x100xf32>
    %45 = arith.addf %28, %44 : vector<5x100xf32>
    %c2_45 = arith.constant 2 : index
    %c0_46 = arith.constant 0 : index
    %c0_47 = arith.constant 0 : index
    %46 = vector.load %arg5[%c2_45, %c0_46, %c0_47] : memref<3x280x100xbf16, #tpu.memory_space<vmem>>, vector<1x280x100xbf16>
    %47 = vector.shape_cast %46 : vector<1x280x100xbf16> to vector<280x100xbf16>
    %cst_48 = arith.constant dense<0.000000e+00> : vector<5x100xf32>
    %48 = tpu.matmul %33, %47, %cst_48 {dimension_numbers = #tpu.dot_dimension_numbers<[1], [0], [0], [1], [0, 0, 1, 1], [], []>} : vector<5x280xbf16>, vector<280x100xbf16>, vector<5x100xf32> -> vector<5x100xf32>
    %49 = arith.addf %32, %48 : vector<5x100xf32>
    %50 = arith.maximumf %37, %41 : vector<5x100xf32>
    %51 = arith.maximumf %45, %49 : vector<5x100xf32>
    %52 = arith.maximumf %50, %51 : vector<5x100xf32>
    %53 = vector.broadcast %0 : vector<1x100xf32> to vector<5x100xf32>
    %54 = arith.addf %52, %53 : vector<5x100xf32>
    %cst_49 = arith.constant 0.000000e+00 : f32
    %55 = vector.broadcast %cst_49 : f32 to vector<5x100xf32>
    %56 = arith.maximumf %54, %55 : vector<5x100xf32>
    %57 = arith.truncf %56 : vector<5x100xf32> to vector<5x100xbf16>
    %c0_50 = arith.constant 0 : index
    %c0_51 = arith.constant 0 : index
    %c0_52 = arith.constant 0 : index
    %58 = vector.load %arg7[%c0_50, %c0_51, %c0_52] : memref<1x5x100xbf16, #tpu.memory_space<vmem>>, vector<1x5x100xbf16>
    %59 = vector.shape_cast %58 : vector<1x5x100xbf16> to vector<5x100xbf16>
    %60 = vector.shape_cast %57 : vector<5x100xbf16> to vector<1x5x100xbf16>
    tpu.vector_store %arg7[%c0_50, %c0_51, %c0_52], %60 {strides = array<i32>} : memref<1x5x100xbf16, #tpu.memory_space<vmem>>, vector<1x5x100xbf16>,
    return
  }
  func.func @transform_0(%arg0: i32) -> (i32, i32, i32) {
    %c0_i32 = arith.constant 0 : i32
    %c0_i32_0 = arith.constant 0 : i32
    %c0_i32_1 = arith.constant 0 : i32
    return %arg0, %c0_i32, %c0_i32_0 : i32, i32, i32
  }
  func.func @transform_1(%arg0: i32) -> (i32, i32, i32) {
    %c0_i32 = arith.constant 0 : i32
    %c0_i32_0 = arith.constant 0 : i32
    %c0_i32_1 = arith.constant 0 : i32
    %c0_i32_2 = arith.constant 0 : i32
    return %c0_i32, %c0_i32_0, %c0_i32_1 : i32, i32, i32
  }
  func.func @transform_2(%arg0: i32) -> (i32, i32, i32) {
    %c0_i32 = arith.constant 0 : i32
    %c0_i32_0 = arith.constant 0 : i32
    %c0_i32_1 = arith.constant 0 : i32
    %c0_i32_2 = arith.constant 0 : i32
    return %c0_i32, %c0_i32_0, %c0_i32_1 : i32, i32, i32
  }
  func.func @transform_3(%arg0: i32) -> (i32, i32, i32) {
    %c0_i32 = arith.constant 0 : i32
    %c0_i32_0 = arith.constant 0 : i32
    %c0_i32_1 = arith.constant 0 : i32
    %c0_i32_2 = arith.constant 0 : i32
    return %c0_i32, %c0_i32_0, %c0_i32_1 : i32, i32, i32
  }
  func.func @transform_4(%arg0: i32) -> (i32, i32, i32) {
    %c0_i32 = arith.constant 0 : i32
    %c0_i32_0 = arith.constant 0 : i32
    %c0_i32_1 = arith.constant 0 : i32
    %c0_i32_2 = arith.constant 0 : i32
    return %c0_i32, %c0_i32_0, %c0_i32_1 : i32, i32, i32
  }
  func.func @transform_5(%arg0: i32) -> (i32, i32) {
    %c0_i32 = arith.constant 0 : i32
    %c0_i32_0 = arith.constant 0 : i32
    %c0_i32_1 = arith.constant 0 : i32
    return %c0_i32, %c0_i32_0 : i32, i32
  }
  func.func @transform_6(%arg0: i32) -> (i32, i32, i32) {
    %c0_i32 = arith.constant 0 : i32
    %c0_i32_0 = arith.constant 0 : i32
    %c0_i32_1 = arith.constant 0 : i32
    return %arg0, %c0_i32, %c0_i32_0 : i32, i32, i32
  }
}

module attributes {stable_mosaic.version = 11 : i64} {
  func.func @_mlp_head_kernel(%arg0: i32, %arg1: memref<2x500xbf16, #tpu.memory_space<vmem>>, %arg2: memref<500x50xbf16, #tpu.memory_space<vmem>>, %arg3: memref<1x50xf32, #tpu.memory_space<vmem>>, %arg4: memref<50x10xbf16, #tpu.memory_space<vmem>>, %arg5: memref<1x10xf32, #tpu.memory_space<vmem>>, %arg6: memref<2x10xf32, #tpu.memory_space<vmem>>) attributes {dimension_semantics = [#tpu.dimension_semantics<parallel>], iteration_bounds = array<i64: 1>, scalar_prefetch = 0 : i64, scratch_operands = 0 : i64, tpu.core_type = #tpu.core_type<tc>, window_params = [{transform_indices = @transform_0, window_bounds = array<i64: 2, 500>}, {pipeline_mode = #tpu.pipeline_mode<synchronous>, transform_indices = @transform_1, window_bounds = array<i64: 500, 50>}, {pipeline_mode = #tpu.pipeline_mode<synchronous>, transform_indices = @transform_2, window_bounds = array<i64: 1, 50>}, {pipeline_mode = #tpu.pipeline_mode<synchronous>, transform_indices = @transform_3, window_bounds = array<i64: 50, 10>}, {pipeline_mode = #tpu.pipeline_mode<synchronous>, transform_indices = @transform_4, window_bounds = array<i64: 1, 10>}, {transform_indices = @transform_5, window_bounds = array<i64: 2, 10>}]} {
    %c0 = arith.constant 0 : index
    %c0_0 = arith.constant 0 : index
    %0 = vector.load %arg1[%c0, %c0_0] : memref<2x500xbf16, #tpu.memory_space<vmem>>, vector<2x500xbf16>
    %c0_1 = arith.constant 0 : index
    %c0_2 = arith.constant 0 : index
    %1 = vector.load %arg2[%c0_1, %c0_2] : memref<500x50xbf16, #tpu.memory_space<vmem>>, vector<500x50xbf16>
    %cst = arith.constant dense<0.000000e+00> : vector<2x50xf32>
    %2 = tpu.matmul %0, %1, %cst {dimension_numbers = #tpu.dot_dimension_numbers<[1], [0], [0], [1], [0, 0, 1, 1], [], []>} : vector<2x500xbf16>, vector<500x50xbf16>, vector<2x50xf32> -> vector<2x50xf32>
    %c0_3 = arith.constant 0 : index
    %c0_4 = arith.constant 0 : index
    %3 = vector.load %arg3[%c0_3, %c0_4] : memref<1x50xf32, #tpu.memory_space<vmem>>, vector<1x50xf32>
    %4 = vector.broadcast %3 : vector<1x50xf32> to vector<2x50xf32>
    %5 = arith.addf %2, %4 : vector<2x50xf32>
    %cst_5 = arith.constant 0.000000e+00 : f32
    %6 = vector.broadcast %cst_5 : f32 to vector<2x50xf32>
    %7 = arith.maximumf %5, %6 : vector<2x50xf32>
    %8 = arith.truncf %7 : vector<2x50xf32> to vector<2x50xbf16>
    %c0_6 = arith.constant 0 : index
    %c0_7 = arith.constant 0 : index
    %9 = vector.load %arg4[%c0_6, %c0_7] : memref<50x10xbf16, #tpu.memory_space<vmem>>, vector<50x10xbf16>
    %cst_8 = arith.constant dense<0.000000e+00> : vector<2x10xf32>
    %10 = tpu.matmul %8, %9, %cst_8 {dimension_numbers = #tpu.dot_dimension_numbers<[1], [0], [0], [1], [0, 0, 1, 1], [], []>} : vector<2x50xbf16>, vector<50x10xbf16>, vector<2x10xf32> -> vector<2x10xf32>
    %c0_9 = arith.constant 0 : index
    %c0_10 = arith.constant 0 : index
    %11 = vector.load %arg5[%c0_9, %c0_10] : memref<1x10xf32, #tpu.memory_space<vmem>>, vector<1x10xf32>
    %12 = vector.broadcast %11 : vector<1x10xf32> to vector<2x10xf32>
    %13 = arith.addf %10, %12 : vector<2x10xf32>
    %cst_11 = arith.constant dense<0xFF800000> : vector<2xf32>
    %14 = vector.multi_reduction <maximumf>, %13, %cst_11 [1] : vector<2x10xf32> to vector<2xf32>
    %15 = vector.shape_cast %14 : vector<2xf32> to vector<2x1xf32>
    %16 = vector.broadcast %15 : vector<2x1xf32> to vector<2x10xf32>
    %17 = arith.subf %13, %16 : vector<2x10xf32>
    %18 = math.exp %17 : vector<2x10xf32>
    %cst_12 = arith.constant dense<0.000000e+00> : vector<2xf32>
    %19 = vector.multi_reduction <add>, %18, %cst_12 [1] : vector<2x10xf32> to vector<2xf32>
    %20 = vector.shape_cast %19 : vector<2xf32> to vector<2x1xf32>
    %21 = math.log %20 : vector<2x1xf32>
    %22 = vector.broadcast %21 : vector<2x1xf32> to vector<2x10xf32>
    %23 = arith.subf %17, %22 : vector<2x10xf32>
    %c0_13 = arith.constant 0 : index
    %c0_14 = arith.constant 0 : index
    %24 = vector.load %arg6[%c0_13, %c0_14] : memref<2x10xf32, #tpu.memory_space<vmem>>, vector<2x10xf32>
    tpu.vector_store %arg6[%c0_13, %c0_14], %23 {strides = array<i32>} : memref<2x10xf32, #tpu.memory_space<vmem>>, vector<2x10xf32>,
    return
  }
  func.func @transform_0(%arg0: i32) -> (i32, i32) {
    %c0_i32 = arith.constant 0 : i32
    %c0_i32_0 = arith.constant 0 : i32
    return %arg0, %c0_i32 : i32, i32
  }
  func.func @transform_1(%arg0: i32) -> (i32, i32) {
    %c0_i32 = arith.constant 0 : i32
    %c0_i32_0 = arith.constant 0 : i32
    %c0_i32_1 = arith.constant 0 : i32
    return %c0_i32, %c0_i32_0 : i32, i32
  }
  func.func @transform_2(%arg0: i32) -> (i32, i32) {
    %c0_i32 = arith.constant 0 : i32
    %c0_i32_0 = arith.constant 0 : i32
    %c0_i32_1 = arith.constant 0 : i32
    return %c0_i32, %c0_i32_0 : i32, i32
  }
  func.func @transform_3(%arg0: i32) -> (i32, i32) {
    %c0_i32 = arith.constant 0 : i32
    %c0_i32_0 = arith.constant 0 : i32
    %c0_i32_1 = arith.constant 0 : i32
    return %c0_i32, %c0_i32_0 : i32, i32
  }
  func.func @transform_4(%arg0: i32) -> (i32, i32) {
    %c0_i32 = arith.constant 0 : i32
    %c0_i32_0 = arith.constant 0 : i32
    %c0_i32_1 = arith.constant 0 : i32
    return %c0_i32, %c0_i32_0 : i32, i32
  }
  func.func @transform_5(%arg0: i32) -> (i32, i32) {
    %c0_i32 = arith.constant 0 : i32
    %c0_i32_0 = arith.constant 0 : i32
    return %arg0, %c0_i32 : i32, i32
  }
}

</mosaic_0001>

<bundles_post_ra>
// kernel: tile.13
= control target key start
LH: loop header
LB: loop body
LE: loop exit
PB: predicated region body
PF: predicated region fallthrough
CT: control target
= control target key end

     0   :  { %s28_s0 = inlined_call_operand.vmem [shape: f32[10], index: 0, kind: input, shape index: {}]   ;;  %s29_s1 = inlined_call_operand.vmem [shape: f32[14,10], index: 1, kind: output, shape index: {}]  }
   0x1   :  { %v4_v0 = vld [vmem:[%s28_s0] ss:$0 sm:$0xff] }
   0x2   :  { %5 = vst [vmem:[%s29_s1] sm:$0xff] %v4_v0 }
   0x3   :  { %8 = vst [vmem:[%s29_s1 + $0x8] sm:$0xff] %v4_v0 }

// kernel: tile.14
= control target key start
LH: loop header
LB: loop body
LE: loop exit
PB: predicated region body
PF: predicated region fallthrough
CT: control target
= control target key end

     0   :  { %vm9_vm0 = vcmask 64512   ;;  %s131_s12 = smov 120   ;;  %s132_s13 = smov 100   ;;  %vm3_vm1 = vcmask 80896   ;;  %vm13_vm2 = vcmask 15360   ;;  %vm16_vm3 = vcmask 1048512   ;;  %s205_s0 = inlined_call_operand.vmem [shape: f32[14,10], index: 0, kind: input, shape index: {}]   ;;  %s206_s1 = inlined_call_operand.vmem [shape: f32[1,140], index: 1, kind: output, shape index: {}]  }
   0x1   :  { %v103_v0 = vld [vmem:[%s205_s0 + $0xc] sm:$0x1]   ;;  %v106_v3 = vld [vmem:[%s205_s0 + $0xa] sm:$0x1]   ;;  %v108_v4 = vld [vmem:[%s205_s0 + $0x8] sm:$0x1]  }
   0x2   :  { %v104_v1 = vld [vmem:[%s205_s0 + $0xc] sm:$0x1]   ;;  %26 = vrot.lane.b32.xlu1 %v106_v3, %s132_s13  ;;  %s133_s16 = smov 80   ;;  %v105_v5 = vld [vmem:[%s205_s0 + $0xb] sm:$0x1]   ;;  %s134_s21 = smov 110  }
   0x3   :  { %v10_v2 = vsel %vm9_vm0, %v104_v1, %v103_v0  ;;  %38 = vrot.lane.b32.xlu2 %v108_v4, %s133_s16  ;;  %v107_v6 = vld [vmem:[%s205_s0 + $0x9] sm:$0x1]   ;;  %s135_s22 = smov 90   ;;  %v109_v7 = vld [vmem:[%s205_s0 + $0x7] sm:$0x1]   ;;  %s136_s25 = smov 70  }
   0x4   :  { %11 = vrot.lane.b32.xlu0 %v10_v2, %s131_s12  ;;  %v110_v8 = vld [vmem:[%s205_s0 + $0x6] sm:$0x1]   ;;  %v111_v9 = vld [vmem:[%s205_s0 + $0x5] sm:$0x1]   ;;  %s137_s30 = smov 60   ;;  %s138_s2 = smov 50  }
   0x5   :  { %v112_v10 = vld [vmem:[%s205_s0 + $0x4] sm:$0x1]   ;;  %s139_s5 = smov 40   ;;  %v113_v11 = vld [vmem:[%s205_s0 + $0x3] sm:$0x1]   ;;  %s140_s10 = smov 30  }
   0x6   :  { %v114_v12 = vld [vmem:[%s205_s0 + $0x2] sm:$0x1]   ;;  %s141_s11 = smov 20   ;;  %v115_v13 = vld [vmem:[%s205_s0 + $0x1] sm:$0x1]   ;;  %s142_s14 = smov 10  }
   0x7   :  { %v116_v14 = vld [vmem:[%s205_s0 + $0xd] sm:$0x1]   ;;  %s143_s17 = smov 2   ;;  %v2_v15 = vld [vmem:[%s205_s0] sm:$0x1]   ;;  %vm22_vm4 = vcmask 982896  }
   0x8   :  { %4 = vst.msk [vmem:[#allocation0] sm:$0x1] %vm3_vm1, %v2_v15   ;;  %vm28_vm5 = vcmask 900896   ;;  %vm34_vm6 = vcmask 818896   ;;  %vm40_vm7 = vcmask 736896   ;;  %vm46_vm8 = vcmask 654896  }
   0x9   :  { %vm52_vm9 = vcmask 572896   ;;  %vm58_vm10 = vcmask 490896   ;;  %vm64_vm11 = vcmask 408896   ;;  %vm70_vm12 = vcmask 326896  }
   0xa   :  { %32 = vrot.lane.b32.xlu1 %v107_v6, %s135_s22  ;;  %vm76_vm13 = vcmask 244896   ;;  %vm82_vm14 = vcmask 162896   ;;  %vm88_vm15 = vcmask 97296  }
   0xb   :  { %44 = vrot.lane.b32.xlu2 %v109_v7, %s136_s25 }
   0xc   :  { %20 = vrot.lane.b32.xlu0 %v105_v5, %s134_s21 }
  0x12   :  { %56 = vrot.lane.b32.xlu1 %v111_v9, %s138_s2 }
  0x13   :  { %62 = vrot.lane.b32.xlu2 %v112_v10, %s139_s5 }
  0x14   :  { %50 = vrot.lane.b32.xlu0 %v110_v8, %s137_s30 }
  0x1a   :  { %74 = vrot.lane.b32.xlu1 %v114_v12, %s141_s11 }
  0x1b   :  { %80 = vrot.lane.b32.xlu2 %v115_v13, %s142_s14 }
  0x1c   :  { %68 = vrot.lane.b32.xlu0 %v113_v11, %s140_s10 }
  0x24   :  { %86 = vrot.lane.b32.xlu0 %v116_v14, %s143_s17 }
  0x5d   :  { %v39_v16 = vpop.permute.xlu2 %38  }
  0x65   :  { %v45_v17 = vpop.permute.xlu2 %44  }
  0x6d   :  { %v63_v18 = vpop.permute.xlu2 %62  }
  0x74   :  { %v27_v20 = vpop.permute.xlu1 %26  }
  0x75   :  { %v81_v21 = vpop.permute.xlu2 %80  }
  0x76   :  { %v12_v19 = vpop.permute.xlu0 %11  }
  0x77   :  { %15 = vst.msk [vmem:[#allocation0 + $0x8] sm:$0x1] %vm13_vm2, %v12_v19  }
  0x78   :  { %17 = vst.msk [vmem:[#allocation0] sm:$0x1] %vm16_vm3, %v12_v19  }
  0x7c   :  { %v33_v23 = vpop.permute.xlu1 %32  }
  0x7e   :  { %v21_v22 = vpop.permute.xlu0 %20  }
  0x7f   :  { %23 = vst.msk [vmem:[#allocation0] sm:$0x1] %vm22_vm4, %v21_v22  }
  0x80   :  { %29 = vst.msk [vmem:[#allocation0] sm:$0x1] %vm28_vm5, %v27_v20  }
  0x81   :  { %35 = vst.msk [vmem:[#allocation0] sm:$0x1] %vm34_vm6, %v33_v23  }
  0x82   :  { %41 = vst.msk [vmem:[#allocation0] sm:$0x1] %vm40_vm7, %v39_v16  }
  0x83   :  { %47 = vst.msk [vmem:[#allocation0] sm:$0x1] %vm46_vm8, %v45_v17  }
  0x84   :  { %v57_v25 = vpop.permute.xlu1 %56  }
  0x86   :  { %v51_v24 = vpop.permute.xlu0 %50  }
  0x87   :  { %53 = vst.msk [vmem:[#allocation0] sm:$0x1] %vm52_vm9, %v51_v24  }
  0x88   :  { %59 = vst.msk [vmem:[#allocation0] sm:$0x1] %vm58_vm10, %v57_v25  }
  0x89   :  { %65 = vst.msk [vmem:[#allocation0] sm:$0x1] %vm64_vm11, %v63_v18  }
  0x8c   :  { %v75_v27 = vpop.permute.xlu1 %74  }
  0x8e   :  { %v69_v26 = vpop.permute.xlu0 %68  }
  0x8f   :  { %71 = vst.msk [vmem:[#allocation0] sm:$0x1] %vm70_vm12, %v69_v26  }
  0x90   :  { %77 = vst.msk [vmem:[#allocation0] sm:$0x1] %vm76_vm13, %v75_v27  }
  0x91   :  { %83 = vst.msk [vmem:[#allocation0] sm:$0x1] %vm82_vm14, %v81_v21  }
  0x96   :  { %v87_v28 = vpop.permute.xlu0 %86  }
  0x97   :  { %90 = vst.msk [vmem:[#allocation0 + $0x8] sm:$0x1] %vm88_vm15, %v87_v28  }
  0x98   :  { %v93_v29 = vld [vmem:[#allocation0] sm:$0x1] }
  0x99   :  { %96 = vst [vmem:[%s206_s1] sm:$0x1] %v93_v29 }
  0x9e   :  { %v98_v30 = vld [vmem:[#allocation0 + $0x8] sm:$0x1] }
  0x9f   :  { %117 = vst [vmem:[%s206_s1 + $0x1] sm:$0x1] %v98_v30 }

// kernel: cifar_net_forward.3
= control target key start
LH: loop header
LB: loop body
LE: loop exit
PB: predicated region body
PF: predicated region fallthrough
CT: control target
= control target key end

     0   :  { %s4536_s21 = smov 0   ;;  %s6454_s0 = inlined_call_operand.vmem [shape: bf16[2,16,192], index: 0, kind: input, shape index: {}]   ;;  %s6455_s1 = inlined_call_operand.vmem [shape: bf16[3,192,140], index: 1, kind: input, shape index: {}]   ;;  %s6456_s2 = inlined_call_operand.vmem [shape: bf16[3,192,140], index: 2, kind: input, shape index: {}]   ;;  %s6457_s3 = inlined_call_operand.vmem [shape: bf16[3,192,140], index: 3, kind: input, shape index: {}]   ;;  %s6458_s4 = inlined_call_operand.vmem [shape: bf16[3,192,140], index: 4, kind: input, shape index: {}]   ;;  %s6459_s5 = inlined_call_operand.vmem [shape: f32[1,140], index: 5, kind: input, shape index: {}]   ;;  %s6460_s6 = inlined_call_operand.vmem [shape: bf16[2,14,140], index: 6, kind: output, shape index: {}]  }
   0x1 LB: > { %s2806_s22 = sadd.s32 4294967295, %s4499_s21   ;;  %p2810_p0 = scmp.ge.s32.totalorder %s4499_s21, 1  ;;  %s4499_s21 = sphi %s4536_s21, %s16_s21  }
   0x2   : > { %p212_p1 = scmp.lt.s32.totalorder %s4499_s21, 3 }
   0x4   : > { %p213_p2 = pnand %p2810_p0, %p212_p1 }
   0x5   : > { %p242_p3 = scmp.lt.s32.totalorder (!%p213_p2), %s2806_s22, 1 }
   0x6   : > { %216 = sbr.rel (%p213_p2) target bundleno = 460 (0x1cc), region = 44 }
   0xb   : > { %v2905_v0 = vld [vmem:[%s6455_s1 + $0x130] sm:$0xf]  ;;  %v4308_v1 = vld [vmem:[%s6455_s1 + $0x134] sm:$0xf0]  ;;  %v4307_v5 = vld [vmem:[%s6455_s1 + $0x134] sm:$0xf] }
   0xc   : > { %v2937_v2 = vld [vmem:[%s6455_s1 + $0x170] sm:$0xf]  ;;  %v2906_v3 = vor.u32 %v4308_v1, %v2905_v0  ;;  %v4316_v4 = vld [vmem:[%s6455_s1 + $0x174] sm:$0xf0]  ;;  %v2907_v6 = vld [vmem:[%s6455_s1 + $0x138] sm:$0xf0] }
   0xd   : > { %v2938_v7 = vor.u32 %v4316_v4, %v2937_v2  ;;  %v2910_v8 = vor.u32 %v4307_v5, %v2907_v6  ;;  %v4315_v9 = vld [vmem:[%s6455_s1 + $0x174] sm:$0xf]  ;;  %v2939_v10 = vld [vmem:[%s6455_s1 + $0x178] sm:$0xf0]  ;;  %v2897_v11 = vld [vmem:[%s6455_s1 + $0x120] sm:$0xf] }
   0xe   : > { %524 = vmatpush.bf16.msra.mxu0 %v2906_v3  ;;  %v2942_v12 = vor.u32 %v4315_v9, %v2939_v10  ;;  %v4306_v13 = vld [vmem:[%s6455_s1 + $0x124] sm:$0xf0]  ;;  %v2929_v14 = vld [vmem:[%s6455_s1 + $0x160] sm:$0xf]  ;;  %v4305_v18 = vld [vmem:[%s6455_s1 + $0x124] sm:$0xf] }
   0xf   : > { %v4314_v15 = vld [vmem:[%s6455_s1 + $0x164] sm:$0xf0]  ;;  %542 = vmatpush.bf16.msra.mxu1 %v2938_v7  ;;  %552 = vmatpush.bf16.msra.mxu2 %v2910_v8  ;;  %v2898_v16 = vor.u32 %v4306_v13, %v2897_v11  ;;  %v2899_v19 = vld [vmem:[%s6455_s1 + $0x128] sm:$0xf0]  ;;  %v4313_v20 = vld [vmem:[%s6455_s1 + $0x164] sm:$0xf] }
  0x10   : > { %v2930_v17 = vor.u32 %v4314_v15, %v2929_v14  ;;  %570 = vmatpush.bf16.msra.mxu3 %v2942_v12  ;;  %v2902_v21 = vor.u32 %v4305_v18, %v2899_v19  ;;  %v2931_v22 = vld [vmem:[%s6455_s1 + $0x168] sm:$0xf0]  ;;  %v2889_v23 = vld [vmem:[%s6455_s1 + $0x110] sm:$0xf]  ;;  %v4304_v24 = vld [vmem:[%s6455_s1 + $0x114] sm:$0xf0] }
  0x11   : > { %v2934_v25 = vor.u32 %v4313_v20, %v2931_v22  ;;  %v2921_v26 = vld [vmem:[%s6455_s1 + $0x150] sm:$0xf]  ;;  %v4312_v27 = vld [vmem:[%s6455_s1 + $0x154] sm:$0xf0]  ;;  %v4303_v28 = vld [vmem:[%s6455_s1 + $0x114] sm:$0xf]  ;;  %v2890_v29 = vor.u32 %v4304_v24, %v2889_v23 }
  0x12   : > { %525 = vmatpush.bf16.msra.mxu0 %v2898_v16  ;;  %v2891_v30 = vld [vmem:[%s6455_s1 + $0x118] sm:$0xf0]  ;;  %v4311_v31 = vld [vmem:[%s6455_s1 + $0x154] sm:$0xf]  ;;  %v2922_v33 = vor.u32 %v4312_v27, %v2921_v26  ;;  %v2881_v35 = vld [vmem:[%s6455_s1 + $0x100] sm:$0xf] }
  0x13   : > { %v2923_v32 = vld [vmem:[%s6455_s1 + $0x158] sm:$0xf0]  ;;  %543 = vmatpush.bf16.msra.mxu1 %v2930_v17  ;;  %553 = vmatpush.bf16.msra.mxu2 %v2902_v21  ;;  %v2894_v34 = vor.u32 %v4303_v28, %v2891_v30  ;;  %v4302_v36 = vld [vmem:[%s6455_s1 + $0x104] sm:$0xf0]  ;;  %v2913_v37 = vld [vmem:[%s6455_s1 + $0x140] sm:$0xf] }
  0x14   : > { %571 = vmatpush.bf16.msra.mxu3 %v2934_v25  ;;  %v2926_v38 = vor.u32 %v4311_v31, %v2923_v32  ;;  %v4310_v39 = vld [vmem:[%s6455_s1 + $0x144] sm:$0xf0]  ;;  %v4301_v40 = vld [vmem:[%s6455_s1 + $0x104] sm:$0xf]  ;;  %v2883_v41 = vld [vmem:[%s6455_s1 + $0x108] sm:$0xf0]  ;;  %v2882_v45 = vor.u32 %v4302_v36, %v2881_v35 }
  0x15   : > { %v4309_v42 = vld [vmem:[%s6455_s1 + $0x144] sm:$0xf]  ;;  %v2915_v43 = vld [vmem:[%s6455_s1 + $0x148] sm:$0xf0]  ;;  %v3003_v44 = vld [vmem:[%s6455_s1 + $0x70] sm:$0xf]  ;;  %v2914_v49 = vor.u32 %v4310_v39, %v2913_v37  ;;  %v2886_v50 = vor.u32 %v4301_v40, %v2883_v41 }
  0x16   : > { %526 = vmatpush.bf16.msra.mxu0 %v2890_v29  ;;  %v4212_v46 = vld [vmem:[%s6455_s1 + $0x74] sm:$0xf0]  ;;  %v3035_v47 = vld [vmem:[%s6455_s1 + $0xb0] sm:$0xf]  ;;  %v2918_v53 = vor.u32 %v4309_v42, %v2915_v43  ;;  %v4299_v55 = vld [vmem:[%s6455_s1 + $0xf4] sm:$0xf] }
  0x17   : > { %v4220_v48 = vld [vmem:[%s6455_s1 + $0xb4] sm:$0xf0]  ;;  %544 = vmatpush.bf16.msra.mxu1 %v2922_v33  ;;  %554 = vmatpush.bf16.msra.mxu2 %v2894_v34  ;;  %v2873_v51 = vld [vmem:[%s6455_s1 + $0xf0] sm:$0xf]  ;;  %v3004_v54 = vor.u32 %v4212_v46, %v3003_v44  ;;  %v2875_v56 = vld [vmem:[%s6455_s1 + $0xf8] sm:$0xf0] }
  0x18   : > { %v4300_v52 = vld [vmem:[%s6455_s1 + $0xf4] sm:$0xf0]  ;;  %572 = vmatpush.bf16.msra.mxu3 %v2926_v38  ;;  %v3036_v57 = vor.u32 %v4220_v48, %v3035_v47  ;;  %v2995_v58 = vld [vmem:[%s6455_s1 + $0x60] sm:$0xf]  ;;  %v4210_v59 = vld [vmem:[%s6455_s1 + $0x64] sm:$0xf0]  ;;  %v2878_v63 = vor.u32 %v4299_v55, %v2875_v56 }
  0x19   : > { %v2874_v60 = vor.u32 %v4300_v52, %v2873_v51  ;;  %v3027_v61 = vld [vmem:[%s6455_s1 + $0xa0] sm:$0xf]  ;;  %v4218_v62 = vld [vmem:[%s6455_s1 + $0xa4] sm:$0xf0]  ;;  %v2996_v2 = vor.u32 %v4210_v59, %v2995_v58  ;;  %v4297_v3 = vld [vmem:[%s6455_s1 + $0xe4] sm:$0xf] }
  0x1a   : > { %527 = vmatpush.bf16.msra.mxu0 %v2882_v45  ;;  %v2865_v0 = vld [vmem:[%s6455_s1 + $0xe0] sm:$0xf]  ;;  %v4298_v1 = vld [vmem:[%s6455_s1 + $0xe4] sm:$0xf0]  ;;  %v2867_v4 = vld [vmem:[%s6455_s1 + $0xe8] sm:$0xf0]  ;;  %v3028_v6 = vor.u32 %v4218_v62, %v3027_v61 }
  0x1b   : > { %545 = vmatpush.bf16.msra.mxu1 %v2914_v49  ;;  %555 = vmatpush.bf16.msra.mxu2 %v2886_v50  ;;  %v2987_v5 = vld [vmem:[%s6455_s1 + $0x50] sm:$0xf]  ;;  %s6462_s22 = smov (!%p242_p3, %s2806_s22), 1  ;;  %v4208_v7 = vld [vmem:[%s6455_s1 + $0x54] sm:$0xf0]  ;;  %v2866_v9 = vor.u32 %v4298_v1, %v2865_v0  ;;  %v2870_v13 = vor.u32 %v4297_v3, %v2867_v4  ;;  %vm520_vm0 = vcmask 523264  }
  0x1c   : > { %573 = vmatpush.bf16.msra.mxu3 %v2918_v53  ;;  %v3019_v8 = vld [vmem:[%s6455_s1 + $0x90] sm:$0xf]  ;;  %v4216_v10 = vld [vmem:[%s6455_s1 + $0x94] sm:$0xf0]  ;;  %s4193_s19 = sshll.u32 %s6462_s22, 4  ;;  %v2988_v16 = vor.u32 %v4208_v7, %v2987_v5  ;;  %vm2743_vm1 = vcmask 1043456  }
  0x1d   : > { %v2857_v11 = vld [vmem:[%s6455_s1 + $0xd0] sm:$0xf]  ;;  %v4296_v12 = vld [vmem:[%s6455_s1 + $0xd4] sm:$0xf0]  ;;  %v4295_v14 = vld [vmem:[%s6455_s1 + $0xd4] sm:$0xf]  ;;  %s4724_s28 = scalar_lea.vmem %s6454_s0, %s4193_s19  ;;  %v3020_v22 = vor.u32 %v4216_v10, %v3019_v8  ;;  %s251_s24 = scalar_lea.vmem %s6460_s6, %s4193_s19 }
  0x1e   : > { %528 = vmatpush.bf16.msra.mxu0 %v2874_v60  ;;  %v2859_v15 = vld [vmem:[%s6455_s1 + $0xd8] sm:$0xf0]  ;;  %v2979_v17 = vld [vmem:[%s6455_s1 + $0x40] sm:$0xf]  ;;  %v4206_v18 = vld [vmem:[%s6455_s1 + $0x44] sm:$0xf0]  ;;  %v2858_v25 = vor.u32 %v4296_v12, %v2857_v11 }
  0x1f   : > { %703 = vmatpush.bf16.msrb.mxu1 %v3004_v54  ;;  %556 = vmatpush.bf16.msra.mxu2 %v2878_v63  ;;  %v3011_v19 = vld [vmem:[%s6455_s1 + $0x80] sm:$0xf]  ;;  %v4195_v20 = vld [vmem:[%s4724_s28 + $0x4] sm:$0xf]  ;;  %v2843_v21 = vld [vmem:[%s4724_s28 + $0x8] sm:$0xf0]  ;;  %v2862_v30 = vor.u32 %v4295_v14, %v2859_v15  ;;  %v2980_v36 = vor.u32 %v4206_v18, %v2979_v17 }
  0x20   : > { %721 = vmatpush.bf16.msrb.mxu3 %v3036_v57  ;;  %v4214_v23 = vld [vmem:[%s6455_s1 + $0x84] sm:$0xf0]  ;;  %v4740_v24 = vor.u32 %v4195_v20, %v2843_v21  ;;  %v3125_v26 = vld [vmem:[%s6456_s2 + $0x130] sm:$0xf]  ;;  %v4332_v27 = vld [vmem:[%s6456_s2 + $0x134] sm:$0xf0] }
  0x21   : > { %v2849_v28 = vld [vmem:[%s6455_s1 + $0xc0] sm:$0xf]  ;;  %v4294_v29 = vld [vmem:[%s6455_s1 + $0xc4] sm:$0xf0]  ;;  %v4293_v31 = vld [vmem:[%s6455_s1 + $0xc4] sm:$0xf]  ;;  %v3012_v39 = vor.u32 %v4214_v23, %v3011_v19  ;;  %v3126_v47 = vor.u32 %v4332_v27, %v3125_v26 }
  0x22   : > { %529 = vmatpush.bf16.msra.mxu0 %v2866_v9  ;;  %v2851_v32 = vld [vmem:[%s6455_s1 + $0xc8] sm:$0xf0]  ;;  %v2971_v33 = vld [vmem:[%s6455_s1 + $0x30] sm:$0xf]  ;;  %v393_v34 = vshrl.u32 %v4740_v24, 16  ;;  %v395_v35 = vshll.u32 %v4740_v24, 16  ;;  %v2850_v44 = vor.u32 %v4294_v29, %v2849_v28 }
  0x23   : > { %704 = vmatpush.bf16.msrb.mxu1 %v2996_v2  ;;  %557 = vmatpush.bf16.msra.mxu2 %v2870_v13  ;;  %v4204_v37 = vld [vmem:[%s6455_s1 + $0x34] sm:$0xf0]  ;;  %v4211_v38 = vld [vmem:[%s6455_s1 + $0x74] sm:$0xf]  ;;  %v3005_v40 = vld [vmem:[%s6455_s1 + $0x78] sm:$0xf0]  ;;  %v2854_v50 = vor.u32 %v4293_v31, %v2851_v32 }
  0x24   : > { %722 = vmatpush.bf16.msrb.mxu3 %v3028_v6  ;;  %v4219_v41 = vld [vmem:[%s6455_s1 + $0xb4] sm:$0xf]  ;;  %v2841_v42 = vld [vmem:[%s4724_s28] sm:$0xf]  ;;  %v397_v43 = vrot.slane %v395_v35, 1  ;;  %v2972_v51 = vor.u32 %v4204_v37, %v2971_v33  ;;  %v3008_v55 = vor.u32 %v4211_v38, %v3005_v40  ;;  %vm2744_vm2 = vcmask 97284  }
  0x25   : > { %v3037_v45 = vld [vmem:[%s6455_s1 + $0xb8] sm:$0xf0]  ;;  %v4196_v46 = vld [vmem:[%s4724_s28 + $0x4] sm:$0xf0]  ;;  %v3117_v52 = vld [vmem:[%s6456_s2 + $0x120] sm:$0xf] }
  0x26   : > { %530 = vmatpush.bf16.msra.mxu0 %v2858_v25  ;;  %v4782_v48 = vor.u32 %v4196_v46, %v2841_v42  ;;  %v4784_v49 = vor.u32 %v397_v43, %v393_v34  ;;  %v4330_v53 = vld [vmem:[%s6456_s2 + $0x124] sm:$0xf0]  ;;  %v2963_v54 = vld [vmem:[%s6455_s1 + $0x20] sm:$0xf]  ;;  %v3040_v56 = vor.u32 %v4219_v41, %v3037_v45  ;;  %v4209_v60 = vld [vmem:[%s6455_s1 + $0x64] sm:$0xf] }
  0x27   : > { %705 = vmatpush.bf16.msrb.mxu1 %v2988_v16  ;;  %558 = vmatpush.bf16.msra.mxu2 %v2862_v30  ;;  %v4202_v59 = vld [vmem:[%s6455_s1 + $0x24] sm:$0xf0]  ;;  %v2997_v61 = vld [vmem:[%s6455_s1 + $0x68] sm:$0xf0]  ;;  %v4217_v62 = vld [vmem:[%s6455_s1 + $0xa4] sm:$0xf]  ;;  %v3118_v0 = vor.u32 %v4330_v53, %v3117_v52 }
  0x28   : > { %723 = vmatpush.bf16.msrb.mxu3 %v3020_v22  ;;  %v386_v57 = vshrl.u32 %v4782_v48, 16  ;;  %v388_v58 = vshll.u32 %v4782_v48, 16  ;;  %v3029_v63 = vld [vmem:[%s6455_s1 + $0xa8] sm:$0xf0]  ;;  %2943 = vmatmul.msk.bf16.vlgmr.msra.gmra.mxu1 %vm520_vm0, %v4784_v49  ;;  %v2964_v2 = vor.u32 %v4202_v59, %v2963_v54  ;;  %v3109_v3 = vld [vmem:[%s6456_s2 + $0x110] sm:$0xf]  ;;  %v3000_v6 = vor.u32 %v4209_v60, %v2997_v61  ;;  %vm2745_vm3 = vmor %vm2744_vm2, %vm2743_vm1 }
  0x29   : > { %2944 = vmatmul.msk.bf16.vlgmr.msra.gmra.mxu3 %vm520_vm0, %v4784_v49  ;;  %v4328_v4 = vld [vmem:[%s6456_s2 + $0x114] sm:$0xf0]  ;;  %v3032_v7 = vor.u32 %v4217_v62, %v3029_v63  ;;  %v2955_v8 = vld [vmem:[%s6455_s1 + $0x10] sm:$0xf]  ;;  %v4207_v10 = vld [vmem:[%s6455_s1 + $0x54] sm:$0xf] }
  0x2a   : > { %531 = vmatpush.bf16.msra.mxu0 %v2850_v44  ;;  %v390_v1 = vrot.slane %v388_v58, 1  ;;  %v4200_v9 = vld [vmem:[%s6455_s1 + $0x14] sm:$0xf0]  ;;  %v2989_v11 = vld [vmem:[%s6455_s1 + $0x58] sm:$0xf0]  ;;  %v3110_v14 = vor.u32 %v4328_v4, %v3109_v3  ;;  %vm2747_vm4 = vcmask 1042432  }
  0x2b   : > { %706 = vmatpush.bf16.msrb.mxu1 %v2980_v36  ;;  %559 = vmatpush.bf16.msra.mxu2 %v2854_v50  ;;  %v4215_v12 = vld [vmem:[%s6455_s1 + $0x94] sm:$0xf]  ;;  %v3021_v13 = vld [vmem:[%s6455_s1 + $0x98] sm:$0xf0]  ;;  %v2956_v15 = vor.u32 %v4200_v9, %v2955_v8  ;;  %v3101_v16 = vld [vmem:[%s6456_s2 + $0x100] sm:$0xf]  ;;  %v2992_v18 = vor.u32 %v4207_v10, %v2989_v11 }
  0x2c   : > { %724 = vmatpush.bf16.msrb.mxu3 %v3012_v39  ;;  %v4822_v5 = vor.u32 %v390_v1, %v386_v57  ;;  %v4326_v17 = vld [vmem:[%s6456_s2 + $0x104] sm:$0xf0]  ;;  %v3024_v19 = vor.u32 %v4215_v12, %v3021_v13  ;;  %v2947_v20 = vld [vmem:[%s6455_s1] sm:$0xf]  ;;  %v4205_v22 = vld [vmem:[%s6455_s1 + $0x44] sm:$0xf] }
  0x2d   : > { %v4198_v21 = vld [vmem:[%s6455_s1 + $0x4] sm:$0xf0]  ;;  %v2981_v23 = vld [vmem:[%s6455_s1 + $0x48] sm:$0xf0]  ;;  %v4213_v25 = vld [vmem:[%s6455_s1 + $0x84] sm:$0xf]  ;;  %v3102_v27 = vor.u32 %v4326_v17, %v3101_v16 }
  0x2e   : > { %731 = vmatpush.bf16.msrb.mxu0 %v3008_v55  ;;  %560 = vmatmul.bf16.vlgmr.msra.gmra.mxu2 %v4822_v5  ;;  %v3013_v26 = vld [vmem:[%s6455_s1 + $0x88] sm:$0xf0]  ;;  %v3093_v28 = vld [vmem:[%s6456_s2 + $0xf0] sm:$0xf]  ;;  %v4340_v30 = vld [vmem:[%s6456_s2 + $0x174] sm:$0xf0]  ;;  %v2948_v31 = vor.u32 %v4198_v21, %v2947_v20  ;;  %v2984_v35 = vor.u32 %v4205_v22, %v2981_v23 }
  0x2f   : > { %707 = vmatpush.bf16.msrb.mxu1 %v2972_v51  ;;  %749 = vmatpush.bf16.msrb.mxu2 %v3040_v56  ;;  %v3157_v29 = vld [vmem:[%s6456_s2 + $0x170] sm:$0xf]  ;;  %v4324_v32 = vld [vmem:[%s6456_s2 + $0xf4] sm:$0xf0]  ;;  %v4331_v33 = vld [vmem:[%s6456_s2 + $0x134] sm:$0xf]  ;;  %v3016_v36 = vor.u32 %v4213_v25, %v3013_v26 }
  0x30   : > { %904 = vmatpush.bf16.msra.mxu3 %v3126_v47  ;;  %532 = vmatmul.bf16.vlgmr.msra.gmra.mxu0 %v4822_v5  ;;  %v3127_v34 = vld [vmem:[%s6456_s2 + $0x138] sm:$0xf0]  ;;  %v3158_v37 = vor.u32 %v4340_v30, %v3157_v29  ;;  %v4203_v38 = vld [vmem:[%s6455_s1 + $0x34] sm:$0xf]  ;;  %v3094_v40 = vor.u32 %v4324_v32, %v3093_v28  ;;  %v3085_v42 = vld [vmem:[%s6456_s2 + $0xe0] sm:$0xf] }
  0x31   : > { %v2973_v39 = vld [vmem:[%s6455_s1 + $0x38] sm:$0xf0]  ;;  %v3130_v41 = vor.u32 %v4331_v33, %v3127_v34  ;;  %v3149_v43 = vld [vmem:[%s6456_s2 + $0x160] sm:$0xf]  ;;  %v4338_v44 = vld [vmem:[%s6456_s2 + $0x164] sm:$0xf0] }
  0x32   : > { %732 = vmatpush.bf16.msrb.mxu0 %v3000_v6  ;;  %v4322_v45 = vld [vmem:[%s6456_s2 + $0xe4] sm:$0xf0]  ;;  %v4329_v46 = vld [vmem:[%s6456_s2 + $0x124] sm:$0xf]  ;;  %v3119_v47 = vld [vmem:[%s6456_s2 + $0x128] sm:$0xf0]  ;;  %v2976_v50 = vor.u32 %v4203_v38, %v2973_v39  ;;  %v3150_v51 = vor.u32 %v4338_v44, %v3149_v43 }
  0x33   : > { %708 = vmatpush.bf16.msrb.mxu1 %v2964_v2  ;;  %750 = vmatpush.bf16.msrb.mxu2 %v3032_v7  ;;  %v4201_v52 = vld [vmem:[%s6455_s1 + $0x24] sm:$0xf]  ;;  %v2965_v53 = vld [vmem:[%s6455_s1 + $0x28] sm:$0xf0]  ;;  %v3086_v54 = vor.u32 %v4322_v45, %v3085_v42  ;;  %v3122_v55 = vor.u32 %v4329_v46, %v3119_v47  ;;  %v3077_v56 = vld [vmem:[%s6456_s2 + $0xd0] sm:$0xf] }
  0x34   : > { %905 = vmatpush.bf16.msra.mxu3 %v3118_v0  ;;  %v3141_v57 = vld [vmem:[%s6456_s2 + $0x150] sm:$0xf]  ;;  %v4336_v58 = vld [vmem:[%s6456_s2 + $0x154] sm:$0xf0]  ;;  %v4327_v60 = vld [vmem:[%s6456_s2 + $0x114] sm:$0xf]  ;;  %v2968_v62 = vor.u32 %v4201_v52, %v2965_v53 }
  0x35   : > { %v4320_v59 = vld [vmem:[%s6456_s2 + $0xd4] sm:$0xf0]  ;;  %v3111_v61 = vld [vmem:[%s6456_s2 + $0x118] sm:$0xf0]  ;;  %v3142_v63 = vor.u32 %v4336_v58, %v3141_v57  ;;  %v4199_v0 = vld [vmem:[%s6455_s1 + $0x14] sm:$0xf] }
  0x36   : > { %733 = vmatpush.bf16.msrb.mxu0 %v2992_v18  ;;  %v2957_v1 = vld [vmem:[%s6455_s1 + $0x18] sm:$0xf0]  ;;  %v3069_v2 = vld [vmem:[%s6456_s2 + $0xc0] sm:$0xf]  ;;  %v3078_v3 = vor.u32 %v4320_v59, %v3077_v56  ;;  %v3114_v4 = vor.u32 %v4327_v60, %v3111_v61  ;;  %v4318_v6 = vld [vmem:[%s6456_s2 + $0xc4] sm:$0xf0] }
  0x37   : > { %709 = vmatpush.bf16.msrb.mxu1 %v2956_v15  ;;  %751 = vmatpush.bf16.msrb.mxu2 %v3024_v19  ;;  %v3133_v7 = vld [vmem:[%s6456_s2 + $0x140] sm:$0xf]  ;;  %v4334_v8 = vld [vmem:[%s6456_s2 + $0x144] sm:$0xf0]  ;;  %v4325_v9 = vld [vmem:[%s6456_s2 + $0x104] sm:$0xf]  ;;  %v2960_v12 = vor.u32 %v4199_v0, %v2957_v1  ;;  %v3070_v19 = vor.u32 %v4318_v6, %v3069_v2 }
  0x38   : > { %906 = vmatpush.bf16.msra.mxu3 %v3110_v14  ;;  %v3103_v10 = vld [vmem:[%s6456_s2 + $0x108] sm:$0xf0]  ;;  %v4339_v11 = vld [vmem:[%s6456_s2 + $0x174] sm:$0xf]  ;;  %v3159_v13 = vld [vmem:[%s6456_s2 + $0x178] sm:$0xf0]  ;;  %v3134_v16 = vor.u32 %v4334_v8, %v3133_v7 }
  0x39   : > { %3041 = vmatmul.msk.bf16.vlgmr.msrb.gmra.mxu3 %vm520_vm0, %v4740_v24  ;;  %v3223_v14 = vld [vmem:[%s6456_s2 + $0x70] sm:$0xf]  ;;  %v4236_v15 = vld [vmem:[%s6456_s2 + $0x74] sm:$0xf0]  ;;  %v4197_v17 = vld [vmem:[%s6455_s1 + $0x4] sm:$0xf]  ;;  %v3106_v20 = vor.u32 %v4325_v9, %v3103_v10  ;;  %v3162_v23 = vor.u32 %v4339_v11, %v3159_v13 }
  0x3a   : > { %734 = vmatpush.bf16.msrb.mxu0 %v2984_v35  ;;  %v2949_v18 = vld [vmem:[%s6455_s1 + $0x8] sm:$0xf0]  ;;  %v4235_v21 = vld [vmem:[%s6456_s2 + $0x74] sm:$0xf]  ;;  %v3225_v22 = vld [vmem:[%s6456_s2 + $0x78] sm:$0xf0]  ;;  %v3224_v25 = vor.u32 %v4236_v15, %v3223_v14 }
  0x3b   : > { %710 = vmatpush.bf16.msrb.mxu1 %v2948_v31  ;;  %752 = vmatpush.bf16.msrb.mxu2 %v3016_v36  ;;  %v4323_v26 = vld [vmem:[%s6456_s2 + $0xf4] sm:$0xf]  ;;  %v4337_v28 = vld [vmem:[%s6456_s2 + $0x164] sm:$0xf]  ;;  %v2952_v29 = vor.u32 %v4197_v17, %v2949_v18  ;;  %v3151_v30 = vld [vmem:[%s6456_s2 + $0x168] sm:$0xf0]  ;;  %v3228_v33 = vor.u32 %v4235_v21, %v3225_v22 }
  0x3c   : > { %907 = vmatpush.bf16.msra.mxu3 %v3102_v27  ;;  %v3095_v27 = vld [vmem:[%s6456_s2 + $0xf8] sm:$0xf0]  ;;  %v3215_v31 = vld [vmem:[%s6456_s2 + $0x60] sm:$0xf]  ;;  %v4234_v32 = vld [vmem:[%s6456_s2 + $0x64] sm:$0xf0] }
  0x3d   : > { %v3098_v34 = vor.u32 %v4323_v26, %v3095_v27  ;;  %v4233_v35 = vld [vmem:[%s6456_s2 + $0x64] sm:$0xf]  ;;  %v3217_v36 = vld [vmem:[%s6456_s2 + $0x68] sm:$0xf0]  ;;  %v3216_v38 = vor.u32 %v4234_v32, %v3215_v31  ;;  %v3143_v42 = vld [vmem:[%s6456_s2 + $0x158] sm:$0xf0] }
  0x3e   : > { %711 = vmatmul.bf16.vlgmr.msrb.gmra.mxu1 %v4782_v48  ;;  %735 = vmatpush.bf16.msrb.mxu0 %v2976_v50  ;;  %v4321_v39 = vld [vmem:[%s6456_s2 + $0xe4] sm:$0xf]  ;;  %v3207_v43 = vld [vmem:[%s6456_s2 + $0x50] sm:$0xf]  ;;  %v4232_v44 = vld [vmem:[%s6456_s2 + $0x54] sm:$0xf0]  ;;  %v3220_v45 = vor.u32 %v4233_v35, %v3217_v36 }
  0x3f   : > { %922 = vmatpush.bf16.msra.mxu1 %v3158_v37  ;;  %932 = vmatpush.bf16.msra.mxu2 %v3130_v41  ;;  %v3154_v37 = vor.u32 %v4337_v28, %v3151_v30  ;;  %v4335_v41 = vld [vmem:[%s6456_s2 + $0x154] sm:$0xf]  ;;  %v3209_v50 = vld [vmem:[%s6456_s2 + $0x58] sm:$0xf0]  ;;  %v3208_v52 = vor.u32 %v4232_v44, %v3207_v43  ;;  %v3135_v56 = vld [vmem:[%s6456_s2 + $0x148] sm:$0xf0] }
  0x40   : > { %908 = vmatpush.bf16.msra.mxu3 %v3094_v40  ;;  %3042 = vmatmul.msk.bf16.vlgmr.msrb.gmra.mxu2 %vm520_vm0, %v4740_v24  ;;  %v3087_v40 = vld [vmem:[%s6456_s2 + $0xe8] sm:$0xf0]  ;;  %v4231_v47 = vld [vmem:[%s6456_s2 + $0x54] sm:$0xf]  ;;  %v3199_v57 = vld [vmem:[%s6456_s2 + $0x40] sm:$0xf] }
  0x41   : > { %v3090_v46 = vor.u32 %v4321_v39, %v3087_v40  ;;  %v4319_v53 = vld [vmem:[%s6456_s2 + $0xd4] sm:$0xf]  ;;  %v4230_v58 = vld [vmem:[%s6456_s2 + $0x44] sm:$0xf0]  ;;  %v3212_v59 = vor.u32 %v4231_v47, %v3209_v50  ;;  %v3255_v60 = vld [vmem:[%s6456_s2 + $0xb0] sm:$0xf] }
  0x42   : > { %736 = vmatpush.bf16.msrb.mxu0 %v2968_v62  ;;  %v4244_v61 = vld [vmem:[%s6456_s2 + $0xb4] sm:$0xf0]  ;;  %v3201_v0 = vld [vmem:[%s6456_s2 + $0x48] sm:$0xf0]  ;;  %v3200_v2 = vor.u32 %v4230_v58, %v3199_v57  ;;  %v3191_v6 = vld [vmem:[%s6456_s2 + $0x30] sm:$0xf] }
  0x43   : > { %923 = vmatpush.bf16.msra.mxu1 %v3150_v51  ;;  %933 = vmatpush.bf16.msra.mxu2 %v3122_v55  ;;  %v3146_v51 = vor.u32 %v4335_v41, %v3143_v42  ;;  %v4333_v55 = vld [vmem:[%s6456_s2 + $0x144] sm:$0xf]  ;;  %v3256_v7 = vor.u32 %v4244_v61, %v3255_v60  ;;  %v4228_v8 = vld [vmem:[%s6456_s2 + $0x34] sm:$0xf0]  ;;  %v4243_v9 = vld [vmem:[%s6456_s2 + $0xb4] sm:$0xf] }
  0x44   : > { %909 = vmatpush.bf16.msra.mxu3 %v3086_v54  ;;  %v3079_v54 = vld [vmem:[%s6456_s2 + $0xd8] sm:$0xf0]  ;;  %v3138_v1 = vor.u32 %v4333_v55, %v3135_v56  ;;  %v4242_v13 = vld [vmem:[%s6456_s2 + $0xa4] sm:$0xf0]  ;;  %v3192_v15 = vor.u32 %v4228_v8, %v3191_v6  ;;  %v4227_v17 = vld [vmem:[%s6456_s2 + $0x34] sm:$0xf] }
  0x45   : > { %v3082_v62 = vor.u32 %v4319_v53, %v3079_v54  ;;  %v3257_v10 = vld [vmem:[%s6456_s2 + $0xb8] sm:$0xf0]  ;;  %v4226_v21 = vld [vmem:[%s6456_s2 + $0x24] sm:$0xf0]  ;;  %v4241_v22 = vld [vmem:[%s6456_s2 + $0xa4] sm:$0xf] }
  0x46   : > { %737 = vmatpush.bf16.msrb.mxu0 %v2960_v12  ;;  %v3247_v12 = vld [vmem:[%s6456_s2 + $0xa0] sm:$0xf]  ;;  %v3193_v18 = vld [vmem:[%s6456_s2 + $0x38] sm:$0xf0]  ;;  %v4240_v26 = vld [vmem:[%s6456_s2 + $0x94] sm:$0xf0] }
  0x47   : > { %924 = vmatpush.bf16.msra.mxu1 %v3142_v63  ;;  %934 = vmatpush.bf16.msra.mxu2 %v3114_v4  ;;  %v4229_v63 = vld [vmem:[%s6456_s2 + $0x44] sm:$0xf]  ;;  %v3071_v4 = vld [vmem:[%s6456_s2 + $0xc8] sm:$0xf0]  ;;  %v3196_v27 = vor.u32 %v4227_v17, %v3193_v18  ;;  %v3175_v32 = vld [vmem:[%s6456_s2 + $0x10] sm:$0xf] }
  0x48   : > { %910 = vmatpush.bf16.msra.mxu3 %v3078_v3  ;;  %v4317_v3 = vld [vmem:[%s6456_s2 + $0xc4] sm:$0xf]  ;;  %v3204_v11 = vor.u32 %v4229_v63, %v3201_v0  ;;  %v3185_v31 = vld [vmem:[%s6456_s2 + $0x28] sm:$0xf0]  ;;  %v4239_v35 = vld [vmem:[%s6456_s2 + $0x94] sm:$0xf] }
  0x49   : > { %v3074_v14 = vor.u32 %v4317_v3, %v3071_v4  ;;  %v4225_v30 = vld [vmem:[%s6456_s2 + $0x24] sm:$0xf]  ;;  %v3241_v36 = vld [vmem:[%s6456_s2 + $0x98] sm:$0xf0]  ;;  %v3345_v40 = vld [vmem:[%s6457_s3 + $0x130] sm:$0xf] }
  0x4a   : > { %738 = vmatpush.bf16.msrb.mxu0 %v2952_v29  ;;  %v3188_v39 = vor.u32 %v4225_v30, %v3185_v31  ;;  %v4356_v41 = vld [vmem:[%s6457_s3 + $0x134] sm:$0xf0]  ;;  %v4223_v42 = vld [vmem:[%s6456_s2 + $0x14] sm:$0xf]  ;;  %v3244_v44 = vor.u32 %v4239_v35, %v3241_v36  ;;  %v4222_v47 = vld [vmem:[%s6456_s2 + $0x4] sm:$0xf0] }
  0x4b   : > { %925 = vmatpush.bf16.msra.mxu1 %v3134_v16  ;;  %935 = vmatpush.bf16.msra.mxu2 %v3106_v20  ;;  %v3260_v16 = vor.u32 %v4243_v9, %v3257_v10  ;;  %v3248_v20 = vor.u32 %v4242_v13, %v3247_v12  ;;  %v3377_v53 = vld [vmem:[%s6457_s3 + $0x170] sm:$0xf]  ;;  %v3346_v54 = vor.u32 %v4356_v41, %v3345_v40  ;;  %v4364_v55 = vld [vmem:[%s6457_s3 + $0x174] sm:$0xf0]  ;;  %v4355_v56 = vld [vmem:[%s6457_s3 + $0x134] sm:$0xf] }
  0x4c   : > { %911 = vmatpush.bf16.msra.mxu3 %v3070_v19  ;;  %v3183_v19 = vld [vmem:[%s6456_s2 + $0x20] sm:$0xf]  ;;  %v3347_v57 = vld [vmem:[%s6457_s3 + $0x138] sm:$0xf0]  ;;  %v4354_v60 = vld [vmem:[%s6457_s3 + $0x124] sm:$0xf0] }
  0x4d   : > { %739 = vmatmul.bf16.vlgmr.msrb.gmra.mxu0 %v4782_v48  ;;  %v3184_v28 = vor.u32 %v4226_v21, %v3183_v19  ;;  %v4221_v63 = vld [vmem:[%s6456_s2 + $0x4] sm:$0xf]  ;;  %v3169_v0 = vld [vmem:[%s6456_s2 + $0x8] sm:$0xf0]  ;;  %v4363_v3 = vld [vmem:[%s6457_s3 + $0x174] sm:$0xf] }
  0x4e   : > { %1108 = vmatpush.bf16.msra.mxu0 %v3228_v33  ;;  %3163 = vmatmul.msk.bf16.vlgmr.msra.gmra.mxu1 %vm520_vm0, %v4784_v49  ;;  %v3379_v4 = vld [vmem:[%s6457_s3 + $0x178] sm:$0xf0]  ;;  %v3369_v6 = vld [vmem:[%s6457_s3 + $0x160] sm:$0xf]  ;;  %v4362_v8 = vld [vmem:[%s6457_s3 + $0x164] sm:$0xf0] }
  0x4f   : > { %1080 = vmatpush.bf16.msrb.mxu1 %v3224_v25  ;;  %912 = vmatmul.bf16.vlgmr.msra.gmra.mxu3 %v4822_v5  ;;  %v3239_v25 = vld [vmem:[%s6456_s2 + $0x90] sm:$0xf]  ;;  %v4353_v9 = vld [vmem:[%s6457_s3 + $0x124] sm:$0xf]  ;;  %v3339_v10 = vld [vmem:[%s6457_s3 + $0x128] sm:$0xf0]  ;;  %v3382_v12 = vor.u32 %v4363_v3, %v3379_v4 }
  0x50   : > { %950 = vmatpush.bf16.msrb.mxu3 %v3162_v23  ;;  %936 = vmatpush.bf16.msra.mxu2 %v3098_v34  ;;  %v3249_v23 = vld [vmem:[%s6456_s2 + $0xa8] sm:$0xf0]  ;;  %v3240_v33 = vor.u32 %v4240_v26, %v3239_v25  ;;  %v4224_v34 = vld [vmem:[%s6456_s2 + $0x14] sm:$0xf0]  ;;  %v3329_v13 = vld [vmem:[%s6457_s3 + $0x110] sm:$0xf] }
  0x51   : > { %v3252_v29 = vor.u32 %v4241_v22, %v3249_v23  ;;  %v3176_v43 = vor.u32 %v4224_v34, %v3175_v32  ;;  %v4361_v17 = vld [vmem:[%s6457_s3 + $0x164] sm:$0xf]  ;;  %v3371_v18 = vld [vmem:[%s6457_s3 + $0x168] sm:$0xf0]  ;;  %v3361_v19 = vld [vmem:[%s6457_s3 + $0x150] sm:$0xf] }
  0x52   : > { %1109 = vmatpush.bf16.msra.mxu0 %v3220_v45  ;;  %v3177_v45 = vld [vmem:[%s6456_s2 + $0x18] sm:$0xf0]  ;;  %v4351_v21 = vld [vmem:[%s6457_s3 + $0x114] sm:$0xf]  ;;  %v3374_v25 = vor.u32 %v4361_v17, %v3371_v18  ;;  %v3321_v26 = vld [vmem:[%s6457_s3 + $0x100] sm:$0xf] }
  0x53   : > { %1081 = vmatpush.bf16.msrb.mxu1 %v3216_v38  ;;  %v4238_v38 = vld [vmem:[%s6456_s2 + $0x84] sm:$0xf0]  ;;  %v3180_v58 = vor.u32 %v4223_v42, %v3177_v45  ;;  %v3331_v22 = vld [vmem:[%s6457_s3 + $0x118] sm:$0xf0]  ;;  %v4359_v30 = vld [vmem:[%s6457_s3 + $0x154] sm:$0xf] }
  0x54   : > { %951 = vmatpush.bf16.msrb.mxu3 %v3154_v37  ;;  %937 = vmatpush.bf16.msra.mxu2 %v3090_v46  ;;  %v3231_v37 = vld [vmem:[%s6456_s2 + $0x80] sm:$0xf]  ;;  %v3363_v31 = vld [vmem:[%s6457_s3 + $0x158] sm:$0xf0]  ;;  %v4349_v34 = vld [vmem:[%s6457_s3 + $0x104] sm:$0xf] }
  0x55   : > { %v3167_v46 = vld [vmem:[%s6456_s2] sm:$0xf]  ;;  %v3232_v50 = vor.u32 %v4238_v38, %v3231_v37  ;;  %v3323_v35 = vld [vmem:[%s6457_s3 + $0x108] sm:$0xf0]  ;;  %v3443_v37 = vld [vmem:[%s6457_s3 + $0x70] sm:$0xf] }
  0x56   : > { %1110 = vmatpush.bf16.msra.mxu0 %v3212_v59  ;;  %v3337_v59 = vld [vmem:[%s6457_s3 + $0x120] sm:$0xf]  ;;  %v3168_v61 = vor.u32 %v4222_v47, %v3167_v46  ;;  %v4260_v38 = vld [vmem:[%s6457_s3 + $0x74] sm:$0xf0]  ;;  %v3313_v40 = vld [vmem:[%s6457_s3 + $0xf0] sm:$0xf] }
  0x57   : > { %1082 = vmatpush.bf16.msrb.mxu1 %v3208_v52  ;;  %v3233_v52 = vld [vmem:[%s6456_s2 + $0x88] sm:$0xf0]  ;;  %v3353_v32 = vld [vmem:[%s6457_s3 + $0x140] sm:$0xf]  ;;  %v4348_v41 = vld [vmem:[%s6457_s3 + $0xf4] sm:$0xf0]  ;;  %v3444_v47 = vor.u32 %v4260_v38, %v3443_v37 }
  0x58   : > { %952 = vmatpush.bf16.msrb.mxu3 %v3146_v51  ;;  %938 = vmatpush.bf16.msra.mxu2 %v3082_v62  ;;  %v4237_v51 = vld [vmem:[%s6456_s2 + $0x84] sm:$0xf]  ;;  %v3355_v45 = vld [vmem:[%s6457_s3 + $0x148] sm:$0xf0]  ;;  %v4347_v46 = vld [vmem:[%s6457_s3 + $0xf4] sm:$0xf] }
  0x59   : > { %v3236_v62 = vor.u32 %v4237_v51, %v3233_v52  ;;  %v4259_v51 = vld [vmem:[%s6457_s3 + $0x74] sm:$0xf]  ;;  %v3445_v52 = vld [vmem:[%s6457_s3 + $0x78] sm:$0xf0]  ;;  %v3427_v3 = vld [vmem:[%s6457_s3 + $0x50] sm:$0xf] }
  0x5a   : > { %1111 = vmatpush.bf16.msra.mxu0 %v3204_v11  ;;  %v3172_v11 = vor.u32 %v4221_v63, %v3169_v0  ;;  %v3307_v63 = vld [vmem:[%s6457_s3 + $0xe8] sm:$0xf0]  ;;  %v4257_v0 = vld [vmem:[%s6457_s3 + $0x64] sm:$0xf]  ;;  %v4256_v4 = vld [vmem:[%s6457_s3 + $0x54] sm:$0xf0] }
  0x5b   : > { %1083 = vmatpush.bf16.msrb.mxu1 %v3200_v2  ;;  %v3350_v2 = vor.u32 %v4355_v56, %v3347_v57  ;;  %v3305_v57 = vld [vmem:[%s6457_s3 + $0xe0] sm:$0xf]  ;;  %v4254_v17 = vld [vmem:[%s6457_s3 + $0x44] sm:$0xf0]  ;;  %vm2748_vm5 = vcmask 96260  }
  0x5c   : > { %953 = vmatpush.bf16.msrb.mxu3 %v3138_v1  ;;  %939 = vmatpush.bf16.msra.mxu2 %v3074_v14  ;;  %v3378_v1 = vor.u32 %v4364_v55, %v3377_v53  ;;  %v4352_v14 = vld [vmem:[%s6457_s3 + $0x114] sm:$0xf0]  ;;  %v3314_v53 = vor.u32 %v4348_v41, %v3313_v40  ;;  %v4258_v55 = vld [vmem:[%s6457_s3 + $0x64] sm:$0xf0]  ;;  %v3289_v18 = vld [vmem:[%s6457_s3 + $0xc0] sm:$0xf] }
  0x5d   : > { %v3330_v23 = vor.u32 %v4352_v14, %v3329_v13  ;;  %v4255_v13 = vld [vmem:[%s6457_s3 + $0x54] sm:$0xf]  ;;  %v3429_v14 = vld [vmem:[%s6457_s3 + $0x58] sm:$0xf0]  ;;  %v3467_v38 = vld [vmem:[%s6457_s3 + $0xa0] sm:$0xf] }
  0x5e   : > { %1112 = vmatpush.bf16.msra.mxu0 %v3196_v27  ;;  %v4350_v27 = vld [vmem:[%s6457_s3 + $0x104] sm:$0xf0]  ;;  %v4251_v41 = vld [vmem:[%s6457_s3 + $0x34] sm:$0xf]  ;;  %vm2749_vm6 = vmor %vm2748_vm5, %vm2747_vm4 }
  0x5f   : > { %1084 = vmatpush.bf16.msrb.mxu1 %v3192_v15  ;;  %940 = vmatmul.bf16.vlgmr.msra.gmra.mxu2 %v4822_v5  ;;  %v3370_v15 = vor.u32 %v4362_v8, %v3369_v6  ;;  %v3322_v36 = vor.u32 %v4350_v27, %v3321_v26  ;;  %v3297_v6 = vld [vmem:[%s6457_s3 + $0xd0] sm:$0xf]  ;;  %v3291_v27 = vld [vmem:[%s6457_s3 + $0xc8] sm:$0xf0] }
  0x60   : > { %1098 = vmatpush.bf16.msra.mxu3 %v3256_v7  ;;  %1126 = vmatpush.bf16.msrb.mxu2 %v3260_v16  ;;  %v3338_v7 = vor.u32 %v4354_v60, %v3337_v59  ;;  %v3342_v16 = vor.u32 %v4353_v9, %v3339_v10  ;;  %v3448_v60 = vor.u32 %v4259_v51, %v3445_v52  ;;  %v4343_v10 = vld [vmem:[%s6457_s3 + $0xd4] sm:$0xf]  ;;  %v3459_v52 = vld [vmem:[%s6457_s3 + $0x90] sm:$0xf] }
  0x61   : > { %3164 = vmatmul.msk.bf16.vlgmr.msrb.gmra.mxu3 %vm520_vm0, %v4784_v49 }
  0x62   : > { %1113 = vmatpush.bf16.msra.mxu0 %v3188_v39  ;;  %v3366_v39 = vor.u32 %v4359_v30, %v3363_v31  ;;  %v3411_v31 = vld [vmem:[%s6457_s3 + $0x30] sm:$0xf] }
  0x63   : > { %1085 = vmatpush.bf16.msrb.mxu1 %v3184_v28 }
  0x64   : > { %1099 = vmatpush.bf16.msra.mxu3 %v3248_v20  ;;  %1127 = vmatpush.bf16.msrb.mxu2 %v3252_v29  ;;  %v4360_v20 = vld [vmem:[%s6457_s3 + $0x154] sm:$0xf0]  ;;  %v3334_v29 = vor.u32 %v4351_v21, %v3331_v22  ;;  %v3432_v21 = vor.u32 %v4255_v13, %v3429_v14  ;;  %v3475_v22 = vld [vmem:[%s6457_s3 + $0xb0] sm:$0xf]  ;;  %v3453_v13 = vld [vmem:[%s6457_s3 + $0x88] sm:$0xf0] }
  0x65   : > { %v3362_v28 = vor.u32 %v4360_v20, %v3361_v19  ;;  %v4342_v19 = vld [vmem:[%s6457_s3 + $0xc4] sm:$0xf0]  ;;  %v3597_v14 = vld [vmem:[%s6458_s4 + $0x170] sm:$0xf] }
  0x66   : > { %1114 = vmatpush.bf16.msra.mxu0 %v3180_v58  ;;  %v4346_v58 = vld [vmem:[%s6457_s3 + $0xe4] sm:$0xf0]  ;;  %v3290_v30 = vor.u32 %v4342_v19, %v3289_v18  ;;  %v4379_v18 = vld [vmem:[%s6458_s4 + $0x134] sm:$0xf]  ;;  %v3567_v19 = vld [vmem:[%s6458_s4 + $0x138] sm:$0xf0] }
  0x67   : > { %1086 = vmatpush.bf16.msrb.mxu1 %v3176_v43  ;;  %v3326_v43 = vor.u32 %v4349_v34, %v3323_v35  ;;  %v4267_v34 = vld [vmem:[%s6457_s3 + $0xb4] sm:$0xf]  ;;  %v3477_v35 = vld [vmem:[%s6457_s3 + $0xb8] sm:$0xf0] }
  0x68   : > { %1100 = vmatpush.bf16.msra.mxu3 %v3240_v33  ;;  %1128 = vmatpush.bf16.msrb.mxu2 %v3244_v44  ;;  %v4358_v33 = vld [vmem:[%s6457_s3 + $0x144] sm:$0xf0]  ;;  %v4357_v44 = vld [vmem:[%s6457_s3 + $0x144] sm:$0xf] }
  0x69   : > { %v3354_v42 = vor.u32 %v4358_v33, %v3353_v32  ;;  %v3358_v56 = vor.u32 %v4357_v44, %v3355_v45  ;;  %v4252_v32 = vld [vmem:[%s6457_s3 + $0x34] sm:$0xf0]  ;;  %v3403_v44 = vld [vmem:[%s6457_s3 + $0x20] sm:$0xf]  ;;  %v4250_v45 = vld [vmem:[%s6457_s3 + $0x24] sm:$0xf0] }
  0x6a   : > { %1115 = vmatpush.bf16.msra.mxu0 %v3172_v11  ;;  %v3428_v11 = vor.u32 %v4256_v4, %v3427_v3  ;;  %v3412_v40 = vor.u32 %v4252_v32, %v3411_v31  ;;  %v4380_v4 = vld [vmem:[%s6458_s4 + $0x134] sm:$0xf0]  ;;  %v3589_v31 = vld [vmem:[%s6458_s4 + $0x160] sm:$0xf]  ;;  %v4386_v32 = vld [vmem:[%s6458_s4 + $0x164] sm:$0xf0] }
  0x6b   : > { %1087 = vmatpush.bf16.msrb.mxu1 %v3168_v61  ;;  %v4345_v61 = vld [vmem:[%s6457_s3 + $0xe4] sm:$0xf] }
  0x6c   : > { %1101 = vmatpush.bf16.msra.mxu3 %v3232_v50  ;;  %1129 = vmatpush.bf16.msrb.mxu2 %v3236_v62  ;;  %v3315_v50 = vld [vmem:[%s6457_s3 + $0xf8] sm:$0xf0]  ;;  %v3310_v8 = vor.u32 %v4345_v61, %v3307_v63  ;;  %v4263_v61 = vld [vmem:[%s6457_s3 + $0x94] sm:$0xf] }
  0x6d   : > { %1116 = vmatmul.bf16.vlgmr.msra.gmra.mxu0 %v4782_v48  ;;  %v3318_v59 = vor.u32 %v4347_v46, %v3315_v50  ;;  %v3469_v50 = vld [vmem:[%s6457_s3 + $0xa8] sm:$0xf0] }
  0x6e   : > { %1088 = vmatmul.bf16.vlgmr.msrb.gmra.mxu1 %v4782_v48  ;;  %1327 = vmatpush.bf16.msrb.mxu0 %v3382_v12  ;;  %v3299_v12 = vld [vmem:[%s6457_s3 + $0xd8] sm:$0xf0] }
  0x6f   : > { %1299 = vmatpush.bf16.msra.mxu1 %v3378_v1  ;;  %3262 = vmatmul.msk.bf16.vlgmr.msrb.gmra.mxu2 %vm520_vm0, %v4740_v24  ;;  %v3437_v1 = vld [vmem:[%s6457_s3 + $0x68] sm:$0xf0]  ;;  %v3302_v20 = vor.u32 %v4343_v10, %v3299_v12  ;;  %v4246_v10 = vld [vmem:[%s6457_s3 + $0x4] sm:$0xf0] }
  0x70   : > { %1281 = vmatpush.bf16.msrb.mxu3 %v3346_v54  ;;  %1309 = vmatpush.bf16.msra.mxu2 %v3350_v2  ;;  %v3435_v54 = vld [vmem:[%s6457_s3 + $0x60] sm:$0xf]  ;;  %v3306_v2 = vor.u32 %v4346_v58, %v3305_v57  ;;  %v3440_v9 = vor.u32 %v4257_v0, %v3437_v1  ;;  %v3395_v58 = vld [vmem:[%s6457_s3 + $0x10] sm:$0xf]  ;;  %v4262_v1 = vld [vmem:[%s6457_s3 + $0x84] sm:$0xf0] }
  0x71   : > { %3261 = vmatmul.msk.bf16.vlgmr.msra.gmra.mxu3 %vm520_vm0, %v4740_v24  ;;  %v3436_v62 = vor.u32 %v4258_v55, %v3435_v54  ;;  %v3404_v54 = vor.u32 %v4250_v45, %v3403_v44  ;;  %v4249_v55 = vld [vmem:[%s6457_s3 + $0x24] sm:$0xf]  ;;  %v3451_v0 = vld [vmem:[%s6457_s3 + $0x80] sm:$0xf]  ;;  %v3581_v44 = vld [vmem:[%s6458_s4 + $0x150] sm:$0xf] }
  0x72   : > { %1328 = vmatpush.bf16.msrb.mxu0 %v3374_v25  ;;  %v4341_v25 = vld [vmem:[%s6457_s3 + $0xc4] sm:$0xf]  ;;  %v3452_v12 = vor.u32 %v4262_v1, %v3451_v0  ;;  %v4384_v45 = vld [vmem:[%s6458_s4 + $0x154] sm:$0xf0] }
  0x73   : > { %1300 = vmatpush.bf16.msra.mxu1 %v3370_v15 }
  0x74   : > { %1282 = vmatpush.bf16.msrb.mxu3 %v3338_v7  ;;  %1310 = vmatpush.bf16.msra.mxu2 %v3342_v16  ;;  %v4344_v7 = vld [vmem:[%s6457_s3 + $0xd4] sm:$0xf0]  ;;  %v3419_v16 = vld [vmem:[%s6457_s3 + $0x40] sm:$0xf] }
  0x75   : > { %v3298_v15 = vor.u32 %v4344_v7, %v3297_v6  ;;  %v3420_v26 = vor.u32 %v4254_v17, %v3419_v16  ;;  %v4247_v6 = vld [vmem:[%s6457_s3 + $0x14] sm:$0xf]  ;;  %v3397_v7 = vld [vmem:[%s6457_s3 + $0x18] sm:$0xf0] }
  0x76   : > { %1329 = vmatpush.bf16.msrb.mxu0 %v3366_v39  ;;  %v4266_v39 = vld [vmem:[%s6457_s3 + $0xa4] sm:$0xf0]  ;;  %v3400_v17 = vor.u32 %v4247_v6, %v3397_v7 }
  0x77   : > { %1301 = vmatpush.bf16.msra.mxu1 %v3362_v28  ;;  %v4253_v28 = vld [vmem:[%s6457_s3 + $0x44] sm:$0xf]  ;;  %v3468_v46 = vor.u32 %v4266_v39, %v3467_v38  ;;  %v3590_v38 = vor.u32 %v4386_v32, %v3589_v31  ;;  %v3549_v39 = vld [vmem:[%s6458_s4 + $0x110] sm:$0xf]  ;;  %v4368_v32 = vld [vmem:[%s6458_s4 + $0xd4] sm:$0xf0] }
  0x78   : > { %1283 = vmatpush.bf16.msrb.mxu3 %v3330_v23  ;;  %1311 = vmatpush.bf16.msra.mxu2 %v3334_v29  ;;  %v4268_v23 = vld [vmem:[%s6457_s3 + $0xb4] sm:$0xf0]  ;;  %v3421_v29 = vld [vmem:[%s6457_s3 + $0x48] sm:$0xf0]  ;;  %v3517_v31 = vld [vmem:[%s6458_s4 + $0xd0] sm:$0xf] }
  0x79   : > { %v3476_v33 = vor.u32 %v4268_v23, %v3475_v22  ;;  %v3424_v37 = vor.u32 %v4253_v28, %v3421_v29  ;;  %v4378_v22 = vld [vmem:[%s6458_s4 + $0x124] sm:$0xf0]  ;;  %v4387_v28 = vld [vmem:[%s6458_s4 + $0x174] sm:$0xf]  ;;  %v3570_v29 = vor.u32 %v4379_v18, %v3567_v19  ;;  %v3525_v18 = vld [vmem:[%s6458_s4 + $0xe0] sm:$0xf] }
  0x7a   : > { %1330 = vmatpush.bf16.msrb.mxu0 %v3358_v56  ;;  %v3405_v56 = vld [vmem:[%s6457_s3 + $0x28] sm:$0xf0]  ;;  %v4370_v19 = vld [vmem:[%s6458_s4 + $0xe4] sm:$0xf0] }
  0x7b   : > { %1302 = vmatpush.bf16.msra.mxu1 %v3354_v42  ;;  %v3413_v42 = vld [vmem:[%s6457_s3 + $0x38] sm:$0xf0]  ;;  %v3408_v63 = vor.u32 %v4249_v55, %v3405_v56  ;;  %v4383_v55 = vld [vmem:[%s6458_s4 + $0x154] sm:$0xf] }
  0x7c   : > { %1284 = vmatpush.bf16.msrb.mxu3 %v3322_v36  ;;  %1312 = vmatpush.bf16.msra.mxu2 %v3326_v43  ;;  %v3294_v36 = vor.u32 %v4341_v25, %v3291_v27  ;;  %v3480_v43 = vor.u32 %v4267_v34, %v3477_v35  ;;  %v3416_v51 = vor.u32 %v4251_v41, %v3413_v42  ;;  %v3389_v27 = vld [vmem:[%s6457_s3 + $0x8] sm:$0xf0]  ;;  %v4377_v34 = vld [vmem:[%s6458_s4 + $0x124] sm:$0xf]  ;;  %v3583_v56 = vld [vmem:[%s6458_s4 + $0x158] sm:$0xf0] }
  0x7d   : > { %3384 = vmatmul.msk.bf16.vlgmr.msrb.gmra.mxu0 %vm520_vm0, %v4784_v49  ;;  %v3559_v35 = vld [vmem:[%s6458_s4 + $0x128] sm:$0xf0]  ;;  %v4385_v41 = vld [vmem:[%s6458_s4 + $0x164] sm:$0xf]  ;;  %v3586_v1 = vor.u32 %v4383_v55, %v3583_v56 }
  0x7e   : > { %1485 = vmatpush.bf16.msra.mxu0 %v3448_v60  ;;  %3383 = vmatmul.msk.bf16.vlgmr.msra.gmra.mxu1 %vm520_vm0, %v4784_v49  ;;  %v3562_v42 = vor.u32 %v4377_v34, %v3559_v35  ;;  %v4367_v35 = vld [vmem:[%s6458_s4 + $0xd4] sm:$0xf]  ;;  %v3641_v55 = vld [vmem:[%s6458_s4 + $0x48] sm:$0xf0] }
  0x7f   : > { %1457 = vmatpush.bf16.msrb.mxu1 %v3444_v47  ;;  %v4265_v47 = vld [vmem:[%s6457_s3 + $0xa4] sm:$0xf] }
  0x80   : > { %1285 = vmatpush.bf16.msrb.mxu3 %v3314_v53  ;;  %1313 = vmatpush.bf16.msra.mxu2 %v3318_v59  ;;  %v4264_v53 = vld [vmem:[%s6457_s3 + $0x94] sm:$0xf0]  ;;  %v3472_v57 = vor.u32 %v4265_v47, %v3469_v50  ;;  %v3551_v47 = vld [vmem:[%s6458_s4 + $0x118] sm:$0xf0] }
  0x81   : > { %v4248_v59 = vld [vmem:[%s6457_s3 + $0x14] sm:$0xf0]  ;;  %v3460_v60 = vor.u32 %v4264_v53, %v3459_v52  ;;  %v3582_v53 = vor.u32 %v4384_v45, %v3581_v44  ;;  %v4366_v44 = vld [vmem:[%s6458_s4 + $0xc4] sm:$0xf0] }
  0x82   : > { %1486 = vmatpush.bf16.msra.mxu0 %v3440_v9  ;;  %v3396_v3 = vor.u32 %v4248_v59, %v3395_v58  ;;  %v3387_v9 = vld [vmem:[%s6457_s3] sm:$0xf]  ;;  %v4382_v59 = vld [vmem:[%s6458_s4 + $0x144] sm:$0xf0] }
  0x83   : > { %1458 = vmatpush.bf16.msrb.mxu1 %v3436_v62  ;;  %v3461_v62 = vld [vmem:[%s6457_s3 + $0x98] sm:$0xf0]  ;;  %v3573_v58 = vld [vmem:[%s6458_s4 + $0x140] sm:$0xf] }
  0x84   : > { %1286 = vmatpush.bf16.msrb.mxu3 %v3306_v2  ;;  %1314 = vmatpush.bf16.msra.mxu2 %v3310_v8  ;;  %v3565_v2 = vld [vmem:[%s6458_s4 + $0x130] sm:$0xf]  ;;  %v3464_v8 = vor.u32 %v4263_v61, %v3461_v62  ;;  %v3543_v61 = vld [vmem:[%s6458_s4 + $0x108] sm:$0xf0] }
  0x85   : > { %v3566_v16 = vor.u32 %v4380_v4, %v3565_v2  ;;  %v3663_v62 = vld [vmem:[%s6458_s4 + $0x70] sm:$0xf]  ;;  %v3574_v2 = vor.u32 %v4382_v59, %v3573_v58  ;;  %v4372_v4 = vld [vmem:[%s6458_s4 + $0xf4] sm:$0xf0] }
  0x86   : > { %1487 = vmatpush.bf16.msra.mxu0 %v3432_v21  ;;  %v3557_v21 = vld [vmem:[%s6458_s4 + $0x120] sm:$0xf]  ;;  %v4276_v58 = vld [vmem:[%s6458_s4 + $0x34] sm:$0xf0] }
  0x87   : > { %1459 = vmatpush.bf16.msrb.mxu1 %v3428_v11  ;;  %v4261_v11 = vld [vmem:[%s6457_s3 + $0x84] sm:$0xf] }
  0x88   : > { %1287 = vmatpush.bf16.msrb.mxu3 %v3298_v15  ;;  %1315 = vmatpush.bf16.msra.mxu2 %v3302_v20  ;;  %v4388_v15 = vld [vmem:[%s6458_s4 + $0x174] sm:$0xf0]  ;;  %v3388_v20 = vor.u32 %v4246_v10, %v3387_v9  ;;  %v3456_v23 = vor.u32 %v4261_v11, %v3453_v13  ;;  %v3575_v9 = vld [vmem:[%s6458_s4 + $0x148] sm:$0xf0]  ;;  %v4371_v10 = vld [vmem:[%s6458_s4 + $0xf4] sm:$0xf] }
  0x89   : > { %v3598_v25 = vor.u32 %v4388_v15, %v3597_v14  ;;  %v3535_v11 = vld [vmem:[%s6458_s4 + $0xf8] sm:$0xf0]  ;;  %v3655_v15 = vld [vmem:[%s6458_s4 + $0x60] sm:$0xf] }
  0x8a   : > { %1488 = vmatpush.bf16.msra.mxu0 %v3424_v37  ;;  %v3665_v13 = vld [vmem:[%s6458_s4 + $0x78] sm:$0xf0] }
  0x8b   : > { %1460 = vmatpush.bf16.msrb.mxu1 %v3420_v26  ;;  %v4245_v26 = vld [vmem:[%s6457_s3 + $0x4] sm:$0xf] }
  0x8c   : > { %1288 = vmatpush.bf16.msrb.mxu3 %v3290_v30  ;;  %1316 = vmatpush.bf16.msra.mxu2 %v3294_v36  ;;  %v3599_v30 = vld [vmem:[%s6458_s4 + $0x178] sm:$0xf0]  ;;  %v3392_v36 = vor.u32 %v4245_v26, %v3389_v27  ;;  %v4281_v26 = vld [vmem:[%s6458_s4 + $0x64] sm:$0xf]  ;;  %v3657_v27 = vld [vmem:[%s6458_s4 + $0x68] sm:$0xf0] }
  0x8d   : > { %v3602_v37 = vor.u32 %v4387_v28, %v3599_v30  ;;  %v3526_v28 = vor.u32 %v4370_v19, %v3525_v18  ;;  %v4280_v30 = vld [vmem:[%s6458_s4 + $0x54] sm:$0xf0]  ;;  %v3660_v34 = vor.u32 %v4281_v26, %v3657_v27  ;;  %v3625_v18 = vld [vmem:[%s6458_s4 + $0x28] sm:$0xf0]  ;;  %v4287_v26 = vld [vmem:[%s6458_s4 + $0x94] sm:$0xf] }
  0x8e   : > { %1489 = vmatpush.bf16.msra.mxu0 %v3416_v51  ;;  %v3541_v51 = vld [vmem:[%s6458_s4 + $0x100] sm:$0xf]  ;;  %v3681_v27 = vld [vmem:[%s6458_s4 + $0x98] sm:$0xf0] }
  0x8f   : > { %1289 = vmatmul.bf16.vlgmr.msrb.gmra.mxu3 %v4822_v5  ;;  %1461 = vmatpush.bf16.msrb.mxu1 %v3412_v40  ;;  %v4376_v40 = vld [vmem:[%s6458_s4 + $0x114] sm:$0xf0] }
  0x90   : > { %1475 = vmatpush.bf16.msra.mxu3 %v3476_v33  ;;  %1503 = vmatpush.bf16.msrb.mxu2 %v3480_v43  ;;  %v3558_v33 = vor.u32 %v4378_v22, %v3557_v21  ;;  %v3591_v43 = vld [vmem:[%s6458_s4 + $0x168] sm:$0xf0]  ;;  %v3550_v50 = vor.u32 %v4376_v40, %v3549_v39  ;;  %v4369_v22 = vld [vmem:[%s6458_s4 + $0xe4] sm:$0xf]  ;;  %v3649_v39 = vld [vmem:[%s6458_s4 + $0x58] sm:$0xf0]  ;;  %v3518_v40 = vor.u32 %v4368_v32, %v3517_v31 }
  0x91   : > { %1317 = vmatmul.bf16.vlgmr.msra.gmra.mxu2 %v4822_v5  ;;  %v3594_v52 = vor.u32 %v4385_v41, %v3591_v43  ;;  %v3639_v41 = vld [vmem:[%s6458_s4 + $0x40] sm:$0xf]  ;;  %v3785_v31 = vld [vmem:[%s6455_s1 + $0x1f0] sm:$0xf] }
  0x92   : > { %1490 = vmatpush.bf16.msra.mxu0 %v3408_v63  ;;  %v4284_v63 = vld [vmem:[%s6458_s4 + $0x74] sm:$0xf0]  ;;  %v3509_v43 = vld [vmem:[%s6458_s4 + $0xc0] sm:$0xf] }
  0x93   : > { %1462 = vmatpush.bf16.msrb.mxu1 %v3404_v54  ;;  %v4374_v54 = vld [vmem:[%s6458_s4 + $0x104] sm:$0xf0]  ;;  %v3664_v7 = vor.u32 %v4284_v63, %v3663_v62  ;;  %v3510_v56 = vor.u32 %v4366_v44, %v3509_v43  ;;  %v3673_v43 = vld [vmem:[%s6458_s4 + $0x88] sm:$0xf0]  ;;  %v3817_v44 = vld [vmem:[%s6455_s1 + $0x230] sm:$0xf] }
  0x94   : > { %1476 = vmatpush.bf16.msra.mxu3 %v3468_v46  ;;  %1504 = vmatpush.bf16.msrb.mxu2 %v3472_v57  ;;  %v4375_v46 = vld [vmem:[%s6458_s4 + $0x114] sm:$0xf]  ;;  %v3542_v0 = vor.u32 %v4374_v54, %v3541_v51  ;;  %v4365_v51 = vld [vmem:[%s6458_s4 + $0xc4] sm:$0xf] }
  0x95   : > { %v3554_v57 = vor.u32 %v4375_v46, %v3551_v47  ;;  %v3695_v47 = vld [vmem:[%s6458_s4 + $0xb0] sm:$0xf]  ;;  %v4277_v54 = vld [vmem:[%s6458_s4 + $0x44] sm:$0xf] }
  0x96   : > { %1491 = vmatpush.bf16.msra.mxu0 %v3400_v17  ;;  %v3644_v63 = vor.u32 %v4277_v54, %v3641_v55  ;;  %v3777_v54 = vld [vmem:[%s6455_s1 + $0x1e0] sm:$0xf]  ;;  %v4402_v55 = vld [vmem:[%s6455_s1 + $0x1e4] sm:$0xf0] }
  0x97   : > { %1463 = vmatpush.bf16.msrb.mxu1 %v3396_v3  ;;  %v3533_v3 = vld [vmem:[%s6458_s4 + $0xf0] sm:$0xf] }
  0x98   : > { %1477 = vmatpush.bf16.msra.mxu3 %v3460_v60  ;;  %1505 = vmatpush.bf16.msrb.mxu2 %v3464_v8  ;;  %v4373_v60 = vld [vmem:[%s6458_s4 + $0x104] sm:$0xf]  ;;  %v3534_v14 = vor.u32 %v4372_v4, %v3533_v3  ;;  %v4275_v3 = vld [vmem:[%s6458_s4 + $0x34] sm:$0xf]  ;;  %v3633_v4 = vld [vmem:[%s6458_s4 + $0x38] sm:$0xf0] }
  0x99   : > { %v3546_v6 = vor.u32 %v4373_v60, %v3543_v61  ;;  %v4381_v8 = vld [vmem:[%s6458_s4 + $0x144] sm:$0xf]  ;;  %v4291_v60 = vld [vmem:[%s6458_s4 + $0xb4] sm:$0xf]  ;;  %v3697_v61 = vld [vmem:[%s6458_s4 + $0xb8] sm:$0xf0] }
  0x9a   : > { %1492 = vmatpush.bf16.msra.mxu0 %v3392_v36  ;;  %v3578_v17 = vor.u32 %v4381_v8, %v3575_v9  ;;  %v4274_v8 = vld [vmem:[%s6458_s4 + $0x24] sm:$0xf0] }
  0x9b   : > { %1464 = vmatpush.bf16.msrb.mxu1 %v3388_v20  ;;  %v3538_v20 = vor.u32 %v4371_v10, %v3535_v11  ;;  %v4289_v10 = vld [vmem:[%s6458_s4 + $0xa4] sm:$0xf]  ;;  %v3689_v11 = vld [vmem:[%s6458_s4 + $0xa8] sm:$0xf0] }
  0x9c   : > { %1478 = vmatpush.bf16.msra.mxu3 %v3452_v12  ;;  %1506 = vmatpush.bf16.msrb.mxu2 %v3456_v23  ;;  %v4283_v12 = vld [vmem:[%s6458_s4 + $0x74] sm:$0xf] }
  0x9d   : > { %1493 = vmatmul.bf16.vlgmr.msra.gmra.mxu0 %v4782_v48  ;;  %v3668_v21 = vor.u32 %v4283_v12, %v3665_v13  ;;  %v3636_v12 = vor.u32 %v4275_v3, %v3633_v4  ;;  %v3679_v13 = vld [vmem:[%s6458_s4 + $0x90] sm:$0xf]  ;;  %v4401_v3 = vld [vmem:[%s6455_s1 + $0x1e4] sm:$0xf]  ;;  %v3779_v4 = vld [vmem:[%s6455_s1 + $0x1e8] sm:$0xf0] }
  0x9e   : > { %1465 = vmatmul.bf16.vlgmr.msrb.gmra.mxu1 %v4782_v48  ;;  %1704 = vmatpush.bf16.msrb.mxu0 %v3602_v37  ;;  %v3519_v37 = vld [vmem:[%s6458_s4 + $0xd8] sm:$0xf0] }
  0x9f   : > { %1676 = vmatpush.bf16.msra.mxu1 %v3598_v25  ;;  %3481 = vmatmul.msk.bf16.vlgmr.msra.gmra.mxu3 %vm520_vm0, %v4740_v24  ;;  %v3527_v25 = vld [vmem:[%s6458_s4 + $0xe8] sm:$0xf0]  ;;  %v3522_v45 = vor.u32 %v4367_v35, %v3519_v37  ;;  %v3617_v35 = vld [vmem:[%s6458_s4 + $0x18] sm:$0xf0]  ;;  %v3684_v37 = vor.u32 %v4287_v26, %v3681_v27  ;;  %v4398_v26 = vld [vmem:[%s6455_s1 + $0x1c4] sm:$0xf0] }
  0xa0   : > { %1658 = vmatpush.bf16.msrb.mxu3 %v3566_v16  ;;  %1686 = vmatpush.bf16.msra.mxu2 %v3570_v29  ;;  %v4282_v16 = vld [vmem:[%s6458_s4 + $0x64] sm:$0xf0]  ;;  %v3647_v29 = vld [vmem:[%s6458_s4 + $0x50] sm:$0xf] }
  0xa1   : > { %3482 = vmatmul.msk.bf16.vlgmr.msrb.gmra.mxu2 %vm520_vm0, %v4740_v24  ;;  %v3656_v23 = vor.u32 %v4282_v16, %v3655_v15  ;;  %v3648_v36 = vor.u32 %v4280_v30, %v3647_v29  ;;  %v3671_v30 = vld [vmem:[%s6458_s4 + $0x80] sm:$0xf] }
  0xa2   : > { %1705 = vmatpush.bf16.msrb.mxu0 %v3594_v52 }
  0xa3   : > { %1677 = vmatpush.bf16.msra.mxu1 %v3590_v38  ;;  %v4279_v38 = vld [vmem:[%s6458_s4 + $0x54] sm:$0xf] }
  0xa4   : > { %1659 = vmatpush.bf16.msrb.mxu3 %v3558_v33  ;;  %1687 = vmatpush.bf16.msra.mxu2 %v3562_v42  ;;  %v3530_v33 = vor.u32 %v4369_v22, %v3527_v25  ;;  %v4278_v42 = vld [vmem:[%s6458_s4 + $0x44] sm:$0xf0]  ;;  %v3652_v46 = vor.u32 %v4279_v38, %v3649_v39  ;;  %v4272_v22 = vld [vmem:[%s6458_s4 + $0x14] sm:$0xf0]  ;;  %v3607_v38 = vld [vmem:[%s6458_s4] sm:$0xf] }
  0xa5   : > { %v3640_v52 = vor.u32 %v4278_v42, %v3639_v41  ;;  %v4270_v39 = vld [vmem:[%s6458_s4 + $0x4] sm:$0xf0] }
  0xa6   : > { %1706 = vmatpush.bf16.msrb.mxu0 %v3586_v1  ;;  %v4290_v1 = vld [vmem:[%s6458_s4 + $0xa4] sm:$0xf0] }
  0xa7   : > { %1678 = vmatpush.bf16.msra.mxu1 %v3582_v53  ;;  %v3511_v53 = vld [vmem:[%s6458_s4 + $0xc8] sm:$0xf0] }
  0xa8   : > { %1660 = vmatpush.bf16.msrb.mxu3 %v3550_v50  ;;  %1688 = vmatpush.bf16.msra.mxu2 %v3554_v57  ;;  %v4292_v50 = vld [vmem:[%s6458_s4 + $0xb4] sm:$0xf0]  ;;  %v3631_v57 = vld [vmem:[%s6458_s4 + $0x30] sm:$0xf]  ;;  %v3514_v62 = vor.u32 %v4365_v51, %v3511_v53  ;;  %v3787_v51 = vld [vmem:[%s6455_s1 + $0x1f8] sm:$0xf0]  ;;  %v3608_v53 = vor.u32 %v4270_v39, %v3607_v38 }
  0xa9   : > { %v3696_v59 = vor.u32 %v4292_v50, %v3695_v47  ;;  %v4403_v50 = vld [vmem:[%s6455_s1 + $0x1f4] sm:$0xf] }
  0xaa   : > { %1707 = vmatpush.bf16.msrb.mxu0 %v3578_v17  ;;  %v4273_v17 = vld [vmem:[%s6458_s4 + $0x24] sm:$0xf] }
  0xab   : > { %1679 = vmatpush.bf16.msra.mxu1 %v3574_v2  ;;  %v3632_v2 = vor.u32 %v4276_v58, %v3631_v57  ;;  %v3628_v29 = vor.u32 %v4273_v17, %v3625_v18  ;;  %v4408_v17 = vld [vmem:[%s6455_s1 + $0x214] sm:$0xf0]  ;;  %v4399_v18 = vld [vmem:[%s6455_s1 + $0x1d4] sm:$0xf] }
  0xac   : > { %1661 = vmatpush.bf16.msrb.mxu3 %v3542_v0  ;;  %1689 = vmatpush.bf16.msra.mxu2 %v3546_v6  ;;  %v3687_v0 = vld [vmem:[%s6458_s4 + $0xa0] sm:$0xf]  ;;  %v3700_v6 = vor.u32 %v4291_v60, %v3697_v61  ;;  %v575_v15 = vpop.f32.mrf.mxu3  ;;  %v3609_v60 = vld [vmem:[%s6458_s4 + $0x8] sm:$0xf0]  ;;  %v4411_v61 = vld [vmem:[%s6455_s1 + $0x234] sm:$0xf] }
  0xad   : > { %3604 = vmatmul.msk.bf16.vlgmr.msrb.gmra.mxu0 %vm520_vm0, %v4784_v49  ;;  %v3688_v9 = vor.u32 %v4290_v1, %v3687_v0  ;;  %v533_v19 = vpop.f32.mrf.mxu0  ;;  %v3809_v0 = vld [vmem:[%s6455_s1 + $0x220] sm:$0xf]  ;;  %v4410_v1 = vld [vmem:[%s6455_s1 + $0x224] sm:$0xf0] }
  0xae   : > { %1862 = vmatpush.bf16.msra.mxu0 %v3668_v21  ;;  %3603 = vmatmul.msk.bf16.vlgmr.msra.gmra.mxu1 %vm520_vm0, %v4784_v49  ;;  %v547_v49 = vpop.f32.mrf.mxu1  ;;  %v3615_v21 = vld [vmem:[%s6458_s4 + $0x10] sm:$0xf] }
  0xaf   : > { %1834 = vmatpush.bf16.msrb.mxu1 %v3664_v7  ;;  %v3623_v7 = vld [vmem:[%s6458_s4 + $0x20] sm:$0xf]  ;;  %v3616_v32 = vor.u32 %v4272_v22, %v3615_v21 }
  0xb0   : > { %1662 = vmatpush.bf16.msrb.mxu3 %v3534_v14  ;;  %1690 = vmatpush.bf16.msra.mxu2 %v3538_v20  ;;  %v4288_v14 = vld [vmem:[%s6458_s4 + $0x94] sm:$0xf0]  ;;  %v3624_v16 = vor.u32 %v4274_v8, %v3623_v7  ;;  %v3692_v20 = vor.u32 %v4289_v10, %v3689_v11  ;;  %v3769_v10 = vld [vmem:[%s6455_s1 + $0x1d0] sm:$0xf]  ;;  %v3761_v22 = vld [vmem:[%s6455_s1 + $0x1c0] sm:$0xf] }
  0xb1   : > { %v3680_v25 = vor.u32 %v4288_v14, %v3679_v13  ;;  %v4400_v11 = vld [vmem:[%s6455_s1 + $0x1d4] sm:$0xf0]  ;;  %v4409_v13 = vld [vmem:[%s6455_s1 + $0x224] sm:$0xf]  ;;  %v3782_v14 = vor.u32 %v4401_v3, %v3779_v4  ;;  %v3762_v38 = vor.u32 %v4398_v26, %v3761_v22  ;;  %v3747_v4 = vld [vmem:[%s6455_s1 + $0x1a8] sm:$0xf0] }
  0xb2   : > { %1863 = vmatpush.bf16.msra.mxu0 %v3660_v34  ;;  %v4271_v34 = vld [vmem:[%s6458_s4 + $0x14] sm:$0xf]  ;;  %v3770_v21 = vor.u32 %v4400_v11, %v3769_v10  ;;  %v4424_v10 = vld [vmem:[%s6456_s2 + $0x1d4] sm:$0xf0]  ;;  %v5935_v11 = vrot.slane %v4740_v24, 1 }
  0xb3   : > { %1835 = vmatpush.bf16.msrb.mxu1 %v3656_v23  ;;  %v548_v23 = vadd.f32 %v547_v49, %v533_v19  ;;  %v3620_v47 = vor.u32 %v4271_v34, %v3617_v35  ;;  %v3771_v19 = vld [vmem:[%s6455_s1 + $0x1d8] sm:$0xf0]  ;;  %v3763_v34 = vld [vmem:[%s6455_s1 + $0x1c8] sm:$0xf0]  ;;  %v3907_v35 = vld [vmem:[%s6456_s2 + $0x1f0] sm:$0xf] }
  0xb4   : > { %1663 = vmatpush.bf16.msrb.mxu3 %v3526_v28  ;;  %1691 = vmatpush.bf16.msra.mxu2 %v3530_v33  ;;  %v4404_v33 = vld [vmem:[%s6455_s1 + $0x1f4] sm:$0xf0] }
  0xb6   : > { %1864 = vmatpush.bf16.msra.mxu0 %v3652_v46  ;;  %v549_v28 = vpop.f32.mrf.mxu1  ;;  %v3786_v46 = vor.u32 %v4404_v33, %v3785_v31  ;;  %v3793_v31 = vld [vmem:[%s6455_s1 + $0x200] sm:$0xf] }
  0xb7   : > { %1836 = vmatpush.bf16.msrb.mxu1 %v3648_v36  ;;  %v561_v36 = vpop.f32.mrf.mxu2 }
  0xb8   : > { %1664 = vmatpush.bf16.msrb.mxu3 %v3518_v40  ;;  %1692 = vmatpush.bf16.msra.mxu2 %v3522_v45  ;;  %v4285_v40 = vld [vmem:[%s6458_s4 + $0x84] sm:$0xf]  ;;  %v5765_v41 = vadd.f32 %v575_v15, %v561_v36  ;;  %v4412_v45 = vld [vmem:[%s6455_s1 + $0x234] sm:$0xf0]  ;;  %v3811_v15 = vld [vmem:[%s6455_s1 + $0x228] sm:$0xf0] }
  0xb9   : > { %v3676_v57 = vor.u32 %v4285_v40, %v3673_v43  ;;  %v3818_v58 = vor.u32 %v4412_v45, %v3817_v44  ;;  %v4428_v36 = vld [vmem:[%s6456_s2 + $0x1f4] sm:$0xf0] }
  0xba   : > { %1865 = vmatpush.bf16.msra.mxu0 %v3644_v63  ;;  %v3819_v63 = vld [vmem:[%s6455_s1 + $0x238] sm:$0xf0]  ;;  %v4396_v43 = vld [vmem:[%s6455_s1 + $0x1b4] sm:$0xf0] }
  0xbb   : > { %1837 = vmatpush.bf16.msrb.mxu1 %v3640_v52  ;;  %v5782_v52 = vpop.f32.mrf.mxu3 }
  0xbc   : > { %1665 = vmatpush.bf16.msrb.mxu3 %v3510_v56  ;;  %1693 = vmatpush.bf16.msra.mxu2 %v3514_v62  ;;  %v535_v56 = vpop.f32.mrf.mxu0  ;;  %v3790_v62 = vor.u32 %v4403_v50, %v3787_v51  ;;  %v3795_v50 = vld [vmem:[%s6455_s1 + $0x208] sm:$0xf0]  ;;  %v4395_v51 = vld [vmem:[%s6455_s1 + $0x1b4] sm:$0xf] }
  0xbd   : > { %v550_v49 = vadd.f32 %v549_v28, %v535_v56  ;;  %v4407_v28 = vld [vmem:[%s6455_s1 + $0x214] sm:$0xf] }
  0xbe   : > { %1866 = vmatpush.bf16.msra.mxu0 %v3636_v12  ;;  %v3810_v12 = vor.u32 %v4410_v1, %v3809_v0  ;;  %v4393_v1 = vld [vmem:[%s6455_s1 + $0x1a4] sm:$0xf] }
  0xbf   : > { %1666 = vmatmul.bf16.vlgmr.msrb.gmra.mxu3 %v4822_v5  ;;  %1838 = vmatpush.bf16.msrb.mxu1 %v3632_v2  ;;  %v3778_v2 = vor.u32 %v4402_v55, %v3777_v54  ;;  %v5864_v33 = vpop.f32.mrf.mxu2  ;;  %v4427_v54 = vld [vmem:[%s6456_s2 + $0x1f4] sm:$0xf]  ;;  %v3909_v55 = vld [vmem:[%s6456_s2 + $0x1f8] sm:$0xf0] }
  0xc0   : > { %1852 = vmatpush.bf16.msra.mxu3 %v3696_v59  ;;  %1880 = vmatpush.bf16.msrb.mxu2 %v3700_v6  ;;  %v4269_v59 = vld [vmem:[%s6458_s4 + $0x4] sm:$0xf]  ;;  %v712_v6 = vpop.f32.mrf.mxu1  ;;  %v3912_v0 = vor.u32 %v4427_v54, %v3909_v55  ;;  %v3931_v55 = vld [vmem:[%s6456_s2 + $0x220] sm:$0xf] }
  0xc1   : > { %1694 = vmatmul.bf16.vlgmr.msra.gmra.mxu2 %v4822_v5  ;;  %v4286_v5 = vld [vmem:[%s6458_s4 + $0x84] sm:$0xf0]  ;;  %v3612_v7 = vor.u32 %v4269_v59, %v3609_v60  ;;  %v713_v8 = vadd.f32 %v712_v6, %v548_v23  ;;  %v4425_v6 = vld [vmem:[%s6456_s2 + $0x1e4] sm:$0xf] }
  0xc2   : > { %v3672_v42 = vor.u32 %v4286_v5, %v3671_v30  ;;  %1867 = vmatpush.bf16.msra.mxu0 %v3628_v29  ;;  %v3803_v29 = vld [vmem:[%s6455_s1 + $0x218] sm:$0xf0]  ;;  %v3774_v30 = vor.u32 %v4399_v18, %v3771_v19  ;;  %v4397_v5 = vld [vmem:[%s6455_s1 + $0x1c4] sm:$0xf]  ;;  %v4426_v59 = vld [vmem:[%s6456_s2 + $0x1e4] sm:$0xf0] }
  0xc3   : > { %1839 = vmatpush.bf16.msrb.mxu1 %v3624_v16  ;;  %v3801_v16 = vld [vmem:[%s6455_s1 + $0x210] sm:$0xf]  ;;  %v3806_v40 = vor.u32 %v4407_v28, %v3803_v29  ;;  %v3766_v45 = vor.u32 %v4397_v5, %v3763_v34  ;;  %v4422_v28 = vld [vmem:[%s6456_s2 + $0x1c4] sm:$0xf0] }
  0xc4   : > { %1853 = vmatpush.bf16.msra.mxu3 %v3688_v9  ;;  %1881 = vmatpush.bf16.msrb.mxu2 %v3692_v20  ;;  %v3822_v9 = vor.u32 %v4411_v61, %v3819_v63  ;;  %v726_v20 = vpop.f32.mrf.mxu3  ;;  %v3802_v27 = vor.u32 %v4408_v17, %v3801_v16  ;;  %v3750_v17 = vor.u32 %v4393_v1, %v3747_v4  ;;  %v4390_v5 = vld [vmem:[%s6455_s1 + $0x184] sm:$0xf0]  ;;  %v3939_v34 = vld [vmem:[%s6456_s2 + $0x230] sm:$0xf]  ;;  %v4433_v1 = vld [vmem:[%s6456_s2 + $0x224] sm:$0xf] }
  0xc5   : > { %v5844_v23 = vadd.f32 %v726_v20, %v713_v8  ;;  %v3739_v20 = vld [vmem:[%s6455_s1 + $0x198] sm:$0xf0]  ;;  %v3867_v4 = vld [vmem:[%s6456_s2 + $0x1a0] sm:$0xf] }
  0xc6   : > { %1868 = vmatpush.bf16.msra.mxu0 %v3620_v47  ;;  %v4405_v47 = vld [vmem:[%s6455_s1 + $0x204] sm:$0xf] }
  0xc7   : > { %1840 = vmatpush.bf16.msrb.mxu1 %v3616_v32  ;;  %v4406_v32 = vld [vmem:[%s6455_s1 + $0x204] sm:$0xf0]  ;;  %v3798_v61 = vor.u32 %v4405_v47, %v3795_v50  ;;  %v754_v3 = vpop.f32.mrf.mxu2 }
  0xc8   : > { %1854 = vmatpush.bf16.msra.mxu3 %v3680_v25  ;;  %1882 = vmatpush.bf16.msrb.mxu2 %v3684_v37  ;;  %v3814_v25 = vor.u32 %v4409_v13, %v3811_v15  ;;  %v714_v37 = vpop.f32.mrf.mxu1  ;;  %v3794_v44 = vor.u32 %v4406_v32, %v3793_v31  ;;  %v3737_v13 = vld [vmem:[%s6455_s1 + $0x190] sm:$0xf] }
  0xc9   : > { %v715_v39 = vadd.f32 %v714_v37, %v550_v49  ;;  %v3745_v49 = vld [vmem:[%s6455_s1 + $0x1a0] sm:$0xf] }
  0xca   : > { %1869 = vmatpush.bf16.msra.mxu0 %v3612_v7  ;;  %v3901_v7 = vld [vmem:[%s6456_s2 + $0x1e8] sm:$0xf0] }
  0xcb   : > { %1841 = vmatpush.bf16.msrb.mxu1 %v3608_v53  ;;  %v3755_v53 = vld [vmem:[%s6455_s1 + $0x1b8] sm:$0xf0]  ;;  %v3904_v18 = vor.u32 %v4425_v6, %v3901_v7  ;;  %v4418_v6 = vld [vmem:[%s6456_s2 + $0x1a4] sm:$0xf0] }
  0xcc   : > { %1855 = vmatpush.bf16.msra.mxu3 %v3672_v42  ;;  %1883 = vmatpush.bf16.msrb.mxu2 %v3676_v57  ;;  %v3753_v42 = vld [vmem:[%s6455_s1 + $0x1b0] sm:$0xf]  ;;  %v728_v56 = vpop.f32.mrf.mxu3  ;;  %v3758_v63 = vor.u32 %v4395_v51, %v3755_v53 }
  0xcd   : > { %1870 = vmatmul.bf16.vlgmr.msra.gmra.mxu0 %v4782_v48  ;;  %v3754_v57 = vor.u32 %v4396_v43, %v3753_v42  ;;  %v5908_v60 = vadd.f32 %v728_v56, %v715_v39  ;;  %v4421_v39 = vld [vmem:[%s6456_s2 + $0x1c4] sm:$0xf]  ;;  %v578_v42 = vadd.f32 %v5782_v52, %v5864_v33  ;;  %v3875_v51 = vld [vmem:[%s6456_s2 + $0x1b0] sm:$0xf]  ;;  %v4420_v52 = vld [vmem:[%s6456_s2 + $0x1b4] sm:$0xf0] }
  0xce   : > { %1842 = vmatmul.bf16.vlgmr.msrb.gmra.mxu1 %v4782_v48  ;;  %2087 = vmatpush.bf16.msrb.mxu0 %v3822_v9  ;;  %v3891_v9 = vld [vmem:[%s6456_s2 + $0x1d0] sm:$0xf]  ;;  %v4434_v56 = vld [vmem:[%s6456_s2 + $0x224] sm:$0xf0] }
  0xcf   : > { %2059 = vmatpush.bf16.msra.mxu1 %v3818_v58  ;;  %3701 = vmatmul.msk.bf16.vlgmr.msra.gmra.mxu3 %vm520_vm0, %v4740_v24  ;;  %v3899_v58 = vld [vmem:[%s6456_s2 + $0x1e0] sm:$0xf]  ;;  %v3892_v19 = vor.u32 %v4424_v10, %v3891_v9  ;;  %v756_v50 = vpop.f32.mrf.mxu2  ;;  %v4432_v9 = vld [vmem:[%s6456_s2 + $0x214] sm:$0xf0] }
  0xd0   : > { %2041 = vmatpush.bf16.msrb.mxu3 %v3786_v46  ;;  %2069 = vmatpush.bf16.msra.mxu2 %v3790_v62  ;;  %v3908_v46 = vor.u32 %v4428_v36, %v3907_v35  ;;  %v4394_v62 = vld [vmem:[%s6455_s1 + $0x1a4] sm:$0xf0]  ;;  %v927_v15 = vpop.f32.mrf.mxu1  ;;  %v4436_v35 = vld [vmem:[%s6456_s2 + $0x234] sm:$0xf0]  ;;  %v4389_v36 = vld [vmem:[%s6455_s1 + $0x184] sm:$0xf] }
  0xd1   : > { %3702 = vmatmul.msk.bf16.vlgmr.msrb.gmra.mxu2 %vm520_vm0, %v4740_v24  ;;  %v3746_v8 = vor.u32 %v4394_v62, %v3745_v49  ;;  %v4391_v24 = vld [vmem:[%s6455_s1 + $0x194] sm:$0xf]  ;;  %v3940_v47 = vor.u32 %v4436_v35, %v3939_v34  ;;  %v3877_v49 = vld [vmem:[%s6456_s2 + $0x1b8] sm:$0xf0]  ;;  %v3917_v34 = vld [vmem:[%s6456_s2 + $0x208] sm:$0xf0] }
  0xd2   : > { %2088 = vmatpush.bf16.msrb.mxu0 %v3814_v25  ;;  %v3742_v31 = vor.u32 %v4391_v24, %v3739_v20  ;;  %v4416_v24 = vld [vmem:[%s6456_s2 + $0x194] sm:$0xf0]  ;;  %v3915_v20 = vld [vmem:[%s6456_s2 + $0x200] sm:$0xf] }
  0xd3   : > { %2060 = vmatpush.bf16.msra.mxu1 %v3810_v12  ;;  %v740_v12 = vpop.f32.mrf.mxu0  ;;  %v3851_v35 = vld [vmem:[%s6456_s2 + $0x180] sm:$0xf] }
  0xd4   : > { %2042 = vmatpush.bf16.msrb.mxu3 %v3778_v2  ;;  %2070 = vmatpush.bf16.msra.mxu2 %v3782_v14  ;;  %v3900_v2 = vor.u32 %v4426_v59, %v3899_v58  ;;  %v4392_v14 = vld [vmem:[%s6455_s1 + $0x194] sm:$0xf0]  ;;  %v741_v16 = vadd.f32 %v740_v12, %v5765_v41  ;;  %v3893_v41 = vld [vmem:[%s6456_s2 + $0x1d8] sm:$0xf0]  ;;  %v913_v25 = vpop.f32.mrf.mxu3  ;;  %v6015_v58 = vrot.slane %v4782_v48, 1 }
  0xd5   : > { %v3738_v26 = vor.u32 %v4392_v14, %v3737_v13  ;;  %v5966_v29 = vadd.f32 %v927_v15, %v913_v25  ;;  %v3933_v48 = vld [vmem:[%s6456_s2 + $0x228] sm:$0xf0]  ;;  %v4417_v12 = vld [vmem:[%s6456_s2 + $0x1a4] sm:$0xf]  ;;  %v3868_v14 = vor.u32 %v4418_v6, %v3867_v4  ;;  %v4431_v15 = vld [vmem:[%s6456_s2 + $0x214] sm:$0xf] }
  0xd6   : > { %2089 = vmatpush.bf16.msrb.mxu0 %v3806_v40  ;;  %v5956_v22 = vadd.f32 %v754_v3, %v741_v16  ;;  %v3885_v40 = vld [vmem:[%s6456_s2 + $0x1c8] sm:$0xf0]  ;;  %v3936_v10 = vor.u32 %v4433_v1, %v3933_v48  ;;  %v3925_v16 = vld [vmem:[%s6456_s2 + $0x218] sm:$0xf0]  ;;  %v4448_v4 = vld [vmem:[%s6457_s3 + $0x1d4] sm:$0xf0] }
  0xd7   : > { %2061 = vmatpush.bf16.msra.mxu1 %v3802_v27  ;;  %v3883_v27 = vld [vmem:[%s6456_s2 + $0x1c0] sm:$0xf]  ;;  %v3888_v54 = vor.u32 %v4421_v39, %v3885_v40  ;;  %v3869_v13 = vld [vmem:[%s6456_s2 + $0x1a8] sm:$0xf0]  ;;  %v3928_v25 = vor.u32 %v4431_v15, %v3925_v16  ;;  %v4451_v39 = vld [vmem:[%s6457_s3 + $0x1f4] sm:$0xf] }
  0xd8   : > { %2043 = vmatpush.bf16.msrb.mxu3 %v3770_v21  ;;  %2071 = vmatpush.bf16.msra.mxu2 %v3774_v30  ;;  %v4423_v21 = vld [vmem:[%s6456_s2 + $0x1d4] sm:$0xf]  ;;  %v3729_v30 = vld [vmem:[%s6455_s1 + $0x180] sm:$0xf]  ;;  %v3884_v37 = vor.u32 %v4422_v28, %v3883_v27  ;;  %v3861_v28 = vld [vmem:[%s6456_s2 + $0x198] sm:$0xf0] }
  0xd9   : > { %v3896_v32 = vor.u32 %v4423_v21, %v3893_v41  ;;  %v3730_v43 = vor.u32 %v4390_v5, %v3729_v30  ;;  %v4430_v21 = vld [vmem:[%s6456_s2 + $0x204] sm:$0xf0]  ;;  %v4029_v41 = vld [vmem:[%s6457_s3 + $0x1f0] sm:$0xf]  ;;  %v4415_v27 = vld [vmem:[%s6456_s2 + $0x194] sm:$0xf] }
  0xda   : > { %2090 = vmatpush.bf16.msrb.mxu0 %v3798_v61  ;;  %v4419_v61 = vld [vmem:[%s6456_s2 + $0x1b4] sm:$0xf]  ;;  %v4031_v40 = vld [vmem:[%s6457_s3 + $0x1f8] sm:$0xf0] }
  0xdb   : > { %2062 = vmatpush.bf16.msra.mxu1 %v3794_v44  ;;  %v4435_v44 = vld [vmem:[%s6456_s2 + $0x234] sm:$0xf]  ;;  %v3880_v7 = vor.u32 %v4419_v61, %v3877_v49 }
  0xdc   : > { %2044 = vmatpush.bf16.msrb.mxu3 %v3762_v38  ;;  %2072 = vmatpush.bf16.msra.mxu2 %v3766_v45  ;;  %v3731_v38 = vld [vmem:[%s6455_s1 + $0x188] sm:$0xf0]  ;;  %v3941_v45 = vld [vmem:[%s6456_s2 + $0x238] sm:$0xf0]  ;;  %v4447_v15 = vld [vmem:[%s6457_s3 + $0x1d4] sm:$0xf] }
  0xdd   : > { %3824 = vmatmul.msk.bf16.vlgmr.msrb.gmra.mxu0 %vm520_vm0, %v5935_v11  ;;  %v3734_v53 = vor.u32 %v4389_v36, %v3731_v38  ;;  %v3944_v59 = vor.u32 %v4435_v44, %v3941_v45  ;;  %v4414_v38 = vld [vmem:[%s6456_s2 + $0x184] sm:$0xf0]  ;;  %v4021_v44 = vld [vmem:[%s6457_s3 + $0x1e0] sm:$0xf]  ;;  %v4061_v45 = vld [vmem:[%s6457_s3 + $0x230] sm:$0xf] }
  0xde   : > { %2274 = vmatpush.bf16.msra.mxu0 %v3912_v0  ;;  %3823 = vmatmul.msk.bf16.vlgmr.msra.gmra.mxu1 %vm520_vm0, %v5935_v11  ;;  %v3876_v0 = vor.u32 %v4420_v52, %v3875_v51  ;;  %v4413_v51 = vld [vmem:[%s6456_s2 + $0x184] sm:$0xf]  ;;  %v3853_v52 = vld [vmem:[%s6456_s2 + $0x188] sm:$0xf0] }
  0xdf   : > { %2246 = vmatpush.bf16.msrb.mxu1 %v3908_v46  ;;  %v742_v46 = vpop.f32.mrf.mxu0  ;;  %v3856_v49 = vor.u32 %v4413_v51, %v3853_v52 }
  0xe0   : > { %2045 = vmatpush.bf16.msrb.mxu3 %v3754_v57  ;;  %2073 = vmatpush.bf16.msra.mxu2 %v3758_v63  ;;  %v743_v33 = vadd.f32 %v742_v46, %v578_v42  ;;  %v929_v57 = vpop.f32.mrf.mxu1  ;;  %v915_v63 = vpop.f32.mrf.mxu3  ;;  %v4460_v46 = vld [vmem:[%s6457_s3 + $0x234] sm:$0xf0] }
  0xe1   : > { %v6031_v3 = vadd.f32 %v929_v57, %v915_v63  ;;  %v4449_v57 = vld [vmem:[%s6457_s3 + $0x1e4] sm:$0xf]  ;;  %v4053_v63 = vld [vmem:[%s6457_s3 + $0x220] sm:$0xf] }
  0xe2   : > { %2275 = vmatpush.bf16.msra.mxu0 %v3904_v18  ;;  %v6023_v62 = vadd.f32 %v756_v50, %v743_v33  ;;  %v3859_v18 = vld [vmem:[%s6456_s2 + $0x190] sm:$0xf]  ;;  %v941_v30 = vpop.f32.mrf.mxu2  ;;  %v4450_v50 = vld [vmem:[%s6457_s3 + $0x1e4] sm:$0xf0]  ;;  %v3852_v33 = vor.u32 %v4414_v38, %v3851_v35  ;;  %v4444_v38 = vld [vmem:[%s6457_s3 + $0x1b4] sm:$0xf0] }
  0xe3   : > { %2247 = vmatpush.bf16.msrb.mxu1 %v3900_v2  ;;  %v3932_v2 = vor.u32 %v4434_v56, %v3931_v55  ;;  %v4063_v55 = vld [vmem:[%s6457_s3 + $0x238] sm:$0xf0]  ;;  %v4062_v56 = vor.u32 %v4460_v46, %v4061_v45  ;;  %v4022_v61 = vor.u32 %v4450_v50, %v4021_v44  ;;  %v4454_v35 = vld [vmem:[%s6457_s3 + $0x204] sm:$0xf0]  ;;  %v4453_v45 = vld [vmem:[%s6457_s3 + $0x204] sm:$0xf] }
  0xe4   : > { %2046 = vmatpush.bf16.msrb.mxu3 %v3746_v8  ;;  %2074 = vmatpush.bf16.msra.mxu2 %v3750_v17  ;;  %v3923_v8 = vld [vmem:[%s6456_s2 + $0x210] sm:$0xf]  ;;  %v4039_v46 = vld [vmem:[%s6457_s3 + $0x208] sm:$0xf0] }
  0xe5   : > { %v3924_v17 = vor.u32 %v4432_v9, %v3923_v8 }
  0xe6   : > { %2276 = vmatpush.bf16.msra.mxu0 %v3896_v32  ;;  %v4429_v32 = vld [vmem:[%s6456_s2 + $0x204] sm:$0xf] }
  0xe7   : > { %2248 = vmatpush.bf16.msrb.mxu1 %v3892_v19  ;;  %v3872_v19 = vor.u32 %v4417_v12, %v3869_v13  ;;  %v4055_v12 = vld [vmem:[%s6457_s3 + $0x228] sm:$0xf0] }
  0xe8   : > { %2047 = vmatpush.bf16.msrb.mxu3 %v3738_v26  ;;  %2075 = vmatpush.bf16.msra.mxu2 %v3742_v31  ;;  %v4452_v26 = vld [vmem:[%s6457_s3 + $0x1f4] sm:$0xf0]  ;;  %v955_v5 = vpop.f32.mrf.mxu3  ;;  %v3860_v31 = vor.u32 %v4416_v24, %v3859_v18  ;;  %v4045_v18 = vld [vmem:[%s6457_s3 + $0x210] sm:$0xf] }
  0xe9   : > { %v956_v36 = vadd.f32 %v955_v5, %v941_v30  ;;  %v4030_v42 = vor.u32 %v4452_v26, %v4029_v41  ;;  %v4456_v24 = vld [vmem:[%s6457_s3 + $0x214] sm:$0xf0]  ;;  %v4446_v41 = vld [vmem:[%s6457_s3 + $0x1c4] sm:$0xf0]  ;;  %v4455_v26 = vld [vmem:[%s6457_s3 + $0x214] sm:$0xf] }
  0xea   : > { %2277 = vmatpush.bf16.msra.mxu0 %v3888_v54  ;;  %v4459_v54 = vld [vmem:[%s6457_s3 + $0x234] sm:$0xf]  ;;  %v1117_v16 = vpop.f32.mrf.mxu0  ;;  %v4445_v30 = vld [vmem:[%s6457_s3 + $0x1c4] sm:$0xf]  ;;  %v4007_v5 = vld [vmem:[%s6457_s3 + $0x1c8] sm:$0xf0] }
  0xeb   : > { %2249 = vmatpush.bf16.msrb.mxu1 %v3884_v37  ;;  %v3916_v37 = vor.u32 %v4430_v21, %v3915_v20  ;;  %v1089_v1 = vpop.f32.mrf.mxu1  ;;  %v4066_v48 = vor.u32 %v4459_v54, %v4063_v55  ;;  %v4005_v21 = vld [vmem:[%s6457_s3 + $0x1c0] sm:$0xf]  ;;  %v4010_v44 = vor.u32 %v4445_v30, %v4007_v5  ;;  %v4438_v30 = vld [vmem:[%s6457_s3 + $0x184] sm:$0xf0] }
  0xec   : > { %2048 = vmatpush.bf16.msrb.mxu3 %v3730_v43  ;;  %2076 = vmatpush.bf16.msra.mxu2 %v3734_v53  ;;  %v3864_v43 = vor.u32 %v4415_v27, %v3861_v28  ;;  %v4034_v53 = vor.u32 %v4451_v39, %v4031_v40  ;;  %v1090_v6 = vadd.f32 %v1089_v1, %v5966_v29  ;;  %v4015_v29 = vld [vmem:[%s6457_s3 + $0x1d8] sm:$0xf0]  ;;  %v4151_v39 = vld [vmem:[%s6458_s4 + $0x1f0] sm:$0xf]  ;;  %v4476_v40 = vld [vmem:[%s6458_s4 + $0x1f4] sm:$0xf0] }
  0xed   : > { %v4047_v27 = vld [vmem:[%s6457_s3 + $0x218] sm:$0xf0]  ;;  %v4046_v28 = vor.u32 %v4456_v24, %v4045_v18  ;;  %v4474_v1 = vld [vmem:[%s6458_s4 + $0x1e4] sm:$0xf0]  ;;  %v4439_v18 = vld [vmem:[%s6457_s3 + $0x194] sm:$0xf] }
  0xee   : > { %2278 = vmatpush.bf16.msra.mxu0 %v3880_v7  ;;  %v943_v7 = vpop.f32.mrf.mxu2  ;;  %v4127_v5 = vld [vmem:[%s6458_s4 + $0x1c0] sm:$0xf] }
  0xef   : > { %2049 = vmatmul.bf16.vlgmr.msrb.gmra.mxu3 %v6015_v58  ;;  %2250 = vmatpush.bf16.msrb.mxu1 %v3876_v0  ;;  %v4458_v0 = vld [vmem:[%s6457_s3 + $0x224] sm:$0xf0] }
  0xf0   : > { %2264 = vmatpush.bf16.msra.mxu3 %v3940_v47  ;;  %2292 = vmatpush.bf16.msrb.mxu2 %v3944_v59  ;;  %v3920_v47 = vor.u32 %v4429_v32, %v3917_v34  ;;  %v4023_v59 = vld [vmem:[%s6457_s3 + $0x1e8] sm:$0xf0]  ;;  %v957_v8 = vpop.f32.mrf.mxu3  ;;  %v3997_v32 = vld [vmem:[%s6457_s3 + $0x1b0] sm:$0xf]  ;;  %v4037_v34 = vld [vmem:[%s6457_s3 + $0x200] sm:$0xf] }
  0xf1   : > { %2077 = vmatmul.bf16.vlgmr.msra.gmra.mxu2 %v6015_v58  ;;  %v4026_v9 = vor.u32 %v4449_v57, %v4023_v59  ;;  %v958_v13 = vadd.f32 %v957_v8, %v943_v7  ;;  %v4038_v52 = vor.u32 %v4454_v35, %v4037_v34  ;;  %v4152_v57 = vor.u32 %v4476_v40, %v4151_v39  ;;  %v3989_v59 = vld [vmem:[%s6457_s3 + $0x1a0] sm:$0xf]  ;;  %v4473_v7 = vld [vmem:[%s6458_s4 + $0x1e4] sm:$0xf]  ;;  %v4145_v8 = vld [vmem:[%s6458_s4 + $0x1e8] sm:$0xf0] }
  0xf2   : > { %2279 = vmatpush.bf16.msra.mxu0 %v3872_v19  ;;  %v1118_v19 = vadd.f32 %v1117_v16, %v956_v36  ;;  %v1119_v55 = vpop.f32.mrf.mxu0  ;;  %v4437_v35 = vld [vmem:[%s6457_s3 + $0x184] sm:$0xf]  ;;  %v3975_v39 = vld [vmem:[%s6457_s3 + $0x188] sm:$0xf0] }
  0xf3   : > { %2251 = vmatpush.bf16.msrb.mxu1 %v3868_v14  ;;  %v4054_v14 = vor.u32 %v4458_v0, %v4053_v63  ;;  %v1091_v36 = vpop.f32.mrf.mxu1  ;;  %v4442_v63 = vld [vmem:[%s6457_s3 + $0x1a4] sm:$0xf0]  ;;  %v4143_v0 = vld [vmem:[%s6458_s4 + $0x1e0] sm:$0xf]  ;;  %v4469_v40 = vld [vmem:[%s6458_s4 + $0x1c4] sm:$0xf] }
  0xf4   : > { %2265 = vmatpush.bf16.msra.mxu3 %v3932_v2  ;;  %2293 = vmatpush.bf16.msrb.mxu2 %v3936_v10  ;;  %v4013_v2 = vld [vmem:[%s6457_s3 + $0x1d0] sm:$0xf]  ;;  %v4457_v10 = vld [vmem:[%s6457_s3 + $0x224] sm:$0xf] }
  0xf5   : > { %v4058_v20 = vor.u32 %v4457_v10, %v4055_v12  ;;  %v4144_v10 = vor.u32 %v4474_v1, %v4143_v0  ;;  %v3981_v12 = vld [vmem:[%s6457_s3 + $0x190] sm:$0xf]  ;;  %v4177_v0 = vld [vmem:[%s6458_s4 + $0x228] sm:$0xf0] }
  0xf6   : > { %2280 = vmatpush.bf16.msra.mxu0 %v3864_v43  ;;  %v1131_v51 = vpop.f32.mrf.mxu2 }
  0xf7   : > { %2252 = vmatpush.bf16.msrb.mxu1 %v3860_v31  ;;  %v4006_v31 = vor.u32 %v4446_v41, %v4005_v21  ;;  %v6225_v54 = vadd.f32 %v1131_v51, %v1118_v19  ;;  %v4471_v21 = vld [vmem:[%s6458_s4 + $0x1d4] sm:$0xf]  ;;  %v4137_v41 = vld [vmem:[%s6458_s4 + $0x1d8] sm:$0xf0]  ;;  %v4119_v51 = vld [vmem:[%s6458_s4 + $0x1b0] sm:$0xf] }
  0xf8   : > { %2266 = vmatpush.bf16.msra.mxu3 %v3924_v17  ;;  %2294 = vmatpush.bf16.msrb.mxu2 %v3928_v25  ;;  %v4014_v17 = vor.u32 %v4448_v4, %v4013_v2  ;;  %v4018_v25 = vor.u32 %v4447_v15, %v4015_v29  ;;  %v1103_v43 = vpop.f32.mrf.mxu3  ;;  %v4441_v4 = vld [vmem:[%s6457_s3 + $0x1a4] sm:$0xf]  ;;  %v4472_v15 = vld [vmem:[%s6458_s4 + $0x1d4] sm:$0xf0]  ;;  %v4140_v34 = vor.u32 %v4471_v21, %v4137_v41  ;;  %v4478_v21 = vld [vmem:[%s6458_s4 + $0x204] sm:$0xf0] }
  0xf9   : > { %v6214_v50 = vadd.f32 %v1103_v43, %v1090_v6  ;;  %v3991_v6 = vld [vmem:[%s6457_s3 + $0x1a8] sm:$0xf0] }
  0xfa   : > { %2281 = vmatpush.bf16.msra.mxu0 %v3856_v49  ;;  %v4042_v49 = vor.u32 %v4453_v45, %v4039_v46  ;;  %v3994_v16 = vor.u32 %v4441_v4, %v3991_v6  ;;  %v4483_v45 = vld [vmem:[%s6458_s4 + $0x234] sm:$0xf]  ;;  %v4185_v46 = vld [vmem:[%s6458_s4 + $0x238] sm:$0xf0]  ;;  %v4167_v6 = vld [vmem:[%s6458_s4 + $0x210] sm:$0xf] }
  0xfb   : > { %2253 = vmatpush.bf16.msrb.mxu1 %v3852_v33  ;;  %v4475_v33 = vld [vmem:[%s6458_s4 + $0x1f4] sm:$0xf] }
  0xfc   : > { %2267 = vmatpush.bf16.msra.mxu3 %v3916_v37  ;;  %2295 = vmatpush.bf16.msrb.mxu2 %v3920_v47  ;;  %v4050_v37 = vor.u32 %v4455_v26, %v4047_v27  ;;  %v4443_v47 = vld [vmem:[%s6457_s3 + $0x1b4] sm:$0xf] }
  0xfd   : > { %2282 = vmatmul.bf16.vlgmr.msra.gmra.mxu0 %v6015_v58 }
  0xfe   : > { %2497 = vmatpush.bf16.msrb.mxu0 %v4066_v48  ;;  %2254 = vmatmul.bf16.vlgmr.msrb.gmra.mxu1 %v6015_v58  ;;  %v1133_v19 = vpop.f32.mrf.mxu2 }
  0xff   : > { %2469 = vmatpush.bf16.msra.mxu1 %v4062_v56  ;;  %3945 = vmatmul.msk.bf16.vlgmr.msra.gmra.mxu3 %vm520_vm0, %v5935_v11  ;;  %v3998_v56 = vor.u32 %v4444_v38, %v3997_v32  ;;  %v1304_v38 = vpop.f32.mrf.mxu1 }
 0x100   : > { %2451 = vmatpush.bf16.msrb.mxu3 %v4030_v42  ;;  %2479 = vmatpush.bf16.msra.mxu2 %v4034_v53  ;;  %v1092_v42 = vadd.f32 %v1091_v36, %v6031_v3  ;;  %v3999_v3 = vld [vmem:[%s6457_s3 + $0x1b8] sm:$0xf0]  ;;  %v1105_v29 = vpop.f32.mrf.mxu3  ;;  %v4183_v36 = vld [vmem:[%s6458_s4 + $0x230] sm:$0xf] }
 0x101   : > { %3946 = vmatmul.msk.bf16.vlgmr.msrb.gmra.mxu2 %vm520_vm0, %v5935_v11  ;;  %v4153_v53 = vld [vmem:[%s6458_s4 + $0x1f8] sm:$0xf0]  ;;  %v4002_v48 = vor.u32 %v4443_v47, %v3999_v3  ;;  %v3978_v3 = vor.u32 %v4437_v35, %v3975_v39 }
 0x102   : > { %2498 = vmatpush.bf16.msrb.mxu0 %v4058_v20  ;;  %v4156_v2 = vor.u32 %v4475_v33, %v4153_v53  ;;  %v6266_v24 = vadd.f32 %v1105_v29, %v1092_v42  ;;  %v3983_v20 = vld [vmem:[%s6457_s3 + $0x198] sm:$0xf0]  ;;  %v4129_v42 = vld [vmem:[%s6458_s4 + $0x1c8] sm:$0xf0]  ;;  %v4175_v53 = vld [vmem:[%s6458_s4 + $0x220] sm:$0xf] }
 0x103   : > { %2470 = vmatpush.bf16.msra.mxu1 %v4054_v14  ;;  %v4135_v14 = vld [vmem:[%s6458_s4 + $0x1d0] sm:$0xf]  ;;  %v3986_v32 = vor.u32 %v4439_v18, %v3983_v20  ;;  %v4132_v33 = vor.u32 %v4469_v40, %v4129_v42  ;;  %v4159_v20 = vld [vmem:[%s6458_s4 + $0x200] sm:$0xf]  ;;  %v4461_v42 = vld [vmem:[%s6458_s4 + $0x184] sm:$0xf] }
 0x104   : > { %2452 = vmatpush.bf16.msrb.mxu3 %v4022_v61  ;;  %2480 = vmatpush.bf16.msra.mxu2 %v4026_v9  ;;  %v1120_v61 = vadd.f32 %v1119_v55, %v958_v13  ;;  %v3990_v9 = vor.u32 %v4442_v63, %v3989_v59  ;;  %v4440_v13 = vld [vmem:[%s6457_s3 + $0x194] sm:$0xf0]  ;;  %v4136_v27 = vor.u32 %v4472_v15, %v4135_v14  ;;  %v4482_v55 = vld [vmem:[%s6458_s4 + $0x224] sm:$0xf0]  ;;  %v4467_v59 = vld [vmem:[%s6458_s4 + $0x1b4] sm:$0xf] }
 0x105   : > { %v3982_v26 = vor.u32 %v4440_v13, %v3981_v12  ;;  %v4481_v63 = vld [vmem:[%s6458_s4 + $0x224] sm:$0xf]  ;;  %v4176_v1 = vor.u32 %v4482_v55, %v4175_v53  ;;  %v4479_v13 = vld [vmem:[%s6458_s4 + $0x214] sm:$0xf]  ;;  %v4169_v14 = vld [vmem:[%s6458_s4 + $0x218] sm:$0xf0] }
 0x106   : > { %2499 = vmatpush.bf16.msrb.mxu0 %v4050_v37  ;;  %v4484_v37 = vld [vmem:[%s6458_s4 + $0x234] sm:$0xf0] }
 0x107   : > { %2471 = vmatpush.bf16.msra.mxu1 %v4046_v28  ;;  %v3973_v28 = vld [vmem:[%s6457_s3 + $0x180] sm:$0xf]  ;;  %v4184_v47 = vor.u32 %v4484_v37, %v4183_v36  ;;  %v1306_v15 = vpop.f32.mrf.mxu1  ;;  %v4160_v36 = vor.u32 %v4478_v21, %v4159_v20 }
 0x108   : > { %2453 = vmatpush.bf16.msrb.mxu3 %v4014_v17  ;;  %2481 = vmatpush.bf16.msra.mxu2 %v4018_v25  ;;  %v4148_v17 = vor.u32 %v4473_v7, %v4145_v8  ;;  %v6277_v25 = vadd.f32 %v1133_v19, %v1120_v61  ;;  %v3974_v43 = vor.u32 %v4438_v30, %v3973_v28  ;;  %v4121_v61 = vld [vmem:[%s6458_s4 + $0x1b8] sm:$0xf0]  ;;  %v4480_v7 = vld [vmem:[%s6458_s4 + $0x214] sm:$0xf0]  ;;  %v4095_v37 = vld [vmem:[%s6458_s4 + $0x180] sm:$0xf] }
 0x109   : > { %v4124_v4 = vor.u32 %v4467_v59, %v4121_v61  ;;  %v4180_v8 = vor.u32 %v4481_v63, %v4177_v0  ;;  %v4168_v29 = vor.u32 %v4480_v7, %v4167_v6  ;;  %v4105_v28 = vld [vmem:[%s6458_s4 + $0x198] sm:$0xf0] }
 0x10a   : > { %2500 = vmatpush.bf16.msrb.mxu0 %v4042_v49 }
 0x10b   : > { %2472 = vmatpush.bf16.msra.mxu1 %v4038_v52  ;;  %v4468_v52 = vld [vmem:[%s6458_s4 + $0x1b4] sm:$0xf0] }
 0x10c   : > { %2454 = vmatpush.bf16.msrb.mxu3 %v4006_v31  ;;  %2482 = vmatpush.bf16.msra.mxu2 %v4010_v44  ;;  %v4470_v31 = vld [vmem:[%s6458_s4 + $0x1c4] sm:$0xf0]  ;;  %v4120_v49 = vor.u32 %v4468_v52, %v4119_v51 }
 0x10d   : > { %v4128_v44 = vor.u32 %v4470_v31, %v4127_v5  ;;  %4068 = vmatmul.msk.bf16.vlgmr.msrb.gmra.mxu0 %vm520_vm0, %v5935_v11  ;;  %v4477_v31 = vld [vmem:[%s6458_s4 + $0x204] sm:$0xf] }
 0x10e   : > { %2684 = vmatpush.bf16.msra.mxu0 %v4156_v2  ;;  %4067 = vmatmul.msk.bf16.vlgmr.msra.gmra.mxu1 %vm520_vm0, %v5935_v11  ;;  %v4466_v2 = vld [vmem:[%s6458_s4 + $0x1a4] sm:$0xf0] }
 0x10f   : > { %2656 = vmatpush.bf16.msrb.mxu1 %v4152_v57  ;;  %v4188_v57 = vor.u32 %v4483_v45, %v4185_v46 }
 0x110   : > { %2455 = vmatpush.bf16.msrb.mxu3 %v3998_v56  ;;  %2483 = vmatpush.bf16.msra.mxu2 %v4002_v48  ;;  %v1332_v56 = vpop.f32.mrf.mxu0  ;;  %v4111_v48 = vld [vmem:[%s6458_s4 + $0x1a0] sm:$0xf] }
 0x111   : > { %v4112_v12 = vor.u32 %v4466_v2, %v4111_v48 }
 0x112   : > { %2685 = vmatpush.bf16.msra.mxu0 %v4148_v17  ;;  %v4464_v17 = vld [vmem:[%s6458_s4 + $0x194] sm:$0xf0]  ;;  %v1290_v18 = vpop.f32.mrf.mxu3 }
 0x113   : > { %2657 = vmatpush.bf16.msrb.mxu1 %v4144_v10  ;;  %v4113_v10 = vld [vmem:[%s6458_s4 + $0x1a8] sm:$0xf0]  ;;  %v1305_v41 = vadd.f32 %v1304_v38, %v1290_v18  ;;  %v4462_v38 = vld [vmem:[%s6458_s4 + $0x184] sm:$0xf0] }
 0x114   : > { %2456 = vmatpush.bf16.msrb.mxu3 %v3990_v9  ;;  %2484 = vmatpush.bf16.msra.mxu2 %v3994_v16  ;;  %v4465_v9 = vld [vmem:[%s6458_s4 + $0x1a4] sm:$0xf]  ;;  %v4103_v16 = vld [vmem:[%s6458_s4 + $0x190] sm:$0xf]  ;;  %v1318_v30 = vpop.f32.mrf.mxu2 }
 0x115   : > { %v4116_v19 = vor.u32 %v4465_v9, %v4113_v10  ;;  %v4104_v5 = vor.u32 %v4464_v17, %v4103_v16 }
 0x116   : > { %2686 = vmatpush.bf16.msra.mxu0 %v4140_v34  ;;  %v1333_v34 = vadd.f32 %v1332_v56, %v1318_v30 }
 0x117   : > { %2658 = vmatpush.bf16.msrb.mxu1 %v4136_v27  ;;  %v4463_v27 = vld [vmem:[%s6458_s4 + $0x194] sm:$0xf] }
 0x118   : > { %2457 = vmatpush.bf16.msrb.mxu3 %v3982_v26  ;;  %2485 = vmatpush.bf16.msra.mxu2 %v3986_v32  ;;  %v4172_v26 = vor.u32 %v4479_v13, %v4169_v14  ;;  %v4161_v32 = vld [vmem:[%s6458_s4 + $0x208] sm:$0xf0]  ;;  %v1334_v35 = vpop.f32.mrf.mxu0  ;;  %v4108_v39 = vor.u32 %v4463_v27, %v4105_v28 }
 0x119   : > { %v4164_v40 = vor.u32 %v4477_v31, %v4161_v32 }
 0x11a   : > { %2687 = vmatpush.bf16.msra.mxu0 %v4132_v33  ;;  %v1292_v45 = vpop.f32.mrf.mxu3 }
 0x11b   : > { %2659 = vmatpush.bf16.msrb.mxu1 %v4128_v44  ;;  %v4096_v44 = vor.u32 %v4462_v38, %v4095_v37  ;;  %v1466_v51 = vpop.f32.mrf.mxu1 }
 0x11c   : > { %2458 = vmatpush.bf16.msrb.mxu3 %v3974_v43  ;;  %2486 = vmatpush.bf16.msra.mxu2 %v3978_v3  ;;  %v4097_v43 = vld [vmem:[%s6458_s4 + $0x188] sm:$0xf0]  ;;  %v1467_v52 = vadd.f32 %v1466_v51, %v1305_v41  ;;  %v1320_v3 = vpop.f32.mrf.mxu2 }
 0x11d   : > { %v4100_v46 = vor.u32 %v4461_v42, %v4097_v43  ;;  %v1335_v33 = vadd.f32 %v1334_v35, %v1320_v3 }
 0x11e   : > { %2688 = vmatpush.bf16.msra.mxu0 %v4124_v4 }
 0x11f   : > { %2459 = vmatmul.bf16.vlgmr.msrb.gmra.mxu3 %v6015_v58  ;;  %2660 = vmatpush.bf16.msrb.mxu1 %v4120_v49 }
 0x120   : > { %2674 = vmatpush.bf16.msra.mxu3 %v4184_v47  ;;  %2702 = vmatpush.bf16.msrb.mxu2 %v4188_v57  ;;  %v1307_v47 = vadd.f32 %v1306_v15, %v1292_v45  ;;  %v1494_v53 = vpop.f32.mrf.mxu0 }
 0x121   : > { %2487 = vmatmul.bf16.vlgmr.msra.gmra.mxu2 %v6015_v58  ;;  %v1495_v55 = vadd.f32 %v1494_v53, %v1333_v34 }
 0x122   : > { %2689 = vmatpush.bf16.msra.mxu0 %v4116_v19  ;;  %v1480_v56 = vpop.f32.mrf.mxu3 }
 0x123   : > { %2661 = vmatpush.bf16.msrb.mxu1 %v4112_v12  ;;  %v6411_v57 = vadd.f32 %v1480_v56, %v1467_v52  ;;  %v1468_v59 = vpop.f32.mrf.mxu1 }
 0x124   : > { %2675 = vmatpush.bf16.msra.mxu3 %v4176_v1  ;;  %2703 = vmatpush.bf16.msrb.mxu2 %v4180_v8  ;;  %v1469_v61 = vadd.f32 %v1468_v59, %v1307_v47  ;;  %v1508_v49 = vpop.f32.mrf.mxu2 }
 0x125   : > { %v6413_v63 = vadd.f32 %v1508_v49, %v1495_v55 }
 0x126   : > { %2690 = vmatpush.bf16.msra.mxu0 %v4108_v39 }
 0x127   : > { %2662 = vmatpush.bf16.msrb.mxu1 %v4104_v5 }
 0x128   : > { %2676 = vmatpush.bf16.msra.mxu3 %v4168_v29  ;;  %2704 = vmatpush.bf16.msrb.mxu2 %v4172_v26  ;;  %v1496_v0 = vpop.f32.mrf.mxu0 }
 0x129   : > { %v1497_v1 = vadd.f32 %v1496_v0, %v1335_v33 }
 0x12a   : > { %2691 = vmatpush.bf16.msra.mxu0 %v4100_v46  ;;  %v1482_v48 = vpop.f32.mrf.mxu3 }
 0x12b   : > { %2663 = vmatpush.bf16.msrb.mxu1 %v4096_v44  ;;  %v6415_v2 = vadd.f32 %v1482_v48, %v1469_v61 }
 0x12c   : > { %2677 = vmatpush.bf16.msra.mxu3 %v4160_v36  ;;  %2705 = vmatpush.bf16.msrb.mxu2 %v4164_v40  ;;  %v1510_v4 = vpop.f32.mrf.mxu2 }
 0x12d   : > { %2692 = vmatmul.bf16.vlgmr.msra.gmra.mxu0 %v6015_v58  ;;  %v6417_v6 = vadd.f32 %v1510_v4, %v1497_v1 }
 0x12e   : > { %2664 = vmatmul.bf16.vlgmr.msrb.gmra.mxu1 %v6015_v58  ;;  %v1681_v58 = vpop.f32.mrf.mxu1 }
 0x12f   : > { %4189 = vmatmul.msk.bf16.vlgmr.msra.gmra.mxu3 %vm520_vm0, %v5935_v11 }
 0x130   : > { %v1709_v7 = vpop.f32.mrf.mxu0 }
 0x131   : > { %4190 = vmatmul.msk.bf16.vlgmr.msrb.gmra.mxu2 %vm520_vm0, %v5935_v11 }
 0x136   : > { %v1683_v11 = vpop.f32.mrf.mxu1 }
 0x138   : > { %v1711_v13 = vpop.f32.mrf.mxu0 }
 0x142   : > { %v1667_v8 = vpop.f32.mrf.mxu3 }
 0x143   : > { %v1682_v9 = vadd.f32 %v1681_v58, %v1667_v8 }
 0x144   : > { %v1695_v10 = vpop.f32.mrf.mxu2 }
 0x145   : > { %v1710_v12 = vadd.f32 %v1709_v7, %v1695_v10 }
 0x14a   : > { %v1669_v14 = vpop.f32.mrf.mxu3  ;;  %v1871_v19 = vpop.f32.mrf.mxu0 }
 0x14b   : > { %v1684_v15 = vadd.f32 %v1683_v11, %v1669_v14  ;;  %v1843_v29 = vpop.f32.mrf.mxu1  ;;  %v1872_v20 = vadd.f32 %v1871_v19, %v1710_v12 }
 0x14c   : > { %v1697_v16 = vpop.f32.mrf.mxu2  ;;  %v1844_v18 = vadd.f32 %v1843_v29, %v1682_v9 }
 0x14d   : > { %v1712_v17 = vadd.f32 %v1711_v13, %v1697_v16 }
 0x152   : > { %v1857_v21 = vpop.f32.mrf.mxu3  ;;  %v1873_v5 = vpop.f32.mrf.mxu0 }
 0x153   : > { %v6419_v41 = vadd.f32 %v1857_v21, %v1844_v18  ;;  %v1845_v27 = vpop.f32.mrf.mxu1  ;;  %v1874_v34 = vadd.f32 %v1873_v5, %v1712_v17 }
 0x154   : > { %v1885_v26 = vpop.f32.mrf.mxu2  ;;  %v1846_v30 = vadd.f32 %v1845_v27, %v1684_v15 }
 0x155   : > { %v6421_v28 = vadd.f32 %v1885_v26, %v1872_v20 }
 0x15a   : > { %v1859_v31 = vpop.f32.mrf.mxu3  ;;  %v2092_v38 = vpop.f32.mrf.mxu0 }
 0x15b   : > { %v6423_v32 = vadd.f32 %v1859_v31, %v1846_v30  ;;  %v2064_v37 = vpop.f32.mrf.mxu1 }
 0x15c   : > { %v1887_v35 = vpop.f32.mrf.mxu2 }
 0x15d   : > { %v6425_v36 = vadd.f32 %v1887_v35, %v1874_v34 }
 0x162   : > { %v2094_v43 = vpop.f32.mrf.mxu0 }
 0x163   : > { %v2066_v42 = vpop.f32.mrf.mxu1 }
 0x172   : > { %v2050_v39 = vpop.f32.mrf.mxu3 }
 0x173   : > { %v2065_v51 = vadd.f32 %v2064_v37, %v2050_v39 }
 0x174   : > { %v2078_v40 = vpop.f32.mrf.mxu2 }
 0x175   : > { %v2093_v3 = vadd.f32 %v2092_v38, %v2078_v40  ;;  %v2097_v55 = vadd.f32 %v2065_v51, %v5844_v23 }
 0x177   : > { %v2098_v61 = vadd.f32 %v2093_v3, %v5956_v22 }
 0x17a   : > { %v2052_v44 = vpop.f32.mrf.mxu3  ;;  %v2283_v47 = vpop.f32.mrf.mxu0 }
 0x17b   : > { %v2255_v46 = vpop.f32.mrf.mxu1  ;;  %v2067_v48 = vadd.f32 %v2066_v42, %v2052_v44 }
 0x17c   : > { %v2080_v45 = vpop.f32.mrf.mxu2 }
 0x17d   : > { %v2095_v8 = vadd.f32 %v2094_v43, %v2080_v45  ;;  %v2099_v10 = vadd.f32 %v2067_v48, %v5908_v60 }
 0x182   : > { %v2269_v52 = vpop.f32.mrf.mxu3  ;;  %v2285_v7 = vpop.f32.mrf.mxu0 }
 0x183   : > { %v2270_v33 = vadd.f32 %v2269_v52, %v2255_v46  ;;  %v2257_v1 = vpop.f32.mrf.mxu1 }
 0x184   : > { %v2297_v53 = vpop.f32.mrf.mxu2 }
 0x185   : > { %v2302_v56 = vadd.f32 %v2270_v33, %v6214_v50  ;;  %v2298_v59 = vadd.f32 %v2297_v53, %v2283_v47  ;;  %v2100_v50 = vadd.f32 %v2095_v8, %v6023_v62  ;;  %v253_v62 = vld [vmem:[%s6459_s5] sm:$0x3] }
 0x186   : > { %v2729_v38 = vperm.slane %v253_v62, 0  ;;  %v2730_v44 = vperm.slane %v253_v62, 1 }
 0x187   : > { %v2716_v49 = vmax.f32 %v2097_v55, %v2302_v56  ;;  %v2303_v0 = vadd.f32 %v2298_v59, %v6225_v54 }
 0x189   : > { %v2717_v4 = vmax.f32 %v2098_v61, %v2303_v0 }
 0x18a   : > { %v2271_v58 = vpop.f32.mrf.mxu3  ;;  %v2502_v15 = vpop.f32.mrf.mxu0 }
 0x18b   : > { %v2272_v11 = vadd.f32 %v2271_v58, %v2257_v1  ;;  %v2474_v54 = vpop.f32.mrf.mxu1 }
 0x18c   : > { %v2299_v9 = vpop.f32.mrf.mxu2 }
 0x18d   : > { %v2304_v23 = vadd.f32 %v2272_v11, %v6266_v24  ;;  %v2300_v12 = vadd.f32 %v2299_v9, %v2285_v7 }
 0x18f   : > { %v2718_v13 = vmax.f32 %v2099_v10, %v2304_v23  ;;  %v2305_v22 = vadd.f32 %v2300_v12, %v6277_v25 }
 0x191   : > { %v2719_v14 = vmax.f32 %v2100_v50, %v2305_v22 }
 0x192   : > { %v2504_v18 = vpop.f32.mrf.mxu0 }
 0x193   : > { %v2476_v17 = vpop.f32.mrf.mxu1 }
 0x1a2   : > { %v2460_v29 = vpop.f32.mrf.mxu3 }
 0x1a3   : > { %v2475_v26 = vadd.f32 %v2474_v54, %v2460_v29 }
 0x1a4   : > { %v2488_v16 = vpop.f32.mrf.mxu2 }
 0x1a5   : > { %v2503_v24 = vadd.f32 %v2502_v15, %v2488_v16  ;;  %v2507_v5 = vadd.f32 %v2475_v26, %v6411_v57 }
 0x1a7   : > { %v2508_v35 = vadd.f32 %v2503_v24, %v6413_v63 }
 0x1aa   : > { %v2462_v19 = vpop.f32.mrf.mxu3  ;;  %v2693_v60 = vpop.f32.mrf.mxu0 }
 0x1ab   : > { %v2665_v21 = vpop.f32.mrf.mxu1  ;;  %v2477_v40 = vadd.f32 %v2476_v17, %v2462_v19 }
 0x1ac   : > { %v2490_v20 = vpop.f32.mrf.mxu2 }
 0x1ad   : > { %v2505_v45 = vadd.f32 %v2504_v18, %v2490_v20  ;;  %v2509_v63 = vadd.f32 %v2477_v40, %v6415_v2 }
 0x1af   : > { %v2510_v55 = vadd.f32 %v2505_v45, %v6417_v6 }
 0x1b2   : > { %v2679_v27 = vpop.f32.mrf.mxu3 }
 0x1b3   : > { %v2680_v30 = vadd.f32 %v2679_v27, %v2665_v21  ;;  %v2667_v46 = vpop.f32.mrf.mxu1 }
 0x1b4   : > { %v2707_v25 = vpop.f32.mrf.mxu2 }
 0x1b5   : > { %v2712_v31 = vadd.f32 %v2680_v30, %v6419_v41  ;;  %v2708_v34 = vadd.f32 %v2707_v25, %v2693_v60  ;;  %v2695_v41 = vpop.f32.mrf.mxu0 }
 0x1b7   : > { %v2720_v37 = vmax.f32 %v2507_v5, %v2712_v31  ;;  %v2713_v39 = vadd.f32 %v2708_v34, %v6421_v28 }
 0x1b9   : > { %v2724_v42 = vmax.f32 %v2716_v49, %v2720_v37  ;;  %v2721_v43 = vmax.f32 %v2508_v35, %v2713_v39 }
 0x1ba   : > { %v2681_v47 = vpop.f32.mrf.mxu3 }
 0x1bb   : > { %v2733_v51 = vadd.f32 %v2729_v38, %v2724_v42  ;;  %v2725_v52 = vmax.f32 %v2717_v4, %v2721_v43  ;;  %v2682_v57 = vadd.f32 %v2681_v47, %v2667_v46 }
 0x1bc   : > { %v2709_v3 = vpop.f32.mrf.mxu2 }
 0x1bd   : > { %v2734_v33 = vadd.f32 %v2730_v44, %v2725_v52  ;;  %v2714_v28 = vadd.f32 %v2682_v57, %v6423_v32  ;;  %v2710_v53 = vadd.f32 %v2709_v3, %v2695_v41  ;;  %v2737_v56 = vmax.f32 %v2733_v51, 0.0 }
 0x1bf   : > { %v2738_v59 = vmax.f32 %v2734_v33, 0.0  ;;  %v2722_v61 = vmax.f32 %v2509_v63, %v2714_v28  ;;  %v2715_v49 = vadd.f32 %v2710_v53, %v6425_v36 }
 0x1c1   : > { %v2741_v0 = vpack.c.bf16 %v2738_v59, %v2737_v56  ;;  %v2726_v1 = vmax.f32 %v2718_v13, %v2722_v61  ;;  %v2723_v2 = vmax.f32 %v2510_v55, %v2715_v49 }
 0x1c3   : > { %2746 = vst.msk [vmem:[%s251_s24] sm:$0xff] %vm2745_vm3, %v2741_v0  ;;  %v2735_v48 = vadd.f32 %v2729_v38, %v2726_v1  ;;  %v2727_v32 = vmax.f32 %v2719_v14, %v2723_v2 }
 0x1c5   : > { %v2736_v4 = vadd.f32 %v2730_v44, %v2727_v32  ;;  %v2739_v6 = vmax.f32 %v2735_v48, 0.0 }
 0x1c7   : > { %v2740_v58 = vmax.f32 %v2736_v4, 0.0 }
 0x1c9   : > { %v2742_v7 = vpack.c.bf16 %v2740_v58, %v2739_v6 }
 0x1cb   : > { %2750 = vst.msk [vmem:[%s251_s24 + $0x8] sm:$0x77] %vm2749_vm6, %v2742_v7 }
 0x1cc PF: > { %s16_s21 = sadd.s32 1, %s4499_s21  }
 0x1cd   : > { %p13_p4 = scmp.ge.s32.totalorder %s16_s21, 4  }
 0x1cf   :  { %15 = sbr.rel (!%p13_p4) target bundleno = 1 (0x1), region = 82 }

// kernel: tile.18
= control target key start
LH: loop header
LB: loop body
LE: loop exit
PB: predicated region body
PF: predicated region fallthrough
CT: control target
= control target key end

     0   :  { %s22_s0 = inlined_call_operand.vmem [shape: f32[20], index: 0, kind: input, shape index: {}]   ;;  %s23_s1 = inlined_call_operand.vmem [shape: f32[5,20], index: 1, kind: output, shape index: {}]  }
   0x1   :  { %v4_v0 = vld [vmem:[%s22_s0] ss:$0 sm:$0xff] }
   0x2   :  { %5 = vst [vmem:[%s23_s1] sm:$0xff] %v4_v0 }

// kernel: tile.19
= control target key start
LH: loop header
LB: loop body
LE: loop exit
PB: predicated region body
PF: predicated region fallthrough
CT: control target
= control target key end

     0   :  { %s43_s10 = smov 80   ;;  %s44_s11 = smov 40   ;;  %vm3_vm0 = vcmask 162816   ;;  %vm9_vm1 = vcmask 818816   ;;  %vm15_vm2 = vcmask 654816   ;;  %vm21_vm3 = vcmask 490816   ;;  %s75_s0 = inlined_call_operand.vmem [shape: f32[5,20], index: 0, kind: input, shape index: {}]   ;;  %s76_s1 = inlined_call_operand.vmem [shape: f32[1,100], index: 1, kind: output, shape index: {}]  }
   0x1   :  { %v35_v0 = vld [vmem:[%s75_s0 + $0x4] sm:$0x1]   ;;  %v37_v1 = vld [vmem:[%s75_s0 + $0x2] sm:$0x1]   ;;  %v36_v2 = vld [vmem:[%s75_s0 + $0x3] sm:$0x1]  }
   0x2   :  { %7 = vrot.lane.b32.xlu0 %v35_v0, %s43_s10  ;;  %19 = vrot.lane.b32.xlu1 %v37_v1, %s44_s11  ;;  %v38_v3 = vld [vmem:[%s75_s0 + $0x1] sm:$0x1]   ;;  %s45_s16 = smov 60   ;;  %s46_s17 = smov 20   ;;  %v2_v4 = vld [vmem:[%s75_s0] sm:$0x1]  }
   0x3   :  { %4 = vst.msk [vmem:[#allocation0] sm:$0x1] %vm3_vm0, %v2_v4   ;;  %vm27_vm4 = vcmask 326816  }
   0xa   :  { %13 = vrot.lane.b32.xlu0 %v36_v2, %s45_s16  ;;  %25 = vrot.lane.b32.xlu1 %v38_v3, %s46_s17 }
  0x74   :  { %v8_v5 = vpop.permute.xlu0 %7   ;;  %v20_v6 = vpop.permute.xlu1 %19  }
  0x75   :  { %10 = vst.msk [vmem:[#allocation0] sm:$0x1] %vm9_vm1, %v8_v5  }
  0x7c   :  { %v14_v7 = vpop.permute.xlu0 %13   ;;  %v26_v8 = vpop.permute.xlu1 %25  }
  0x7d   :  { %16 = vst.msk [vmem:[#allocation0] sm:$0x1] %vm15_vm2, %v14_v7  }
  0x7e   :  { %22 = vst.msk [vmem:[#allocation0] sm:$0x1] %vm21_vm3, %v20_v6  }
  0x7f   :  { %28 = vst.msk [vmem:[#allocation0] sm:$0x1] %vm27_vm4, %v26_v8  }
  0x86   :  { %v31_v9 = vld [vmem:[#allocation0] sm:$0x1] }
  0x87   :  { %34 = vst [vmem:[%s76_s1] sm:$0x1] %v31_v9 }

// kernel: cifar_net_forward.5
= control target key start
LH: loop header
LB: loop body
LE: loop exit
PB: predicated region body
PF: predicated region fallthrough
CT: control target
= control target key end

     0   :  { %vm291_vm0 = vcmask 1041408   ;;  %s791_s0 = inlined_call_operand.vmem [shape: bf16[2,500], index: 0, kind: input, shape index: {}]   ;;  %s792_s1 = inlined_call_operand.vmem [shape: bf16[500,50], index: 1, kind: input, shape index: {}]   ;;  %s793_s2 = inlined_call_operand.vmem [shape: f32[1,50], index: 2, kind: input, shape index: {}]   ;;  %s794_s3 = inlined_call_operand.vmem [shape: bf16[50,10], index: 3, kind: input, shape index: {}]   ;;  %s795_s4 = inlined_call_operand.vmem [shape: f32[1,10], index: 4, kind: input, shape index: {}]   ;;  %s796_s5 = inlined_call_operand.hbm [shape: f32[2,10], index: 5, kind: output, shape index: {}]  }
   0x1   :  { %v577_v0 = vld [vmem:[%s792_s1 + $0x38] sm:$0xff]  ;;  %v576_v5 = vld [vmem:[%s792_s1 + $0x30] sm:$0xff]  ;;  %v575_v10 = vld [vmem:[%s792_s1 + $0x28] sm:$0xff] }
   0x2   :  { %v585_v1 = vld [vmem:[%s792_s1 + $0x78] sm:$0xff]  ;;  %295 = vmatpush.bf16.msra.mxu0 %v577_v0  ;;  %v584_v6 = vld [vmem:[%s792_s1 + $0x70] sm:$0xff]  ;;  %v583_v11 = vld [vmem:[%s792_s1 + $0x68] sm:$0xff] }
   0x3   :  { %v593_v2 = vld [vmem:[%s792_s1 + $0xb8] sm:$0xff]  ;;  %308 = vmatpush.bf16.msra.mxu1 %v585_v1  ;;  %v592_v7 = vld [vmem:[%s792_s1 + $0xb0] sm:$0xff]  ;;  %v591_v13 = vld [vmem:[%s792_s1 + $0xa8] sm:$0xff] }
   0x4   :  { %v85_v3 = vld [vmem:[%s792_s1 + $0xf8] sm:$0x3]  ;;  %321 = vmatpush.bf16.msra.mxu2 %v593_v2  ;;  %v600_v12 = vld [vmem:[%s792_s1 + $0xf0] sm:$0xff]  ;;  %v574_v14 = vld [vmem:[%s792_s1 + $0x20] sm:$0xff] }
   0x5   :  { %v224_v4 = vunpack.c.l.b16 %v85_v3  ;;  %v582_v15 = vld [vmem:[%s792_s1 + $0x60] sm:$0xff]  ;;  %v599_v17 = vld [vmem:[%s792_s1 + $0xe8] sm:$0xff] }
   0x6   :  { %296 = vmatpush.bf16.msra.mxu0 %v576_v5  ;;  %v22_v16 = vld [vmem:[%s791_s0] sm:$0xf] }
   0x7   :  { %v256_v8 = vpack.c.b16 %v224_v4, %v224_v4  ;;  %309 = vmatpush.bf16.msra.mxu1 %v584_v6  ;;  %v590_v18 = vld [vmem:[%s792_s1 + $0xa0] sm:$0xff]  ;;  %91 = vst [vmem:[#allocation1] ss:$9 sm:$0xff] %v22_v16 }
   0x8   :  { %322 = vmatpush.bf16.msra.mxu2 %v592_v7 }
   0x9   :  { %v293_v9 = vsel %vm291_vm0, %v256_v8, 0 }
   0xa   :  { %334 = vmatpush.bf16.msra.mxu3 %v293_v9  ;;  %297 = vmatpush.bf16.msra.mxu0 %v575_v10 }
   0xb   :  { %310 = vmatpush.bf16.msra.mxu1 %v583_v11 }
   0xc   :  { %323 = vmatpush.bf16.msra.mxu2 %v591_v13 }
   0xe   :  { %335 = vmatpush.bf16.msra.mxu3 %v600_v12 }
   0xf   :  { %10 = vsyncpa [#allocation3], 0  ;;  %298 = vmatpush.bf16.msra.mxu0 %v574_v14  ;;  %311 = vmatpush.bf16.msra.mxu1 %v582_v15  ;;  %v573_v19 = vld [vmem:[%s792_s1 + $0x18] sm:$0xff]  ;;  %v598_v21 = vld [vmem:[%s792_s1 + $0xe0] sm:$0xff]  ;;  %vm288_vm1 = vcmask 949248   ;;  %vm385_vm2 = vcmask 1040384  }
  0x10   :  { %v581_v20 = vld [vmem:[%s792_s1 + $0x58] sm:$0xff]  ;;  %324 = vmatpush.bf16.msra.mxu2 %v590_v18  ;;  %v572_v23 = vld [vmem:[%s792_s1 + $0x10] sm:$0xff]  ;;  %v571_v27 = vld [vmem:[%s792_s1 + $0x8] sm:$0xff]  ;;  %vm381_vm3 = vcmask 408576   ;;  %vm402_vm4 = vcmask 74752   ;;  %s423_s19 = sshll.u32 %s796_s5, 4  ;;  %s424_s19 = int_to_ptr.hbm [resolvable:$true] %s423_s19 }
  0x11   :  { %v589_v22 = vld [vmem:[%s792_s1 + $0x98] sm:$0xff]  ;;  %v580_v24 = vld [vmem:[%s792_s1 + $0x50] sm:$0xff]  ;;  %v579_v28 = vld [vmem:[%s792_s1 + $0x48] sm:$0xff] }
  0x12   :  { %336 = vmatpush.bf16.msra.mxu3 %v599_v17  ;;  %v597_v25 = vld [vmem:[%s792_s1 + $0xd8] sm:$0xff]  ;;  %v588_v26 = vld [vmem:[%s792_s1 + $0x90] sm:$0xff]  ;;  %v587_v30 = vld [vmem:[%s792_s1 + $0x88] sm:$0xff] }
  0x13   :  { %299 = vmatpush.bf16.msra.mxu0 %v573_v19  ;;  %312 = vmatpush.bf16.msra.mxu1 %v581_v20  ;;  %v596_v29 = vld [vmem:[%s792_s1 + $0xd0] sm:$0xff]  ;;  %v570_v31 = vld [vmem:[%s792_s1] sm:$0xff]  ;;  %v595_v33 = vld [vmem:[%s792_s1 + $0xc8] sm:$0xff] }
  0x14   :  { %325 = vmatpush.bf16.msra.mxu2 %v589_v22  ;;  %v578_v32 = vld [vmem:[%s792_s1 + $0x40] sm:$0xff]  ;;  %v93_v36 = vld [vmem:[#allocation1 + $0x9] sm:$0xff]  ;;  %v94_v37 = vld [vmem:[#allocation1 + $0x12] sm:$0xff] }
  0x15   :  { %v586_v34 = vld [vmem:[%s792_s1 + $0x80] sm:$0xff]  ;;  %v355_v40 = vld [vmem:[%s794_s3 + $0x18] sm:$0x1]  ;;  %v603_v44 = vld [vmem:[%s794_s3 + $0x10] sm:$0xff] }
  0x16   :  { %337 = vmatpush.bf16.msra.mxu3 %v598_v21  ;;  %v92_v35 = vld [vmem:[#allocation1] sm:$0xff]  ;;  %v373_v41 = vunpack.c.l.b16 %v355_v40  ;;  %v602_v45 = vld [vmem:[%s794_s3 + $0x8] sm:$0xff] }
  0x17   :  { %300 = vmatpush.bf16.msra.mxu0 %v572_v23  ;;  %313 = vmatpush.bf16.msra.mxu1 %v580_v24  ;;  %v594_v38 = vld [vmem:[%s792_s1 + $0xc0] sm:$0xff] }
  0x18   :  { %326 = vmatpush.bf16.msra.mxu2 %v588_v26  ;;  %v95_v39 = vld [vmem:[#allocation1 + $0x1b] sm:$0xff]  ;;  %v377_v42 = vpack.c.b16 %v373_v41, %v373_v41 }
  0x19   :  { %v601_v46 = vld [vmem:[%s794_s3] sm:$0xff] }
  0x1a   :  { %338 = vmatpush.bf16.msra.mxu3 %v597_v25  ;;  %v387_v43 = vsel %vm385_vm2, %v377_v42, 0  ;;  %v605_v47 = vld [vmem:[%s793_s2] ss:$0 sm:$0xff]  ;;  %s637_s2 = smov [#allocation2]  }
  0x1b   :  { %301 = vmatpush.bf16.msra.mxu0 %v571_v27  ;;  %314 = vmatpush.bf16.msra.mxu1 %v579_v28  ;;  %v606_v62 = vld [vmem:[%s795_s4] ss:$0 sm:$0xff]  ;;  %s421_s4 = sshll.u32 %s637_s2, 4  ;;  %s422_s4 = int_to_ptr.vmem [resolvable:$true] %s421_s4 }
  0x1c   :  { %327 = vmatpush.bf16.msra.mxu2 %v587_v30 }
  0x1e   :  { %339 = vmatpush.bf16.msra.mxu3 %v596_v29 }
  0x1f   :  { %302 = vmatpush.bf16.msra.mxu0 %v570_v31  ;;  %315 = vmatpush.bf16.msra.mxu1 %v578_v32 }
  0x20   :  { %328 = vmatpush.bf16.msra.mxu2 %v586_v34 }
  0x22   :  { %340 = vmatpush.bf16.msra.mxu3 %v595_v33  ;;  %303 = vmatmul.bf16.vlgmr.msra.gmra.mxu0 %v92_v35 }
  0x23   :  { %316 = vmatmul.bf16.vlgmr.msra.gmra.mxu1 %v93_v36  ;;  %329 = vmatmul.bf16.vlgmr.msra.gmra.mxu2 %v94_v37 }
  0x24   :  { %393 = vmatpush.bf16.msrb.mxu0 %v387_v43 }
  0x26   :  { %341 = vmatpush.bf16.msra.mxu3 %v594_v38 }
  0x28   :  { %394 = vmatpush.bf16.msrb.mxu0 %v603_v44 }
  0x29   :  { %556 = vmatmul.msk.bf16.vlgmr.msra.gmra.mxu3 %vm288_vm1, %v95_v39 }
  0x2c   :  { %395 = vmatpush.bf16.msrb.mxu0 %v602_v45 }
  0x30   :  { %396 = vmatpush.bf16.msrb.mxu0 %v601_v46 }
  0x9f   :  { %v304_v48 = vpop.f32.mrf.mxu0 }
  0xa0   :  { %v317_v49 = vpop.f32.mrf.mxu1  ;;  %v305_v50 = vadd.f32 %v605_v47, %v304_v48 }
  0xa2   :  { %v318_v51 = vadd.f32 %v317_v49, %v305_v50 }
  0xa6   :  { %v330_v52 = vpop.f32.mrf.mxu2 }
  0xa7   :  { %v331_v53 = vadd.f32 %v330_v52, %v318_v51  ;;  %v306_v54 = vpop.f32.mrf.mxu0 }
  0xa8   :  { %v319_v55 = vpop.f32.mrf.mxu1 }
  0xac   :  { %v343_v56 = vpop.f32.mrf.mxu3 }
  0xad   :  { %v344_v57 = vadd.f32 %v343_v56, %v331_v53 }
  0xae   :  { %v332_v59 = vpop.f32.mrf.mxu2 }
  0xaf   :  { %v347_v58 = vmax.f32 %v344_v57, 0.0 }
  0xb1   :  { %v348_v60 = vpack.c.bf16 %v347_v58, %v347_v58 }
  0xb3   :  { %569 = vmatmul.msk.bf16.vlgmr.msrb.gmra.mxu0 %vm381_vm3, %v348_v60 }
  0xb4   :  { %v345_v61 = vpop.f32.mrf.mxu3 }
 0x130   :  { %v398_v63 = vpop.f32.mrf.mxu0 }
 0x131   :  { %v399_v0 = vadd.f32 %v606_v62, %v398_v63 }
 0x133   :  { %v403_v1 = vsel %vm402_vm4, %v399_v0, -inf }
 0x134   :  { %404 = vmax.xlane.f32.xlu0 %v403_v1 }
 0x138   :  { %v400_v2 = vpop.f32.mrf.mxu0 }
 0x1a7   :  { %v405_v3 = vpop.xlane.xlu0 %404 }
 0x1a8   :  { %v406_v4 = vsub.f32 %v399_v0, %v405_v3 }
 0x1aa   :  { %v407_v5 = vmul.f32 1.442695, %v406_v4 }
 0x1ac   :  { %607 = vpow2.f32 %v407_v5 }
 0x1b2   :  { %v608_v6 = vpop.eup %607 }
 0x1b3   :  { %v409_v7 = vsel %vm402_vm4, %v608_v6, 0.0 }
 0x1b4   :  { %410 = vadd.xlane.f32.xlu0 %v409_v7 }
 0x227   :  { %v411_v8 = vpop.xlane.xlu0 %410 }
 0x228   :  { %609 = vlog2.f32 %v411_v8 }
 0x22e   :  { %v610_v9 = vpop.eup %609 }
 0x22f   :  { %v413_v10 = vmul.f32 0.6931472, %v610_v9 }
 0x231   :  { %v414_v11 = vsub.f32 %v406_v4, %v413_v10 }
 0x233   :  { %415 = vst.msk [vmem:[#allocation2] sm:$0x3] %vm402_vm4, %v414_v11 }
 0x234   :  { %426 = dma.vmem_to_hbm [thread:$0]  %s422_s4, 32, %s424_s19, [#allocation3]  }
 0x235   :  { %635 = dma.done.wait [#allocation3], 32  }
 0x236   :  { %636 = vsyncadd [#allocation3], 4294967264 }
 0x237   :  { %431 = vsyncpa [#allocation3], 1 }

// kernel: cifar_net_forward.4
= control target key start
LH: loop header
LB: loop body
LE: loop exit
PB: predicated region body
PF: predicated region fallthrough
CT: control target
= control target key end

     0   :  { %s3940_s21 = smov 0   ;;  %s4702_s0 = inlined_call_operand.vmem [shape: bf16[2,7,280], index: 0, kind: input, shape index: {}]   ;;  %s4703_s1 = inlined_call_operand.vmem [shape: bf16[3,280,100], index: 1, kind: input, shape index: {}]   ;;  %s4704_s2 = inlined_call_operand.vmem [shape: bf16[3,280,100], index: 2, kind: input, shape index: {}]   ;;  %s4705_s3 = inlined_call_operand.vmem [shape: bf16[3,280,100], index: 3, kind: input, shape index: {}]   ;;  %s4706_s4 = inlined_call_operand.vmem [shape: bf16[3,280,100], index: 4, kind: input, shape index: {}]   ;;  %s4707_s5 = inlined_call_operand.vmem [shape: f32[1,100], index: 5, kind: input, shape index: {}]   ;;  %s4708_s6 = inlined_call_operand.vmem [shape: bf16[2,5,100], index: 6, kind: output, shape index: {}]  }
   0x1 LB: > { %s2566_s22 = sadd.s32 4294967295, %s3903_s21   ;;  %p2570_p0 = scmp.ge.s32.totalorder %s3903_s21, 1  ;;  %s3903_s21 = sphi %s3940_s21, %s16_s21  }
   0x2   : > { %p212_p1 = scmp.lt.s32.totalorder %s3903_s21, 3 }
   0x4   : > { %p213_p2 = pnand %p2570_p0, %p212_p1 }
   0x5   : > { %p241_p3 = scmp.lt.s32.totalorder (!%p213_p2), %s2566_s22, 1 }
   0x6   : > { %216 = sbr.rel (%p213_p2) target bundleno = 382 (0x17e), region = 44 }
   0xb   : > { %v3758_v0 = vld [vmem:[%s4703_s1 + $0xc4] sm:$0xff]  ;;  %v3698_v2 = vld [vmem:[%s4703_s1 + $0x78] sm:$0xff]  ;;  %v2607_v3 = vld [vmem:[%s4703_s1 + $0x114] sm:$0xf]  ;;  %s4710_s22 = smov (!%p241_p3, %s2566_s22), 1  ;;  %vm570_vm0 = vcmask 1043456  }
   0xc   : > { %v3766_v1 = vld [vmem:[%s4703_s1 + $0x104] sm:$0xff]  ;;  %574 = vmatpush.bf16.msra.mxu0 %v3758_v0  ;;  %v530_v4 = vunpack.c.l.b16 %v2607_v3  ;;  %v3757_v5 = vld [vmem:[%s4703_s1 + $0xbc] sm:$0xff]  ;;  %738 = vmatpush.bf16.msra.mxu2 %v3698_v2  ;;  %v3697_v7 = vld [vmem:[%s4703_s1 + $0x70] sm:$0xff]  ;;  %s3887_s13 = smul.u32 12, %s4710_s22  ;;  %vm566_vm1 = vcmask 195584   ;;  %s2572_s19 = sshll.u32 %s4710_s22, 2 }
   0xd   : > { %587 = vmatpush.bf16.msra.mxu1 %v3766_v1  ;;  %v3765_v6 = vld [vmem:[%s4703_s1 + $0xfc] sm:$0xff]  ;;  %v3756_v10 = vld [vmem:[%s4703_s1 + $0xb4] sm:$0xff]  ;;  %v3767_v12 = vld [vmem:[%s4703_s1 + $0x10c] sm:$0xff]  ;;  %s249_s24 = scalar_lea.vmem %s4708_s6, %s2572_s19  ;;  %vm2507_vm2 = vcmask 813056   ;;  %vm2508_vm3 = vsmask.f32 2304 }
   0xe   : > { %v548_v8 = vpack.c.b16 %v530_v4, %v530_v4  ;;  %v3764_v11 = vld [vmem:[%s4703_s1 + $0xf4] sm:$0xff]  ;;  %s245_s20 = scalar_lea.vmem %s4702_s0, %s3887_s13  ;;  %v3696_v13 = vld [vmem:[%s4703_s1 + $0x68] sm:$0xff]  ;;  %v3695_v19 = vld [vmem:[%s4703_s1 + $0x60] sm:$0xff] }
   0xf   : > { %v3690_v14 = vld [vmem:[%s4703_s1 + $0x38] sm:$0xff]  ;;  %v253_v15 = vld [vmem:[%s245_s20 + $0x8] sm:$0xf]  ;;  %v3755_v17 = vld [vmem:[%s4703_s1 + $0xac] sm:$0xff] }
  0x10   : > { %v572_v9 = vsel %vm570_vm0, %v548_v8, 0  ;;  %575 = vmatpush.bf16.msra.mxu0 %v3757_v5  ;;  %739 = vmatpush.bf16.msra.mxu2 %v3697_v7  ;;  %v434_v16 = vunpack.c.l.b16 %v253_v15  ;;  %v3763_v18 = vld [vmem:[%s4703_s1 + $0xec] sm:$0xff]  ;;  %v252_v22 = vld [vmem:[%s245_s20] sm:$0xff]  ;;  %v3694_v29 = vld [vmem:[%s4703_s1 + $0x58] sm:$0xff] }
  0x11   : > { %588 = vmatpush.bf16.msra.mxu1 %v3765_v6  ;;  %606 = vmatpush.bf16.msra.mxu3 %v572_v9  ;;  %v3689_v21 = vld [vmem:[%s4703_s1 + $0x30] sm:$0xff]  ;;  %v432_v25 = vunpack.c.l.b16 %v252_v22  ;;  %v3754_v26 = vld [vmem:[%s4703_s1 + $0xa4] sm:$0xff]  ;;  %v433_v28 = vunpack.c.h.b16 %v252_v22  ;;  %v3753_v35 = vld [vmem:[%s4703_s1 + $0x9c] sm:$0xff] }
  0x12   : > { %v4000_v20 = vpack.c.b16 %v434_v16, %v434_v16  ;;  %v3762_v27 = vld [vmem:[%s4703_s1 + $0xe4] sm:$0xff]  ;;  %v3761_v36 = vld [vmem:[%s4703_s1 + $0xdc] sm:$0xff]  ;;  %v3693_v38 = vld [vmem:[%s4703_s1 + $0x50] sm:$0xff] }
  0x13   : > { %v3688_v31 = vld [vmem:[%s4703_s1 + $0x28] sm:$0xff]  ;;  %v4024_v34 = vpack.c.b16 %v432_v25, %v432_v25  ;;  %v4032_v37 = vpack.c.b16 %v433_v28, %v433_v28  ;;  %v2780_v39 = vld [vmem:[%s4704_s2 + $0x114] sm:$0xf]  ;;  %v3687_v40 = vld [vmem:[%s4703_s1 + $0x20] sm:$0xff] }
  0x14   : > { %576 = vmatpush.bf16.msra.mxu0 %v3756_v10  ;;  %740 = vmatpush.bf16.msra.mxu2 %v3696_v13  ;;  %v453_v23 = vshrl.u32 %v4000_v20, 16  ;;  %v455_v24 = vshll.u32 %v4000_v20, 16  ;;  %v288_v33 = vld [vmem:[%s4703_s1 + $0x88] sm:$0xf]  ;;  %v3752_v43 = vld [vmem:[%s4703_s1 + $0x94] sm:$0xff]  ;;  %v869_v45 = vunpack.c.l.b16 %v2780_v39  ;;  %v3751_v52 = vld [vmem:[%s4703_s1 + $0x8c] sm:$0xff] }
  0x15   : > { %589 = vmatpush.bf16.msra.mxu1 %v3764_v11  ;;  %607 = vmatpush.bf16.msra.mxu3 %v3767_v12  ;;  %v684_v41 = vunpack.c.l.b16 %v288_v33  ;;  %v441_v42 = vshll.u32 %v4024_v34, 16  ;;  %v3760_v44 = vld [vmem:[%s4703_s1 + $0xd4] sm:$0xff]  ;;  %v448_v46 = vshll.u32 %v4032_v37, 16  ;;  %v3692_v47 = vld [vmem:[%s4703_s1 + $0x48] sm:$0xff]  ;;  %v439_v50 = vshrl.u32 %v4024_v34, 16  ;;  %v3691_v57 = vld [vmem:[%s4703_s1 + $0x40] sm:$0xff] }
  0x16   : > { %v457_v30 = vrot.slane %v455_v24, 1  ;;  %v3686_v48 = vld [vmem:[%s4703_s1 + $0x18] sm:$0xff]  ;;  %v3759_v53 = vld [vmem:[%s4703_s1 + $0xcc] sm:$0xff]  ;;  %v887_v54 = vpack.c.b16 %v869_v45, %v869_v45  ;;  %v446_v55 = vshrl.u32 %v4032_v37, 16  ;;  %v3775_v60 = vld [vmem:[%s4704_s2 + $0xc4] sm:$0xff] }
  0x17   : > { %v702_v49 = vpack.c.b16 %v684_v41, %v684_v41  ;;  %v443_v51 = vrot.slane %v441_v42, 1  ;;  %v450_v56 = vrot.slane %v448_v46, 1  ;;  %v3685_v58 = vld [vmem:[%s4703_s1 + $0x10] sm:$0xff]  ;;  %v3699_v0 = vld [vmem:[%s4703_s1 + $0x80] sm:$0xff]  ;;  %v3684_v1 = vld [vmem:[%s4703_s1 + $0x8] sm:$0xff] }
  0x18   : > { %577 = vmatpush.bf16.msra.mxu0 %v3755_v17  ;;  %741 = vmatpush.bf16.msra.mxu2 %v3695_v19  ;;  %v4019_v32 = vor.u32 %v457_v30, %v453_v23  ;;  %v906_v62 = vsel %vm570_vm0, %v887_v54, 0  ;;  %v3774_v2 = vld [vmem:[%s4704_s2 + $0xbc] sm:$0xff]  ;;  %v3784_v3 = vld [vmem:[%s4704_s2 + $0x10c] sm:$0xff]  ;;  %v3773_v7 = vld [vmem:[%s4704_s2 + $0xb4] sm:$0xff] }
  0x19   : > { %725 = vmatpush.bf16.msrb.mxu3 %v3690_v14  ;;  %590 = vmatpush.bf16.msra.mxu1 %v3763_v18  ;;  %v723_v59 = vsel %vm570_vm0, %v702_v49, 0  ;;  %v4077_v61 = vor.u32 %v443_v51, %v439_v50  ;;  %v4080_v63 = vor.u32 %v450_v56, %v446_v55  ;;  %v3707_v4 = vld [vmem:[%s4704_s2 + $0x38] sm:$0xff]  ;;  %v3683_v6 = vld [vmem:[%s4703_s1] sm:$0xff]  ;;  %v3706_v9 = vld [vmem:[%s4704_s2 + $0x30] sm:$0xff] }
  0x1a   : > { %2676 = vmatmul.msk.bf16.vlgmr.msra.gmra.mxu3 %vm566_vm1, %v4019_v32  ;;  %v3715_v5 = vld [vmem:[%s4704_s2 + $0x78] sm:$0xff]  ;;  %v3783_v8 = vld [vmem:[%s4704_s2 + $0x104] sm:$0xff]  ;;  %v3714_v10 = vld [vmem:[%s4704_s2 + $0x70] sm:$0xff] }
  0x1b   : > { %v3772_v11 = vld [vmem:[%s4704_s2 + $0xac] sm:$0xff]  ;;  %v3782_v12 = vld [vmem:[%s4704_s2 + $0xfc] sm:$0xff]  ;;  %v3771_v15 = vld [vmem:[%s4704_s2 + $0xa4] sm:$0xff] }
  0x1c   : > { %578 = vmatpush.bf16.msra.mxu0 %v3754_v26  ;;  %742 = vmatpush.bf16.msra.mxu2 %v3694_v29  ;;  %v3705_v13 = vld [vmem:[%s4704_s2 + $0x28] sm:$0xff]  ;;  %v3781_v16 = vld [vmem:[%s4704_s2 + $0xf4] sm:$0xff]  ;;  %v3704_v17 = vld [vmem:[%s4704_s2 + $0x20] sm:$0xff] }
  0x1d   : > { %726 = vmatpush.bf16.msrb.mxu3 %v3689_v21  ;;  %591 = vmatpush.bf16.msra.mxu1 %v3762_v27  ;;  %v3713_v14 = vld [vmem:[%s4704_s2 + $0x68] sm:$0xff]  ;;  %v3712_v18 = vld [vmem:[%s4704_s2 + $0x60] sm:$0xff]  ;;  %v3703_v23 = vld [vmem:[%s4704_s2 + $0x18] sm:$0xff] }
  0x1e   : > { %v3770_v19 = vld [vmem:[%s4704_s2 + $0x9c] sm:$0xff]  ;;  %v323_v21 = vld [vmem:[%s4704_s2 + $0x88] sm:$0xf]  ;;  %v3780_v22 = vld [vmem:[%s4704_s2 + $0xec] sm:$0xff] }
  0x1f   : > { %v3711_v24 = vld [vmem:[%s4704_s2 + $0x58] sm:$0xff]  ;;  %v1016_v25 = vunpack.c.l.b16 %v323_v21  ;;  %v3779_v27 = vld [vmem:[%s4704_s2 + $0xe4] sm:$0xff]  ;;  %v3702_v28 = vld [vmem:[%s4704_s2 + $0x10] sm:$0xff] }
  0x20   : > { %579 = vmatpush.bf16.msra.mxu0 %v3753_v35  ;;  %743 = vmatpush.bf16.msra.mxu2 %v3693_v38  ;;  %v3769_v26 = vld [vmem:[%s4704_s2 + $0x94] sm:$0xff]  ;;  %v3768_v33 = vld [vmem:[%s4704_s2 + $0x8c] sm:$0xff]  ;;  %v3778_v35 = vld [vmem:[%s4704_s2 + $0xdc] sm:$0xff] }
  0x21   : > { %727 = vmatpush.bf16.msrb.mxu3 %v3688_v31  ;;  %592 = vmatpush.bf16.msra.mxu1 %v3761_v36  ;;  %v3710_v29 = vld [vmem:[%s4704_s2 + $0x50] sm:$0xff]  ;;  %v1034_v31 = vpack.c.b16 %v1016_v25, %v1016_v25  ;;  %v3701_v36 = vld [vmem:[%s4704_s2 + $0x8] sm:$0xff]  ;;  %v3700_v42 = vld [vmem:[%s4704_s2] sm:$0xff] }
  0x22   : > { %v2953_v30 = vld [vmem:[%s4705_s3 + $0x114] sm:$0xf]  ;;  %v3709_v39 = vld [vmem:[%s4704_s2 + $0x48] sm:$0xff]  ;;  %v3724_v46 = vld [vmem:[%s4705_s3 + $0x38] sm:$0xff] }
  0x23   : > { %v1199_v38 = vunpack.c.l.b16 %v2953_v30  ;;  %v3777_v41 = vld [vmem:[%s4704_s2 + $0xd4] sm:$0xff]  ;;  %v3800_v45 = vld [vmem:[%s4705_s3 + $0x104] sm:$0xff]  ;;  %v3799_v51 = vld [vmem:[%s4705_s3 + $0xfc] sm:$0xff] }
  0x24   : > { %580 = vmatpush.bf16.msra.mxu0 %v3752_v43  ;;  %744 = vmatpush.bf16.msra.mxu2 %v3692_v47  ;;  %v3716_v47 = vld [vmem:[%s4704_s2 + $0x80] sm:$0xff]  ;;  %v3798_v55 = vld [vmem:[%s4705_s3 + $0xf4] sm:$0xff]  ;;  %v3722_v56 = vld [vmem:[%s4705_s3 + $0x28] sm:$0xff] }
  0x25   : > { %728 = vmatpush.bf16.msrb.mxu3 %v3687_v40  ;;  %593 = vmatpush.bf16.msra.mxu1 %v3760_v44  ;;  %v1053_v40 = vsel %vm570_vm0, %v1034_v31, 0  ;;  %v1217_v43 = vpack.c.b16 %v1199_v38, %v1199_v38  ;;  %v3708_v44 = vld [vmem:[%s4704_s2 + $0x40] sm:$0xff]  ;;  %v3728_v21 = vld [vmem:[%s4705_s3 + $0x58] sm:$0xff]  ;;  %v3806_v38 = vld [vmem:[%s4706_s4 + $0xac] sm:$0xff] }
  0x26   : > { %v3792_v50 = vld [vmem:[%s4705_s3 + $0xc4] sm:$0xff]  ;;  %v3791_v54 = vld [vmem:[%s4705_s3 + $0xbc] sm:$0xff]  ;;  %v3807_v31 = vld [vmem:[%s4706_s4 + $0xb4] sm:$0xff] }
  0x27   : > { %v1236_v49 = vsel %vm570_vm0, %v1217_v43, 0  ;;  %v3808_v25 = vld [vmem:[%s4706_s4 + $0xbc] sm:$0xff]  ;;  %v3805_v43 = vld [vmem:[%s4706_s4 + $0xa4] sm:$0xff]  ;;  %vm2509_vm4 = vmand %vm2507_vm2, %vm2508_vm3 }
  0x28   : > { %581 = vmatpush.bf16.msra.mxu0 %v3751_v52  ;;  %745 = vmatpush.bf16.msra.mxu2 %v3691_v57  ;;  %v3723_v52 = vld [vmem:[%s4705_s3 + $0x30] sm:$0xff]  ;;  %v3733_v30 = vld [vmem:[%s4705_s3 + $0x80] sm:$0xff] }
  0x29   : > { %729 = vmatpush.bf16.msrb.mxu3 %v3686_v48  ;;  %594 = vmatpush.bf16.msra.mxu1 %v3759_v53  ;;  %v3776_v48 = vld [vmem:[%s4704_s2 + $0xcc] sm:$0xff]  ;;  %v3790_v57 = vld [vmem:[%s4705_s3 + $0xb4] sm:$0xff] }
  0x2a   : > { %v3801_v53 = vld [vmem:[%s4705_s3 + $0x10c] sm:$0xff] }
  0x2b   : > { %582 = vmatmul.bf16.vlgmr.msra.gmra.mxu0 %v4077_v61  ;;  %746 = vmatmul.bf16.vlgmr.msra.gmra.mxu2 %v4032_v37 }
  0x2c   : > { %757 = vmatpush.bf16.msrb.mxu0 %v723_v59  ;;  %940 = vmatpush.bf16.msrb.mxu2 %v906_v62  ;;  %v3721_v59 = vld [vmem:[%s4705_s3 + $0x20] sm:$0xff]  ;;  %v3789_v62 = vld [vmem:[%s4705_s3 + $0xac] sm:$0xff] }
  0x2d   : > { %730 = vmatpush.bf16.msrb.mxu3 %v3685_v58  ;;  %908 = vmatpush.bf16.msrb.mxu1 %v3775_v60  ;;  %v3797_v58 = vld [vmem:[%s4705_s3 + $0xec] sm:$0xff]  ;;  %v3732_v60 = vld [vmem:[%s4705_s3 + $0x78] sm:$0xff] }
  0x2e   : > { %595 = vmatmul.bf16.vlgmr.msra.gmra.mxu1 %v4080_v63 }
  0x30   : > { %758 = vmatpush.bf16.msrb.mxu0 %v3699_v0  ;;  %941 = vmatpush.bf16.msrb.mxu2 %v3784_v3  ;;  %v3796_v0 = vld [vmem:[%s4705_s3 + $0xe4] sm:$0xff] }
  0x31   : > { %731 = vmatpush.bf16.msrb.mxu3 %v3684_v1  ;;  %909 = vmatpush.bf16.msrb.mxu1 %v3774_v2  ;;  %v3720_v1 = vld [vmem:[%s4705_s3 + $0x18] sm:$0xff]  ;;  %v3731_v2 = vld [vmem:[%s4705_s3 + $0x70] sm:$0xff]  ;;  %v3788_v3 = vld [vmem:[%s4705_s3 + $0xa4] sm:$0xff] }
  0x34   : > { %1055 = vmatpush.bf16.msra.mxu0 %v3707_v4  ;;  %1068 = vmatpush.bf16.msra.mxu2 %v3715_v5  ;;  %v3795_v4 = vld [vmem:[%s4705_s3 + $0xdc] sm:$0xff]  ;;  %v3126_v5 = vld [vmem:[%s4706_s4 + $0x114] sm:$0xf] }
  0x35   : > { %732 = vmatpush.bf16.msrb.mxu3 %v3683_v6  ;;  %910 = vmatpush.bf16.msrb.mxu1 %v3773_v7  ;;  %v3719_v6 = vld [vmem:[%s4705_s3 + $0x10] sm:$0xff]  ;;  %v3730_v7 = vld [vmem:[%s4705_s3 + $0x68] sm:$0xff] }
  0x38   : > { %1056 = vmatpush.bf16.msra.mxu0 %v3706_v9  ;;  %1069 = vmatpush.bf16.msra.mxu2 %v3714_v10  ;;  %v358_v9 = vld [vmem:[%s4705_s3 + $0x88] sm:$0xf]  ;;  %v3787_v10 = vld [vmem:[%s4705_s3 + $0x9c] sm:$0xff] }
  0x39   : > { %921 = vmatpush.bf16.msra.mxu3 %v3783_v8  ;;  %911 = vmatpush.bf16.msrb.mxu1 %v3772_v11  ;;  %v1529_v8 = vunpack.c.l.b16 %v3126_v5  ;;  %v3794_v11 = vld [vmem:[%s4705_s3 + $0xd4] sm:$0xff] }
  0x3a   : > { %733 = vmatmul.bf16.vlgmr.msrb.gmra.mxu3 %v4024_v34  ;;  %v3736_v5 = vld [vmem:[%s4706_s4 + $0x10] sm:$0xff] }
  0x3b   : > { %2745 = vmatmul.msk.bf16.vlgmr.msrb.gmra.mxu0 %vm566_vm1, %v4000_v20  ;;  %2849 = vmatmul.msk.bf16.vlgmr.msrb.gmra.mxu2 %vm566_vm1, %v4019_v32 }
  0x3c   : > { %1057 = vmatpush.bf16.msra.mxu0 %v3705_v13  ;;  %1070 = vmatpush.bf16.msra.mxu2 %v3713_v14  ;;  %v3729_v13 = vld [vmem:[%s4705_s3 + $0x60] sm:$0xff]  ;;  %v1346_v14 = vunpack.c.l.b16 %v358_v9  ;;  %v3833_v9 = vld [vmem:[%s4703_s1 + $0x188] sm:$0xff] }
  0x3d   : > { %922 = vmatpush.bf16.msra.mxu3 %v3782_v12  ;;  %912 = vmatpush.bf16.msrb.mxu1 %v3771_v15  ;;  %v3718_v12 = vld [vmem:[%s4705_s3 + $0x8] sm:$0xff]  ;;  %v1547_v15 = vpack.c.b16 %v1529_v8, %v1529_v8 }
  0x40   : > { %1058 = vmatpush.bf16.msra.mxu0 %v3704_v17  ;;  %1071 = vmatpush.bf16.msra.mxu2 %v3712_v18  ;;  %v3793_v17 = vld [vmem:[%s4705_s3 + $0xcc] sm:$0xff]  ;;  %v3717_v18 = vld [vmem:[%s4705_s3] sm:$0xff] }
  0x41   : > { %923 = vmatpush.bf16.msra.mxu3 %v3781_v16  ;;  %913 = vmatpush.bf16.msrb.mxu1 %v3770_v19  ;;  %v3786_v16 = vld [vmem:[%s4705_s3 + $0x94] sm:$0xff]  ;;  %v3809_v19 = vld [vmem:[%s4706_s4 + $0xc4] sm:$0xff] }
  0x44   : > { %1059 = vmatpush.bf16.msra.mxu0 %v3703_v23  ;;  %1072 = vmatpush.bf16.msra.mxu2 %v3711_v24  ;;  %v1566_v23 = vsel %vm570_vm0, %v1547_v15, 0  ;;  %v3785_v24 = vld [vmem:[%s4705_s3 + $0x8c] sm:$0xff]  ;;  %v3734_v15 = vld [vmem:[%s4706_s4] sm:$0xff] }
  0x45   : > { %924 = vmatpush.bf16.msra.mxu3 %v3780_v22  ;;  %914 = vmatpush.bf16.msrb.mxu1 %v3769_v26  ;;  %v1364_v22 = vpack.c.b16 %v1346_v14, %v1346_v14  ;;  %v3832_v14 = vld [vmem:[%s4703_s1 + $0x180] sm:$0xff] }
  0x47   : > { %v1383_v26 = vsel %vm570_vm0, %v1364_v22, 0  ;;  %v3851_v22 = vld [vmem:[%s4704_s2 + $0x190] sm:$0xff] }
  0x48   : > { %1060 = vmatpush.bf16.msra.mxu0 %v3702_v28  ;;  %1073 = vmatpush.bf16.msra.mxu2 %v3710_v29  ;;  %v3818_v28 = vld [vmem:[%s4706_s4 + $0x10c] sm:$0xff]  ;;  %v3749_v29 = vld [vmem:[%s4706_s4 + $0x78] sm:$0xff] }
  0x49   : > { %925 = vmatpush.bf16.msra.mxu3 %v3779_v27  ;;  %915 = vmatpush.bf16.msrb.mxu1 %v3768_v33  ;;  %v3727_v27 = vld [vmem:[%s4705_s3 + $0x50] sm:$0xff]  ;;  %v3726_v33 = vld [vmem:[%s4705_s3 + $0x48] sm:$0xff] }
  0x4c   : > { %1061 = vmatpush.bf16.msra.mxu0 %v3701_v36  ;;  %1074 = vmatpush.bf16.msra.mxu2 %v3709_v39  ;;  %v3748_v36 = vld [vmem:[%s4706_s4 + $0x70] sm:$0xff]  ;;  %v3725_v39 = vld [vmem:[%s4705_s3 + $0x40] sm:$0xff] }
  0x4d   : > { %926 = vmatpush.bf16.msra.mxu3 %v3778_v35  ;;  %1087 = vmatpush.bf16.msra.mxu1 %v1053_v40  ;;  %v3817_v35 = vld [vmem:[%s4706_s4 + $0x104] sm:$0xff]  ;;  %v3816_v40 = vld [vmem:[%s4706_s4 + $0xfc] sm:$0xff] }
  0x4e   : > { %916 = vmatmul.bf16.vlgmr.msrb.gmra.mxu1 %v4077_v61 }
  0x50   : > { %1062 = vmatpush.bf16.msra.mxu0 %v3700_v42  ;;  %1075 = vmatpush.bf16.msra.mxu2 %v3708_v44  ;;  %v3747_v42 = vld [vmem:[%s4706_s4 + $0x68] sm:$0xff]  ;;  %v3815_v44 = vld [vmem:[%s4706_s4 + $0xf4] sm:$0xff] }
  0x51   : > { %927 = vmatpush.bf16.msra.mxu3 %v3777_v41  ;;  %1088 = vmatpush.bf16.msra.mxu1 %v3716_v47  ;;  %v3741_v41 = vld [vmem:[%s4706_s4 + $0x38] sm:$0xff]  ;;  %v393_v47 = vld [vmem:[%s4706_s4 + $0x88] sm:$0xf] }
  0x53   : > { %1063 = vmatmul.bf16.vlgmr.msra.gmra.mxu0 %v4024_v34  ;;  %1076 = vmatmul.bf16.vlgmr.msra.gmra.mxu2 %v4032_v37 }
  0x54   : > { %1251 = vmatpush.bf16.msrb.mxu0 %v3800_v45  ;;  %1385 = vmatpush.bf16.msrb.mxu2 %v3724_v46  ;;  %v3746_v45 = vld [vmem:[%s4706_s4 + $0x60] sm:$0xff]  ;;  %v3740_v46 = vld [vmem:[%s4706_s4 + $0x30] sm:$0xff] }
  0x55   : > { %1270 = vmatpush.bf16.msrb.mxu1 %v1236_v49  ;;  %928 = vmatpush.bf16.msra.mxu3 %v3776_v48  ;;  %v3804_v48 = vld [vmem:[%s4706_s4 + $0x9c] sm:$0xff]  ;;  %v3814_v49 = vld [vmem:[%s4706_s4 + $0xec] sm:$0xff] }
  0x58   : > { %1252 = vmatpush.bf16.msrb.mxu0 %v3799_v51  ;;  %1386 = vmatpush.bf16.msrb.mxu2 %v3723_v52  ;;  %v1676_v51 = vunpack.c.l.b16 %v393_v47  ;;  %v3739_v52 = vld [vmem:[%s4706_s4 + $0x28] sm:$0xff]  ;;  %v3836_v47 = vld [vmem:[%s4704_s2 + $0x118] sm:$0xff] }
  0x59   : > { %1238 = vmatpush.bf16.msrb.mxu3 %v3792_v50  ;;  %1271 = vmatpush.bf16.msrb.mxu1 %v3801_v53  ;;  %v3745_v50 = vld [vmem:[%s4706_s4 + $0x58] sm:$0xff] }
  0x5a   : > { %929 = vmatmul.bf16.vlgmr.msra.gmra.mxu3 %v4080_v63  ;;  %v3803_v53 = vld [vmem:[%s4706_s4 + $0x94] sm:$0xff] }
  0x5c   : > { %1253 = vmatpush.bf16.msrb.mxu0 %v3798_v55  ;;  %1387 = vmatpush.bf16.msrb.mxu2 %v3722_v56  ;;  %v3744_v55 = vld [vmem:[%s4706_s4 + $0x50] sm:$0xff]  ;;  %v1694_v56 = vpack.c.b16 %v1676_v51, %v1676_v51  ;;  %v3819_v51 = vld [vmem:[%s4703_s1 + $0x118] sm:$0xff] }
  0x5d   : > { %1239 = vmatpush.bf16.msrb.mxu3 %v3791_v54  ;;  %v3813_v54 = vld [vmem:[%s4706_s4 + $0xe4] sm:$0xff] }
  0x5e   : > { %2918 = vmatmul.msk.bf16.vlgmr.msra.gmra.mxu1 %vm566_vm1, %v4000_v20 }
  0x5f   : > { %1398 = vmatpush.bf16.msra.mxu1 %v3732_v60  ;;  %v1713_v60 = vsel %vm570_vm0, %v1694_v56, 0 }
  0x60   : > { %1254 = vmatpush.bf16.msrb.mxu0 %v3797_v58  ;;  %1388 = vmatpush.bf16.msrb.mxu2 %v3721_v59  ;;  %v3812_v58 = vld [vmem:[%s4706_s4 + $0xdc] sm:$0xff]  ;;  %v3743_v59 = vld [vmem:[%s4706_s4 + $0x48] sm:$0xff] }
  0x61   : > { %1240 = vmatpush.bf16.msrb.mxu3 %v3790_v57  ;;  %v3802_v57 = vld [vmem:[%s4706_s4 + $0x8c] sm:$0xff] }
  0x63   : > { %1399 = vmatpush.bf16.msra.mxu1 %v3731_v2  ;;  %v3742_v2 = vld [vmem:[%s4706_s4 + $0x40] sm:$0xff] }
  0x64   : > { %1255 = vmatpush.bf16.msrb.mxu0 %v3796_v0  ;;  %1389 = vmatpush.bf16.msrb.mxu2 %v3720_v1  ;;  %v3811_v0 = vld [vmem:[%s4706_s4 + $0xd4] sm:$0xff]  ;;  %v3750_v1 = vld [vmem:[%s4706_s4 + $0x80] sm:$0xff] }
  0x65   : > { %1241 = vmatpush.bf16.msrb.mxu3 %v3789_v62  ;;  %v3737_v62 = vld [vmem:[%s4706_s4 + $0x18] sm:$0xff] }
  0x67   : > { %1400 = vmatpush.bf16.msra.mxu1 %v3730_v7  ;;  %v3810_v7 = vld [vmem:[%s4706_s4 + $0xcc] sm:$0xff] }
  0x68   : > { %1256 = vmatpush.bf16.msrb.mxu0 %v3795_v4  ;;  %1390 = vmatpush.bf16.msrb.mxu2 %v3719_v6  ;;  %v3299_v4 = vld [vmem:[%s4703_s1 + $0x1a0] sm:$0xf]  ;;  %v3843_v6 = vld [vmem:[%s4704_s2 + $0x150] sm:$0xff] }
  0x69   : > { %1242 = vmatpush.bf16.msrb.mxu3 %v3788_v3  ;;  %v3834_v3 = vld [vmem:[%s4703_s1 + $0x190] sm:$0xff]  ;;  %v1864_v8 = vunpack.c.l.b16 %v3299_v4  ;;  %v3884_v4 = vld [vmem:[%s4706_s4 + $0x188] sm:$0xff] }
  0x6b   : > { %1401 = vmatpush.bf16.msra.mxu1 %v3729_v13  ;;  %v3825_v13 = vld [vmem:[%s4703_s1 + $0x148] sm:$0xff] }
  0x6c   : > { %1257 = vmatpush.bf16.msrb.mxu0 %v3794_v11  ;;  %1391 = vmatpush.bf16.msrb.mxu2 %v3718_v12  ;;  %v3842_v11 = vld [vmem:[%s4704_s2 + $0x148] sm:$0xff]  ;;  %v1882_v12 = vpack.c.b16 %v1864_v8, %v1864_v8 }
  0x6d   : > { %1243 = vmatpush.bf16.msrb.mxu3 %v3787_v10  ;;  %v3735_v10 = vld [vmem:[%s4706_s4 + $0x8] sm:$0xff] }
  0x6e   : > { %3022 = vmatmul.msk.bf16.vlgmr.msrb.gmra.mxu1 %vm566_vm1, %v4019_v32 }
  0x6f   : > { %1402 = vmatpush.bf16.msra.mxu1 %v3728_v21  ;;  %v3840_v21 = vld [vmem:[%s4704_s2 + $0x138] sm:$0xff] }
  0x70   : > { %1258 = vmatpush.bf16.msrb.mxu0 %v3793_v17  ;;  %1392 = vmatpush.bf16.msrb.mxu2 %v3717_v18  ;;  %v1904_v17 = vsel %vm570_vm0, %v1882_v12, 0  ;;  %v3824_v18 = vld [vmem:[%s4703_s1 + $0x140] sm:$0xff] }
  0x71   : > { %1244 = vmatpush.bf16.msrb.mxu3 %v3786_v16  ;;  %v3841_v16 = vld [vmem:[%s4704_s2 + $0x140] sm:$0xff] }
  0x72   : > { %v3866_v12 = vld [vmem:[%s4705_s3 + $0x180] sm:$0xff] }
  0x73   : > { %1259 = vmatmul.bf16.vlgmr.msrb.gmra.mxu0 %v4080_v63  ;;  %1393 = vmatmul.bf16.vlgmr.msrb.gmra.mxu2 %v4024_v34 }
  0x74   : > { %1568 = vmatpush.bf16.msra.mxu0 %v3809_v19  ;;  %1600 = vmatpush.bf16.msra.mxu2 %v1566_v23  ;;  %v3831_v19 = vld [vmem:[%s4703_s1 + $0x178] sm:$0xff] }
  0x75   : > { %1245 = vmatpush.bf16.msrb.mxu3 %v3785_v24  ;;  %1403 = vmatpush.bf16.msra.mxu1 %v3727_v27  ;;  %v3823_v23 = vld [vmem:[%s4703_s1 + $0x138] sm:$0xff]  ;;  %v3830_v24 = vld [vmem:[%s4703_s1 + $0x170] sm:$0xff] }
  0x76   : > { %v3822_v27 = vld [vmem:[%s4703_s1 + $0x130] sm:$0xff] }
  0x78   : > { %1569 = vmatpush.bf16.msra.mxu0 %v3808_v25  ;;  %1601 = vmatpush.bf16.msra.mxu2 %v3818_v28  ;;  %v3839_v25 = vld [vmem:[%s4704_s2 + $0x130] sm:$0xff]  ;;  %v3507_v28 = vld [vmem:[%s4705_s3 + $0x1a0] sm:$0xf] }
  0x79   : > { %1417 = vmatpush.bf16.msra.mxu3 %v1383_v26  ;;  %1404 = vmatpush.bf16.msra.mxu1 %v3726_v33  ;;  %v3850_v26 = vld [vmem:[%s4704_s2 + $0x188] sm:$0xff]  ;;  %v2235_v33 = vunpack.c.l.b16 %v3507_v28  ;;  %v3864_v28 = vld [vmem:[%s4705_s3 + $0x170] sm:$0xff] }
  0x7a   : > { %1246 = vmatmul.bf16.vlgmr.msrb.gmra.mxu3 %v4077_v61 }
  0x7c   : > { %1728 = vmatpush.bf16.msrb.mxu2 %v3749_v29  ;;  %1570 = vmatpush.bf16.msra.mxu0 %v3807_v31  ;;  %v3829_v29 = vld [vmem:[%s4703_s1 + $0x168] sm:$0xff]  ;;  %v3849_v31 = vld [vmem:[%s4704_s2 + $0x180] sm:$0xff] }
  0x7d   : > { %1418 = vmatpush.bf16.msra.mxu3 %v3733_v30  ;;  %1405 = vmatpush.bf16.msra.mxu1 %v3725_v39  ;;  %v3838_v30 = vld [vmem:[%s4704_s2 + $0x128] sm:$0xff]  ;;  %v3837_v39 = vld [vmem:[%s4704_s2 + $0x120] sm:$0xff] }
  0x80   : > { %1729 = vmatpush.bf16.msrb.mxu2 %v3748_v36  ;;  %1571 = vmatpush.bf16.msra.mxu0 %v3806_v38  ;;  %v3821_v36 = vld [vmem:[%s4703_s1 + $0x128] sm:$0xff]  ;;  %v3828_v38 = vld [vmem:[%s4703_s1 + $0x160] sm:$0xff] }
  0x81   : > { %1581 = vmatpush.bf16.msrb.mxu3 %v3817_v35  ;;  %1715 = vmatpush.bf16.msrb.mxu1 %v3741_v41  ;;  %v3403_v35 = vld [vmem:[%s4704_s2 + $0x1a0] sm:$0xf] }
  0x82   : > { %1406 = vmatmul.bf16.vlgmr.msra.gmra.mxu1 %v4032_v37  ;;  %v2051_v41 = vunpack.c.l.b16 %v3403_v35 }
  0x83   : > { %3195 = vmatmul.msk.bf16.vlgmr.msra.gmra.mxu2 %vm566_vm1, %v4019_v32  ;;  %v3738_v32 = vld [vmem:[%s4706_s4 + $0x20] sm:$0xff] }
  0x84   : > { %1730 = vmatpush.bf16.msrb.mxu2 %v3747_v42  ;;  %1572 = vmatpush.bf16.msra.mxu0 %v3805_v43  ;;  %v3848_v42 = vld [vmem:[%s4704_s2 + $0x178] sm:$0xff]  ;;  %v2253_v43 = vpack.c.b16 %v2235_v33, %v2235_v33 }
  0x85   : > { %1582 = vmatpush.bf16.msrb.mxu3 %v3816_v40  ;;  %1716 = vmatpush.bf16.msrb.mxu1 %v3740_v46  ;;  %v3827_v46 = vld [vmem:[%s4703_s1 + $0x158] sm:$0xff] }
  0x88   : > { %1731 = vmatpush.bf16.msrb.mxu2 %v3746_v45  ;;  %1573 = vmatpush.bf16.msra.mxu0 %v3804_v48  ;;  %v4533_v45 = vrot.slane %v4000_v20, 1  ;;  %v3860_v48 = vld [vmem:[%s4705_s3 + $0x150] sm:$0xff] }
  0x89   : > { %1583 = vmatpush.bf16.msrb.mxu3 %v3815_v44  ;;  %1717 = vmatpush.bf16.msrb.mxu1 %v3739_v52  ;;  %v3820_v44 = vld [vmem:[%s4703_s1 + $0x120] sm:$0xff]  ;;  %v4554_v52 = vrot.slane %v4024_v34, 1 }
  0x8a   : > { %3091 = vmatmul.msk.bf16.vlgmr.msra.gmra.mxu3 %vm566_vm1, %v4000_v20 }
  0x8c   : > { %1732 = vmatpush.bf16.msrb.mxu2 %v3745_v50  ;;  %1574 = vmatpush.bf16.msra.mxu0 %v3803_v53  ;;  %v2272_v50 = vsel %vm570_vm0, %v2253_v43, 0 }
  0x8d   : > { %1584 = vmatpush.bf16.msrb.mxu3 %v3814_v49  ;;  %1718 = vmatpush.bf16.msrb.mxu1 %v3738_v32  ;;  %v2069_v49 = vpack.c.b16 %v2051_v41, %v2051_v41 }
  0x8f   : > { %v2088_v56 = vsel %vm570_vm0, %v2069_v49, 0 }
  0x90   : > { %1733 = vmatpush.bf16.msrb.mxu2 %v3744_v55  ;;  %1575 = vmatpush.bf16.msra.mxu0 %v3802_v57  ;;  %v4557_v55 = vrot.slane %v4032_v37, 1  ;;  %v3859_v57 = vld [vmem:[%s4705_s3 + $0x148] sm:$0xff] }
  0x91   : > { %1585 = vmatpush.bf16.msrb.mxu3 %v3813_v54  ;;  %1719 = vmatpush.bf16.msrb.mxu1 %v3737_v62 }
  0x93   : > { %1576 = vmatmul.bf16.vlgmr.msra.gmra.mxu0 %v4077_v61  ;;  %v3826_v61 = vld [vmem:[%s4703_s1 + $0x150] sm:$0xff] }
  0x94   : > { %1747 = vmatpush.bf16.msrb.mxu0 %v1713_v60  ;;  %1734 = vmatpush.bf16.msrb.mxu2 %v3743_v59  ;;  %v3885_v59 = vld [vmem:[%s4706_s4 + $0x190] sm:$0xff]  ;;  %v3852_v60 = vld [vmem:[%s4704_s2 + $0x198] sm:$0xff] }
  0x95   : > { %1586 = vmatpush.bf16.msrb.mxu3 %v3812_v58  ;;  %1720 = vmatpush.bf16.msrb.mxu1 %v3736_v5 }
  0x98   : > { %1748 = vmatpush.bf16.msrb.mxu0 %v3750_v1  ;;  %1735 = vmatpush.bf16.msrb.mxu2 %v3742_v2  ;;  %v3868_v1 = vld [vmem:[%s4705_s3 + $0x190] sm:$0xff]  ;;  %v3845_v2 = vld [vmem:[%s4704_s2 + $0x160] sm:$0xff] }
  0x99   : > { %1587 = vmatpush.bf16.msrb.mxu3 %v3811_v0  ;;  %1721 = vmatpush.bf16.msrb.mxu1 %v3735_v10  ;;  %v3858_v0 = vld [vmem:[%s4705_s3 + $0x140] sm:$0xff] }
  0x9a   : > { %v3883_v10 = vld [vmem:[%s4706_s4 + $0x180] sm:$0xff] }
  0x9b   : > { %1736 = vmatmul.bf16.vlgmr.msrb.gmra.mxu2 %v4032_v37  ;;  %v3846_v37 = vld [vmem:[%s4704_s2 + $0x168] sm:$0xff] }
  0x9c   : > { %1919 = vmatpush.bf16.msra.mxu0 %v3834_v3  ;;  %2090 = vmatpush.bf16.msra.mxu2 %v3843_v6  ;;  %v3857_v6 = vld [vmem:[%s4705_s3 + $0x138] sm:$0xff] }
  0x9d   : > { %1588 = vmatpush.bf16.msrb.mxu3 %v3810_v7  ;;  %1722 = vmatpush.bf16.msrb.mxu1 %v3734_v15  ;;  %v609_v40 = vpop.f32.mrf.mxu3  ;;  %v3867_v7 = vld [vmem:[%s4705_s3 + $0x188] sm:$0xff]  ;;  %v3882_v15 = vld [vmem:[%s4706_s4 + $0x178] sm:$0xff] }
  0xa0   : > { %1920 = vmatpush.bf16.msra.mxu0 %v3833_v9  ;;  %2091 = vmatpush.bf16.msra.mxu2 %v3842_v11  ;;  %v3877_v9 = vld [vmem:[%s4706_s4 + $0x150] sm:$0xff] }
  0xa1   : > { %1906 = vmatpush.bf16.msra.mxu3 %v3826_v61  ;;  %1938 = vmatpush.bf16.msra.mxu1 %v1904_v17  ;;  %v3844_v61 = vld [vmem:[%s4704_s2 + $0x158] sm:$0xff]  ;;  %v3856_v11 = vld [vmem:[%s4705_s3 + $0x130] sm:$0xff]  ;;  %v3611_v17 = vld [vmem:[%s4706_s4 + $0x1a0] sm:$0xf] }
  0xa2   : > { %1589 = vmatmul.bf16.vlgmr.msrb.gmra.mxu3 %v4080_v63  ;;  %v3835_v63 = vld [vmem:[%s4703_s1 + $0x198] sm:$0xff]  ;;  %1723 = vmatmul.bf16.vlgmr.msrb.gmra.mxu1 %v4024_v34 }
  0xa3   : > { %3264 = vmatmul.msk.bf16.vlgmr.msrb.gmra.mxu0 %vm566_vm1, %v4000_v20  ;;  %v3847_v20 = vld [vmem:[%s4704_s2 + $0x170] sm:$0xff]  ;;  %v3869_v34 = vld [vmem:[%s4705_s3 + $0x198] sm:$0xff] }
  0xa4   : > { %1921 = vmatpush.bf16.msra.mxu0 %v3832_v14  ;;  %2092 = vmatpush.bf16.msra.mxu2 %v3841_v16  ;;  %v3876_v14 = vld [vmem:[%s4706_s4 + $0x148] sm:$0xff] }
  0xa5   : > { %1907 = vmatpush.bf16.msra.mxu3 %v3825_v13  ;;  %1939 = vmatpush.bf16.msra.mxu1 %v3835_v63  ;;  %v611_v54 = vpop.f32.mrf.mxu3  ;;  %v3865_v63 = vld [vmem:[%s4705_s3 + $0x178] sm:$0xff] }
  0xa6   : > { %v3870_v54 = vld [vmem:[%s4706_s4 + $0x118] sm:$0xff] }
  0xa8   : > { %1922 = vmatpush.bf16.msra.mxu0 %v3831_v19  ;;  %2093 = vmatpush.bf16.msra.mxu2 %v3840_v21  ;;  %v583_v53 = vpop.f32.mrf.mxu0  ;;  %v3855_v21 = vld [vmem:[%s4705_s3 + $0x128] sm:$0xff] }
  0xa9   : > { %1908 = vmatpush.bf16.msra.mxu3 %v3824_v18  ;;  %2103 = vmatpush.bf16.msrb.mxu1 %v3851_v22 }
  0xab   : > { %v596_v32 = vpop.f32.mrf.mxu1 }
  0xac   : > { %1923 = vmatpush.bf16.msra.mxu0 %v3830_v24  ;;  %2094 = vmatpush.bf16.msra.mxu2 %v3839_v25  ;;  %v597_v58 = vadd.f32 %v596_v32, %v583_v53  ;;  %v2419_v24 = vunpack.c.l.b16 %v3611_v17  ;;  %v3881_v25 = vld [vmem:[%s4706_s4 + $0x170] sm:$0xff] }
  0xad   : > { %1909 = vmatpush.bf16.msra.mxu3 %v3823_v23  ;;  %2104 = vmatpush.bf16.msrb.mxu1 %v3850_v26  ;;  %v3875_v23 = vld [vmem:[%s4706_s4 + $0x140] sm:$0xff] }
  0xae   : > { %v610_v62 = vadd.f32 %v609_v40, %v597_v58  ;;  %v747_v3 = vpop.f32.mrf.mxu2  ;;  %v3873_v40 = vld [vmem:[%s4706_s4 + $0x130] sm:$0xff] }
  0xb0   : > { %1924 = vmatpush.bf16.msra.mxu0 %v3829_v29  ;;  %2095 = vmatpush.bf16.msra.mxu2 %v3838_v30  ;;  %v585_v5 = vpop.f32.mrf.mxu0  ;;  %v3874_v29 = vld [vmem:[%s4706_s4 + $0x138] sm:$0xff]  ;;  %v2437_v30 = vpack.c.b16 %v2419_v24, %v2419_v24 }
  0xb1   : > { %1910 = vmatpush.bf16.msra.mxu3 %v3822_v27  ;;  %2105 = vmatpush.bf16.msrb.mxu1 %v3849_v31  ;;  %v3854_v27 = vld [vmem:[%s4705_s3 + $0x120] sm:$0xff]  ;;  %v3880_v31 = vld [vmem:[%s4706_s4 + $0x168] sm:$0xff] }
  0xb2   : > { %3368 = vmatmul.msk.bf16.vlgmr.msra.gmra.mxu1 %vm566_vm1, %v4533_v45  ;;  %v2456_v41 = vsel %vm570_vm0, %v2437_v30, 0 }
  0xb3   : > { %v598_v8 = vpop.f32.mrf.mxu1 }
  0xb4   : > { %1925 = vmatpush.bf16.msra.mxu0 %v3828_v38  ;;  %2096 = vmatpush.bf16.msra.mxu2 %v3837_v39  ;;  %v3863_v39 = vld [vmem:[%s4705_s3 + $0x168] sm:$0xff] }
  0xb5   : > { %1911 = vmatpush.bf16.msra.mxu3 %v3821_v36  ;;  %2106 = vmatpush.bf16.msrb.mxu1 %v3848_v42  ;;  %v3853_v36 = vld [vmem:[%s4705_s3 + $0x118] sm:$0xff]  ;;  %v3879_v42 = vld [vmem:[%s4706_s4 + $0x160] sm:$0xff] }
  0xb6   : > { %v749_v13 = vpop.f32.mrf.mxu2 }
  0xb8   : > { %1926 = vmatpush.bf16.msra.mxu0 %v3827_v46  ;;  %2097 = vmatpush.bf16.msra.mxu2 %v3836_v47  ;;  %v760_v19 = vpop.f32.mrf.mxu0  ;;  %v3886_v46 = vld [vmem:[%s4706_s4 + $0x198] sm:$0xff]  ;;  %v3872_v47 = vld [vmem:[%s4706_s4 + $0x128] sm:$0xff] }
  0xb9   : > { %1912 = vmatpush.bf16.msra.mxu3 %v3820_v44  ;;  %2107 = vmatpush.bf16.msrb.mxu1 %v3847_v20  ;;  %v3862_v44 = vld [vmem:[%s4705_s3 + $0x160] sm:$0xff]  ;;  %v3861_v20 = vld [vmem:[%s4705_s3 + $0x158] sm:$0xff] }
  0xbb   : > { %2098 = vmatmul.bf16.vlgmr.msra.gmra.mxu2 %v4554_v52  ;;  %1927 = vmatmul.bf16.vlgmr.msra.gmra.mxu0 %v4557_v55 }
  0xbc   : > { %2274 = vmatpush.bf16.msrb.mxu0 %v3860_v48  ;;  %2306 = vmatpush.bf16.msrb.mxu2 %v2272_v50  ;;  %v3878_v48 = vld [vmem:[%s4706_s4 + $0x158] sm:$0xff]  ;;  %v3871_v50 = vld [vmem:[%s4706_s4 + $0x120] sm:$0xff] }
  0xbd   : > { %1913 = vmatpush.bf16.msra.mxu3 %v3819_v51  ;;  %2108 = vmatpush.bf16.msrb.mxu1 %v3846_v37  ;;  %v734_v16 = vpop.f32.mrf.mxu3 }
  0xbe   : > { %v735_v18 = vadd.f32 %v734_v16, %v610_v62  ;;  %v943_v33 = vpop.f32.mrf.mxu2 }
  0xc0   : > { %2275 = vmatpush.bf16.msrb.mxu0 %v3859_v57  ;;  %2307 = vmatpush.bf16.msrb.mxu2 %v3869_v34  ;;  %v748_v22 = vadd.f32 %v747_v3, %v735_v18  ;;  %v762_v38 = vpop.f32.mrf.mxu0 }
  0xc1   : > { %2122 = vmatpush.bf16.msrb.mxu3 %v2088_v56  ;;  %2109 = vmatpush.bf16.msrb.mxu1 %v3845_v2 }
  0xc2   : > { %1914 = vmatmul.bf16.vlgmr.msra.gmra.mxu3 %v4554_v52  ;;  %v4635_v26 = vadd.f32 %v760_v19, %v748_v22 }
  0xc4   : > { %2471 = vmatpush.bf16.msra.mxu2 %v3885_v59  ;;  %2276 = vmatpush.bf16.msrb.mxu0 %v3858_v0 }
  0xc5   : > { %2123 = vmatpush.bf16.msrb.mxu3 %v3852_v60  ;;  %2110 = vmatpush.bf16.msrb.mxu1 %v3844_v61  ;;  %v736_v35 = vpop.f32.mrf.mxu3 }
  0xc6   : > { %v945_v49 = vpop.f32.mrf.mxu2 }
  0xc8   : > { %2472 = vmatpush.bf16.msra.mxu2 %v3884_v4  ;;  %2277 = vmatpush.bf16.msrb.mxu0 %v3857_v6 }
  0xc9   : > { %2287 = vmatpush.bf16.msra.mxu3 %v3868_v1  ;;  %2458 = vmatpush.bf16.msra.mxu1 %v3877_v9 }
  0xca   : > { %2111 = vmatmul.bf16.vlgmr.msrb.gmra.mxu1 %v4557_v55 }
  0xcb   : > { %3576 = vmatmul.msk.bf16.vlgmr.msrb.gmra.mxu2 %vm566_vm1, %v4533_v45  ;;  %v917_v43 = vpop.f32.mrf.mxu1 }
  0xcc   : > { %2473 = vmatpush.bf16.msra.mxu2 %v3883_v10  ;;  %2278 = vmatpush.bf16.msrb.mxu0 %v3856_v11 }
  0xcd   : > { %2288 = vmatpush.bf16.msra.mxu3 %v3867_v7  ;;  %2459 = vmatpush.bf16.msra.mxu1 %v3876_v14 }
  0xd0   : > { %2474 = vmatpush.bf16.msra.mxu2 %v3882_v15  ;;  %2279 = vmatpush.bf16.msrb.mxu0 %v3855_v21  ;;  %v1064_v51 = vpop.f32.mrf.mxu0 }
  0xd1   : > { %2289 = vmatpush.bf16.msra.mxu3 %v3866_v12  ;;  %2460 = vmatpush.bf16.msra.mxu1 %v3875_v23 }
  0xd2   : > { %3472 = vmatmul.msk.bf16.vlgmr.msrb.gmra.mxu3 %vm566_vm1, %v4533_v45 }
  0xd3   : > { %v919_v53 = vpop.f32.mrf.mxu1 }
  0xd4   : > { %2475 = vmatpush.bf16.msra.mxu2 %v3881_v25  ;;  %2280 = vmatpush.bf16.msrb.mxu0 %v3854_v27 }
  0xd5   : > { %2290 = vmatpush.bf16.msra.mxu3 %v3865_v63  ;;  %2461 = vmatpush.bf16.msra.mxu1 %v3874_v29 }
  0xd6   : > { %v1077_v56 = vpop.f32.mrf.mxu2 }
  0xd8   : > { %2476 = vmatpush.bf16.msra.mxu2 %v3880_v31  ;;  %2281 = vmatpush.bf16.msrb.mxu0 %v3853_v36  ;;  %v1066_v32 = vpop.f32.mrf.mxu0 }
  0xd9   : > { %2291 = vmatpush.bf16.msra.mxu3 %v3864_v28  ;;  %2462 = vmatpush.bf16.msra.mxu1 %v3873_v40 }
  0xdb   : > { %2282 = vmatmul.bf16.vlgmr.msrb.gmra.mxu0 %v4554_v52  ;;  %v1090_v58 = vpop.f32.mrf.mxu1 }
  0xdc   : > { %2490 = vmatpush.bf16.msra.mxu0 %v2456_v41  ;;  %2477 = vmatpush.bf16.msra.mxu2 %v3879_v42 }
  0xdd   : > { %2292 = vmatpush.bf16.msra.mxu3 %v3863_v39  ;;  %2463 = vmatpush.bf16.msra.mxu1 %v3872_v47  ;;  %v930_v57 = vpop.f32.mrf.mxu3 }
  0xde   : > { %v931_v34 = vadd.f32 %v930_v57, %v917_v43  ;;  %v1079_v60 = vpop.f32.mrf.mxu2 }
  0xe0   : > { %2491 = vmatpush.bf16.msra.mxu0 %v3886_v46  ;;  %2478 = vmatpush.bf16.msra.mxu2 %v3878_v48  ;;  %v944_v37 = vadd.f32 %v943_v33, %v931_v34 }
  0xe1   : > { %2293 = vmatpush.bf16.msra.mxu3 %v3862_v44  ;;  %2464 = vmatpush.bf16.msra.mxu1 %v3871_v50 }
  0xe2   : > { %v1065_v59 = vadd.f32 %v1064_v51, %v944_v37 }
  0xe3   : > { %2479 = vmatmul.bf16.vlgmr.msra.gmra.mxu2 %v4557_v55  ;;  %v1092_v2 = vpop.f32.mrf.mxu1 }
  0xe4   : > { %v1078_v62 = vadd.f32 %v1077_v56, %v1065_v59 }
  0xe5   : > { %2294 = vmatpush.bf16.msra.mxu3 %v3861_v20  ;;  %2465 = vmatpush.bf16.msra.mxu1 %v3870_v54  ;;  %v932_v0 = vpop.f32.mrf.mxu3 }
  0xe6   : > { %v1091_v1 = vadd.f32 %v1090_v58, %v1078_v62 }
  0xe8   : > { %2295 = vmatmul.bf16.vlgmr.msra.gmra.mxu3 %v4557_v55  ;;  %2466 = vmatmul.bf16.vlgmr.msra.gmra.mxu1 %v4554_v52 }
  0xeb   : > { %3680 = vmatmul.msk.bf16.vlgmr.msra.gmra.mxu0 %vm566_vm1, %v4533_v45  ;;  %v1273_v3 = vpop.f32.mrf.mxu1 }
  0xf0   : > { %v1260_v55 = vpop.f32.mrf.mxu0 }
  0xf3   : > { %v1275_v5 = vpop.f32.mrf.mxu1 }
  0xf6   : > { %v1394_v4 = vpop.f32.mrf.mxu2 }
  0xf8   : > { %v1262_v6 = vpop.f32.mrf.mxu0 }
  0xfd   : > { %v1247_v7 = vpop.f32.mrf.mxu3 }
  0xfe   : > { %v1261_v8 = vadd.f32 %v1260_v55, %v1247_v7  ;;  %v1396_v52 = vpop.f32.mrf.mxu2 }
  0xff   : > { %v1407_v10 = vpop.f32.mrf.mxu1 }
 0x100   : > { %v1274_v61 = vadd.f32 %v1273_v3, %v1261_v8 }
 0x102   : > { %v1395_v9 = vadd.f32 %v1394_v4, %v1274_v61 }
 0x104   : > { %v1408_v11 = vadd.f32 %v1407_v10, %v1395_v9 }
 0x105   : > { %v1249_v45 = vpop.f32.mrf.mxu3 }
 0x106   : > { %v1603_v12 = vpop.f32.mrf.mxu2  ;;  %v2510_v45 = vld [vmem:[%s249_s24] sm:$0x7] }
 0x107   : > { %v1409_v13 = vpop.f32.mrf.mxu1 }
 0x10d   : > { %v1420_v14 = vpop.f32.mrf.mxu3 }
 0x10e   : > { %v1421_v15 = vadd.f32 %v1420_v14, %v1408_v11  ;;  %v1605_v17 = vpop.f32.mrf.mxu2 }
 0x110   : > { %v1577_v16 = vpop.f32.mrf.mxu0 }
 0x115   : > { %v1422_v18 = vpop.f32.mrf.mxu3 }
 0x118   : > { %v1579_v19 = vpop.f32.mrf.mxu0 }
 0x11e   : > { %v1737_v21 = vpop.f32.mrf.mxu2 }
 0x11f   : > { %v1724_v63 = vpop.f32.mrf.mxu1 }
 0x120   : > { %v1750_v24 = vpop.f32.mrf.mxu0 }
 0x125   : > { %v1590_v22 = vpop.f32.mrf.mxu3 }
 0x126   : > { %v1591_v23 = vadd.f32 %v1590_v22, %v1577_v16  ;;  %v1739_v28 = vpop.f32.mrf.mxu2 }
 0x127   : > { %v1726_v30 = vpop.f32.mrf.mxu1 }
 0x128   : > { %v1604_v25 = vadd.f32 %v1603_v12, %v1591_v23  ;;  %v1752_v35 = vpop.f32.mrf.mxu0 }
 0x12a   : > { %v1725_v27 = vadd.f32 %v1724_v63, %v1604_v25 }
 0x12c   : > { %v1738_v29 = vadd.f32 %v1737_v21, %v1725_v27 }
 0x12d   : > { %v1592_v31 = vpop.f32.mrf.mxu3 }
 0x12e   : > { %v1751_v33 = vadd.f32 %v1750_v24, %v1738_v29 }
 0x12f   : > { %v1941_v36 = vpop.f32.mrf.mxu1 }
 0x137   : > { %v1943_v39 = vpop.f32.mrf.mxu1 }
 0x138   : > { %v1928_v38 = vpop.f32.mrf.mxu0 }
 0x13e   : > { %v2099_v40 = vpop.f32.mrf.mxu2 }
 0x140   : > { %v1930_v42 = vpop.f32.mrf.mxu0 }
 0x145   : > { %v1915_v41 = vpop.f32.mrf.mxu3 }
 0x146   : > { %v2101_v44 = vpop.f32.mrf.mxu2  ;;  %v1929_v47 = vadd.f32 %v1928_v38, %v1915_v41 }
 0x147   : > { %v2112_v43 = vpop.f32.mrf.mxu1 }
 0x148   : > { %v1942_v20 = vadd.f32 %v1941_v36, %v1929_v47  ;;  %v2113_v50 = vadd.f32 %v2112_v43, %v2099_v40 }
 0x14a   : > { %v1945_v54 = vadd.f32 %v1942_v20, %v4635_v26  ;;  %v3896_v26 = vld [vmem:[%s4707_s5] ss:$0 sm:$0xff] }
 0x14d   : > { %v1917_v46 = vpop.f32.mrf.mxu3 }
 0x14e   : > { %v2309_v49 = vpop.f32.mrf.mxu2 }
 0x14f   : > { %v2114_v48 = vpop.f32.mrf.mxu1 }
 0x155   : > { %v2125_v51 = vpop.f32.mrf.mxu3 }
 0x156   : > { %v2126_v53 = vadd.f32 %v2125_v51, %v2113_v50  ;;  %v2311_v34 = vpop.f32.mrf.mxu2 }
 0x158   : > { %v2129_v56 = vadd.f32 %v2126_v53, %v1091_v1  ;;  %v2283_v32 = vpop.f32.mrf.mxu0 }
 0x15a   : > { %v2498_v57 = vmax.f32 %v1945_v54, %v2129_v56 }
 0x15d   : > { %v2127_v58 = vpop.f32.mrf.mxu3 }
 0x160   : > { %v2285_v37 = vpop.f32.mrf.mxu0 }
 0x165   : > { %v2467_v60 = vpop.f32.mrf.mxu1 }
 0x166   : > { %v2480_v59 = vpop.f32.mrf.mxu2 }
 0x167   : > { %v2481_v62 = vadd.f32 %v2480_v59, %v2467_v60 }
 0x168   : > { %v2493_v3 = vpop.f32.mrf.mxu0 }
 0x169   : > { %v2494_v55 = vadd.f32 %v2493_v3, %v2481_v62 }
 0x16b   : > { %v2296_v0 = vpop.f32.mrf.mxu3  ;;  %v2497_v5 = vadd.f32 %v2494_v55, %v1751_v33 }
 0x16c   : > { %v2297_v2 = vadd.f32 %v2296_v0, %v2283_v32 }
 0x16d   : > { %v2469_v1 = vpop.f32.mrf.mxu1 }
 0x16e   : > { %v2310_v4 = vadd.f32 %v2309_v49, %v2297_v2  ;;  %v2482_v7 = vpop.f32.mrf.mxu2 }
 0x170   : > { %v2313_v6 = vadd.f32 %v2310_v4, %v1421_v15  ;;  %v2495_v9 = vpop.f32.mrf.mxu0 }
 0x172   : > { %v2499_v8 = vmax.f32 %v2313_v6, %v2497_v5 }
 0x173   : > { %v2298_v61 = vpop.f32.mrf.mxu3 }
 0x174   : > { %v2500_v52 = vmax.f32 %v2498_v57, %v2499_v8 }
 0x176   : > { %v2504_v10 = vadd.f32 %v3896_v26, %v2500_v52 }
 0x178   : > { %v2505_v11 = vmax.f32 %v2504_v10, 0.0 }
 0x17a   : > { %v2506_v12 = vpack.c.bf16 %v2505_v11, %v2505_v11 }
 0x17c   : > { %v2511_v13 = vsel %vm2509_vm4, %v2506_v12, %v2510_v45 }
 0x17d   : > { %2512 = vst [vmem:[%s249_s24] sm:$0x7] %v2511_v13 }
 0x17e PF: > { %s16_s21 = sadd.s32 1, %s3903_s21  }
 0x17f   : > { %p13_p4 = scmp.ge.s32.totalorder %s16_s21, 4  }
 0x181   :  { %15 = sbr.rel (!%p13_p4) target bundleno = 1 (0x1), region = 82 }

</bundles_post_ra>
